<compile_context>
chip_gen: v7x
topology: tpu7x:2x2x1
jax: 0.10.0
libtpu: 0.0.40
codegen_flags: <defaults>
</compile_context>

<pallas_src>
import functools

import numpy as np
import jax
import jax.numpy as jnp
from jax import lax
from jax.experimental import pallas as pl
from jax.experimental.pallas import tpu as pltpu


def _round_up(x, m):
    return ((x + m - 1) // m) * m


# ----------------------------------------------------------------------------
# Fused kernel: per-batch-element 2-layer LSTM (teacher forcing; one-hot input
# replaced by a weight-row gather) + pointer-score readout.  One grid step per
# batch element.
# ----------------------------------------------------------------------------
def _decoder_kernel(P, Tmax, mL_pad,
                    g_idx_ref, l_in_ref,                    # scalar prefetch (SMEM)
                    wencT_ref, h0_ref, c0_ref,
                    wih0_ref, whh0_ref, b0_ref,
                    wih1_ref, whh1_ref, b1_ref,
                    wpntT_ref, bpnt_ref, ws2sT_ref, bs2s_ref,
                    wout_ref, bout_ref,
                    out_ref):
    b = pl.program_id(0)

    # W_s2s(wenc)^T + b_s2s + b_pnt, computed once per batch element:
    # (hS, mL_pad); lane axis = mL_pad (dense 128-lane layout).
    base = (jnp.dot(ws2sT_ref[...], wencT_ref[...],
                    preferred_element_type=jnp.float32)
            + bs2s_ref[...] + bpnt_ref[...])

    # Length mask (shared by every timestep): positions >= l_input[b] -> -1e10.
    col = lax.broadcasted_iota(jnp.int32, (1, mL_pad), 1)
    oob = col >= l_in_ref[b]

    # Hoist weight loads out of the unrolled time loop.
    whh0 = whh0_ref[...]
    wih1 = wih1_ref[...]
    whh1 = whh1_ref[...]
    b0 = b0_ref[...]
    b1 = b1_ref[...]
    wpntT = wpntT_ref[...]        # (hS, P)
    wout = wout_ref[...]          # (1, hS)
    bout = bout_ref[...]          # (1, 1), broadcast-added

    # Initial per-batch LSTM state, zero-padded to P lanes (padded lanes stay 0).
    h_l0 = h0_ref[0:1, :]
    c_l0 = c0_ref[0:1, :]
    h_l1 = h0_ref[1:2, :]
    c_l1 = c0_ref[1:2, :]

    def gates_to_hc(gates, c):
        # Gate blocks are P(=128)-lane aligned -> whole-vreg slices, no lane shifts.
        i = jax.nn.sigmoid(gates[:, 0 * P:1 * P])
        f = jax.nn.sigmoid(gates[:, 1 * P:2 * P])
        g = jnp.tanh(gates[:, 2 * P:3 * P])
        o = jax.nn.sigmoid(gates[:, 3 * P:4 * P])
        c_new = f * c + i * g
        return o * jnp.tanh(c_new), c_new

    # Fully unrolled time loop (Tmax small & static).
    for t in range(Tmax):
        idx = g_idx_ref[b, t]
        # one-hot(x_t) @ W_ih_l0 == row gather (padded idx==mL hits an all-zero row).
        xrow = wih0_ref[idx]                                              # (1, 4P)
        gates0 = xrow + jnp.dot(h_l0, whh0,
                                preferred_element_type=jnp.float32) + b0
        h_l0, c_l0 = gates_to_hc(gates0, c_l0)

        gates1 = (jnp.dot(h_l0, wih1, preferred_element_type=jnp.float32)
                  + jnp.dot(h_l1, whh1, preferred_element_type=jnp.float32)
                  + b1)
        h_l1, c_l1 = gates_to_hc(gates1, c_l1)

        # W_pnt^T @ h_t as a column: (hS, 1)  (NT matmul on the MXU; bias already in base).
        dpcol = lax.dot_general(wpntT, h_l1, (((1,), (1,)), ((), ())),
                                preferred_element_type=jnp.float32)
        # Broadcast-add + tanh, lane-dense over mL_pad; hS reduction on the MXU.
        z_t = jnp.tanh(base + dpcol)                                      # (hS, mL_pad)
        s_t = jnp.dot(wout, z_t, preferred_element_type=jnp.float32) + bout  # (1, mL_pad)
        s_t = jnp.where(oob, jnp.float32(-1e10), s_t)
        out_ref[pl.ds(t, 1), :] = s_t                                     # dense 128-lane row


# ----------------------------------------------------------------------------
# Parameter repacking for the kernel layout (done once, outside the kernel).
# ----------------------------------------------------------------------------
def _prepare_kernel_params(params, hS, mL, P):
    def pad_gates(w):                     # (n, 4*hS) -> (n, 4*P), zero-pad each gate
        n = w.shape[0]
        w4 = w.reshape(n, 4, hS)
        return jnp.pad(w4, ((0, 0), (0, 0), (0, P - hS))).reshape(n, 4 * P)

    def pad_rows(w, rows):                # zero-pad leading dim to `rows`
        return jnp.pad(w, ((0, rows - w.shape[0]), (0, 0)))

    wih0 = jnp.pad(pad_gates(params["wih0"]), ((0, 1), (0, 0)))   # extra zero row @ idx==mL
    wih0 = wih0.reshape(mL + 1, 1, 4 * P)                         # gather table
    return {
        "wih0": wih0,                                             # (mL+1, 1, 4P)
        "whh0": pad_rows(pad_gates(params["whh0"]), P),           # (P, 4P)
        "b0": pad_gates(params["b0"]),                            # (1, 4P)
        "wih1": pad_rows(pad_gates(params["wih1"]), P),           # (P, 4P)
        "whh1": pad_rows(pad_gates(params["whh1"]), P),           # (P, 4P)
        "b1": pad_gates(params["b1"]),                            # (1, 4P)
        "wpntT": jnp.transpose(pad_rows(params["w_pnt"], P)),     # (hS, P)
        "bpnt": params["b_pnt"].reshape(hS, 1),                   # (hS, 1)
        "ws2sT": jnp.transpose(params["w_s2s"]),                  # (hS, iS)
        "bs2s": params["b_s2s"].reshape(hS, 1),                   # (hS, 1)
        "wout": params["w_out"].reshape(1, hS),                   # (1, hS)
        "bout": params["b_out"].reshape(1, 1),                    # (1, 1)
    }


# ----------------------------------------------------------------------------
# Decoder_s2s.forward (g_pnt_idxs provided, i.e. teacher-forcing branch)
# ----------------------------------------------------------------------------
def decoder_s2s_forward(params, wenc_s2s, l_input, cls_vec, pnt_start_tok,
                        g_pnt_idxs, *, hS, lS, Tmax):
    del pnt_start_tok  # only used by the (not-kernelized) autoregressive branch
    assert lS == 2, "kernel hardcodes the 2-layer decode_pn LSTM"
    bS, mL, iS = wenc_s2s.shape
    P = _round_up(hS, 128)          # per-gate lane padding (whole-vreg gate slices)
    mL_pad = _round_up(mL, 128)     # lane-dense score width / output store

    kp = _prepare_kernel_params(params, hS, mL, P)

    # Teacher-forcing pointer indices padded with mL (-> gathers the all-zero row,
    # identical to the all-zero one-hot rows in the PyTorch module).
    g_idx = np.full((bS, Tmax), mL, dtype=np.int32)
    for b, idxs in enumerate(g_pnt_idxs):
        n = min(len(idxs), Tmax)
        g_idx[b, :n] = np.asarray(idxs[:n], dtype=np.int32)
    g_idx = jnp.asarray(g_idx)
    l_input = jnp.asarray(l_input, dtype=jnp.int32)

    # Encoder outputs transposed + lane-padded: (bS, iS, mL_pad).
    wencT = jnp.transpose(wenc_s2s, (0, 2, 1))
    wencT = jnp.pad(wencT, ((0, 0), (0, 0), (0, mL_pad - mL)))

    # Initial LSTM state from cls_vec (same slicing as PyTorch), padded to P lanes.
    h0 = jnp.zeros((bS, lS, P), jnp.float32)
    c0 = jnp.zeros((bS, lS, P), jnp.float32)
    for l in range(lS):
        h0 = h0.at[:, l, :hS].set(cls_vec[:, 2 * l * hS:2 * l * hS + hS])
        c0 = c0.at[:, l, :hS].set(cls_vec[:, (2 * l + 1) * hS:(2 * l + 1) * hS + hS])

    kernel = functools.partial(_decoder_kernel, P, Tmax, mL_pad)
    const2 = lambda b, gi, li: (0, 0)
    const3 = lambda b, gi, li: (0, 0, 0)
    batch3 = lambda b, gi, li: (b, 0, 0)

    s_full = pl.pallas_call(
        kernel,
        out_shape=jax.ShapeDtypeStruct((bS, Tmax, mL_pad), jnp.float32),
        grid_spec=pltpu.PrefetchScalarGridSpec(
            num_scalar_prefetch=2,                       # g_idx, l_input in SMEM
            grid=(bS,),
            in_specs=[
                pl.BlockSpec((None, iS, mL_pad), batch3),     # wenc^T (lane-padded)
                pl.BlockSpec((None, lS, P), batch3),          # h_0
                pl.BlockSpec((None, lS, P), batch3),          # c_0
                pl.BlockSpec((mL + 1, 1, 4 * P), const3),     # W_ih_l0 gather table
                pl.BlockSpec((P, 4 * P), const2),             # W_hh_l0^T
                pl.BlockSpec((1, 4 * P), const2),             # b_l0
                pl.BlockSpec((P, 4 * P), const2),             # W_ih_l1^T
                pl.BlockSpec((P, 4 * P), const2),             # W_hh_l1^T
                pl.BlockSpec((1, 4 * P), const2),             # b_l1
                pl.BlockSpec((hS, P), const2),                # W_pnt^T (row-padded)
                pl.BlockSpec((hS, 1), const2),                # b_pnt (column)
                pl.BlockSpec((hS, iS), const2),               # W_s2s^T
                pl.BlockSpec((hS, 1), const2),                # b_s2s (column)
                pl.BlockSpec((1, hS), const2),                # wv_out weight (row)
                pl.BlockSpec((1, 1), const2),                 # wv_out bias
            ],
            out_specs=pl.BlockSpec((None, Tmax, mL_pad), batch3),
        ),
        compiler_params=pltpu.CompilerParams(
            dimension_semantics=("parallel",)),               # v7x: 2 TCs split the batch
    )(g_idx, l_input,
      wencT, h0, c0,
      kp["wih0"], kp["whh0"], kp["b0"], kp["wih1"], kp["whh1"], kp["b1"],
      kp["wpntT"], kp["bpnt"], kp["ws2sT"], kp["bs2s"], kp["wout"], kp["bout"])

    return s_full[:, :, :mL]                                  # (bS, Tmax, mL)


# ----------------------------------------------------------------------------
# Pure-JAX reference for correctness checking (unpadded params, one-hot inputs)
# ----------------------------------------------------------------------------
def reference_forward(params, wenc_s2s, l_input, pnt_n, h0, c0, hS):
    def cell(x, h, c, w_ih, w_hh, b):
        gates = x @ w_ih + h @ w_hh + b
        i = jax.nn.sigmoid(gates[:, :hS])
        f = jax.nn.sigmoid(gates[:, hS:2 * hS])
        g = jnp.tanh(gates[:, 2 * hS:3 * hS])
        o = jax.nn.sigmoid(gates[:, 3 * hS:])
        c_new = f * c + i * g
        return o * jnp.tanh(c_new), c_new

    def step(carry, x_t):
        h0l, c0l, h1l, c1l = carry
        h0n, c0n = cell(x_t, h0l, c0l, params["wih0"], params["whh0"], params["b0"])
        h1n, c1n = cell(h0n, h1l, c1l, params["wih1"], params["whh1"], params["b1"])
        return (h0n, c0n, h1n, c1n), h1n

    xs = jnp.transpose(pnt_n, (1, 0, 2))
    _, ys = lax.scan(step, (h0[0], c0[0], h0[1], c0[1]), xs)
    dec = jnp.transpose(ys, (1, 0, 2))                            # (bS, Tmax, hS)

    wp = jnp.einsum('bmi,ih->bmh', wenc_s2s, params["w_s2s"]) + params["b_s2s"]
    dp = jnp.einsum('bth,hk->btk', dec, params["w_pnt"]) + params["b_pnt"]
    z = jnp.tanh(dp[:, :, None, :] + wp[:, None, :, :])
    s = jnp.einsum('btmh,h->btm', z, params["w_out"][0, 0]) + params["b_out"][0, 0]
    mL = wenc_s2s.shape[1]
    mask = jnp.arange(mL)[None, None, :] >= l_input[:, None, None]
    return jnp.where(mask, -1e10, s)


# ----------------------------------------------------------------------------
def init_params(key, iS, hS, mL):
    ks = jax.random.split(key, 12)
    u = lambda k, shp, scale: jax.random.uniform(k, shp, jnp.float32, -scale, scale)
    sh = 1.0 / jnp.sqrt(hS)
    si = 1.0 / jnp.sqrt(iS)
    return {
        # decode_pn LSTM (2 layers); weights stored transposed for x @ W, gate order i,f,g,o
        "wih0": u(ks[0], (mL, 4 * hS), sh),
        "whh0": u(ks[1], (hS, 4 * hS), sh),
        "b0":   u(ks[2], (1, 4 * hS), sh),
        "wih1": u(ks[3], (hS, 4 * hS), sh),
        "whh1": u(ks[4], (hS, 4 * hS), sh),
        "b1":   u(ks[5], (1, 4 * hS), sh),
        # W_s2s: Linear(iS, hS); W_pnt: Linear(hS, hS); wv_out: Linear(hS, 1)
        "w_s2s": u(ks[6], (iS, hS), si),
        "b_s2s": u(ks[7], (1, hS), si),
        "w_pnt": u(ks[8], (hS, hS), sh),
        "b_pnt": u(ks[9], (1, hS), sh),
        "w_out": u(ks[10], (1, 1, hS), sh),
        "b_out": u(ks[11], (1, 1), sh),
    }


if __name__ == "__main__":
    # small config consistent with the module (iS, hS, lS, max_seq_length, Tmax)
    bS, mL, iS, hS, lS, Tmax = 2, 40, 48, 32, 2, 8
    pnt_start_tok = 0

    key = jax.random.PRNGKey(0)
    k_p, k_w, k_c = jax.random.split(key, 3)
    params = init_params(k_p, iS, hS, mL)

    wenc_s2s = jax.random.normal(k_w, (bS, mL, iS), jnp.float32) * 0.5
    cls_vec = jax.random.normal(k_c, (bS, 2 * lS * hS), jnp.float32) * 0.1
    l_input = jnp.array([mL, 25], dtype=jnp.int32)
    g_pnt_idxs = [[0, 3, 5, 12, 7, 1], [0, 9, 4, 2]]   # teacher-forcing pointer idxs

    s_wv = decoder_s2s_forward(
        params, wenc_s2s, l_input, cls_vec, pnt_start_tok, g_pnt_idxs,
        hS=hS, lS=lS, Tmax=Tmax)
    s_wv = jax.block_until_ready(s_wv)

    # reference (one-hot inputs + unpadded initial states, as in the PyTorch module)
    pnt_n_np = np.zeros((bS, Tmax, mL), np.float32)
    for b, idxs in enumerate(g_pnt_idxs):
        for t, idx in enumerate(idxs):
            pnt_n_np[b, t, idx] = 1.0
    h0r = jnp.stack([cls_vec[:, 2 * l * hS:2 * l * hS + hS] for l in range(lS)], 0)
    c0r = jnp.stack([cls_vec[:, (2 * l + 1) * hS:(2 * l + 1) * hS + hS]
                     for l in range(lS)], 0)
    s_ref = reference_forward(params, wenc_s2s, l_input, jnp.asarray(pnt_n_np),
                              h0r, c0r, hS)

    assert s_wv.shape == (bS, Tmax, mL)
    # tolerance accounts for TPU MXU default-precision (bf16-pass) f32 matmuls in both paths
    assert jnp.allclose(s_wv, s_ref, rtol=2e-2, atol=2e-2), \
        f"max abs err = {jnp.max(jnp.abs(s_wv - s_ref))}"
    print("KERNEL_OK")
</pallas_src>

<mosaic_0001>
module attributes {stable_mosaic.version = 11 : i64} {
  func.func @_decoder_kernel(%arg0: i32, %arg1: memref<2x8xi32, #tpu.memory_space<smem>>, %arg2: memref<2xi32, #tpu.memory_space<smem>>, %arg3: memref<1x48x128xf32, #tpu.memory_space<vmem>>, %arg4: memref<1x2x128xf32, #tpu.memory_space<vmem>>, %arg5: memref<1x2x128xf32, #tpu.memory_space<vmem>>, %arg6: memref<41x1x512xf32, #tpu.memory_space<vmem>>, %arg7: memref<128x512xf32, #tpu.memory_space<vmem>>, %arg8: memref<1x512xf32, #tpu.memory_space<vmem>>, %arg9: memref<128x512xf32, #tpu.memory_space<vmem>>, %arg10: memref<128x512xf32, #tpu.memory_space<vmem>>, %arg11: memref<1x512xf32, #tpu.memory_space<vmem>>, %arg12: memref<32x128xf32, #tpu.memory_space<vmem>>, %arg13: memref<32x1xf32, #tpu.memory_space<vmem>>, %arg14: memref<32x48xf32, #tpu.memory_space<vmem>>, %arg15: memref<32x1xf32, #tpu.memory_space<vmem>>, %arg16: memref<1x32xf32, #tpu.memory_space<vmem>>, %arg17: memref<1x1xf32, #tpu.memory_space<vmem>>, %arg18: memref<1x8x128xf32, #tpu.memory_space<vmem>>) attributes {dimension_semantics = [#tpu.dimension_semantics<parallel>], iteration_bounds = array<i64: 2>, scalar_prefetch = 2 : i64, scratch_operands = 0 : i64, tpu.core_type = #tpu.core_type<tc>, window_params = [{transform_indices = @transform_0, window_bounds = array<i64: 1, 48, 128>}, {transform_indices = @transform_1, window_bounds = array<i64: 1, 2, 128>}, {transform_indices = @transform_2, window_bounds = array<i64: 1, 2, 128>}, {pipeline_mode = #tpu.pipeline_mode<synchronous>, transform_indices = @transform_3, window_bounds = array<i64: 41, 1, 512>}, {pipeline_mode = #tpu.pipeline_mode<synchronous>, transform_indices = @transform_4, window_bounds = array<i64: 128, 512>}, {pipeline_mode = #tpu.pipeline_mode<synchronous>, transform_indices = @transform_5, window_bounds = array<i64: 1, 512>}, {pipeline_mode = #tpu.pipeline_mode<synchronous>, transform_indices = @transform_6, window_bounds = array<i64: 128, 512>}, {pipeline_mode = #tpu.pipeline_mode<synchronous>, transform_indices = @transform_7, window_bounds = array<i64: 128, 512>}, {pipeline_mode = #tpu.pipeline_mode<synchronous>, transform_indices = @transform_8, window_bounds = array<i64: 1, 512>}, {pipeline_mode = #tpu.pipeline_mode<synchronous>, transform_indices = @transform_9, window_bounds = array<i64: 32, 128>}, {pipeline_mode = #tpu.pipeline_mode<synchronous>, transform_indices = @transform_10, window_bounds = array<i64: 32, 1>}, {pipeline_mode = #tpu.pipeline_mode<synchronous>, transform_indices = @transform_11, window_bounds = array<i64: 32, 48>}, {pipeline_mode = #tpu.pipeline_mode<synchronous>, transform_indices = @transform_12, window_bounds = array<i64: 32, 1>}, {pipeline_mode = #tpu.pipeline_mode<synchronous>, transform_indices = @transform_13, window_bounds = array<i64: 1, 32>}, {pipeline_mode = #tpu.pipeline_mode<synchronous>, transform_indices = @transform_14, window_bounds = array<i64: 1, 1>}, {transform_indices = @transform_15, window_bounds = array<i64: 1, 8, 128>}]} {
    %c0 = arith.constant 0 : index
    %c0_0 = arith.constant 0 : index
    %0 = vector.load %arg14[%c0, %c0_0] : memref<32x48xf32, #tpu.memory_space<vmem>>, vector<32x48xf32>
    %c0_1 = arith.constant 0 : index
    %c0_2 = arith.constant 0 : index
    %c0_3 = arith.constant 0 : index
    %1 = vector.load %arg3[%c0_1, %c0_2, %c0_3] : memref<1x48x128xf32, #tpu.memory_space<vmem>>, vector<1x48x128xf32>
    %2 = vector.shape_cast %1 : vector<1x48x128xf32> to vector<48x128xf32>
    %cst = arith.constant dense<0.000000e+00> : vector<32x128xf32>
    %3 = tpu.matmul %0, %2, %cst {dimension_numbers = #tpu.dot_dimension_numbers<[1], [0], [0], [1], [0, 0, 1, 1], [], []>} : vector<32x48xf32>, vector<48x128xf32>, vector<32x128xf32> -> vector<32x128xf32>
    %c0_4 = arith.constant 0 : index
    %c0_5 = arith.constant 0 : index
    %4 = vector.load %arg15[%c0_4, %c0_5] : memref<32x1xf32, #tpu.memory_space<vmem>>, vector<32x1xf32>
    %5 = vector.broadcast %4 : vector<32x1xf32> to vector<32x128xf32>
    %6 = arith.addf %3, %5 : vector<32x128xf32>
    %c0_6 = arith.constant 0 : index
    %c0_7 = arith.constant 0 : index
    %7 = vector.load %arg13[%c0_6, %c0_7] : memref<32x1xf32, #tpu.memory_space<vmem>>, vector<32x1xf32>
    %8 = vector.broadcast %7 : vector<32x1xf32> to vector<32x128xf32>
    %9 = arith.addf %6, %8 : vector<32x128xf32>
    %10 = tpu.iota {dimensions = array<i32: 1>} : vector<1x128xi32>
    %11 = arith.index_cast %arg0 : i32 to index
    %12 = memref.load %arg2[%11] : memref<2xi32, #tpu.memory_space<smem>>
    %13 = vector.broadcast %12 : i32 to vector<1x128xi32>
    %14 = arith.cmpi sge, %10, %13 : vector<1x128xi32>
    %c0_8 = arith.constant 0 : index
    %c0_9 = arith.constant 0 : index
    %15 = vector.load %arg7[%c0_8, %c0_9] : memref<128x512xf32, #tpu.memory_space<vmem>>, vector<128x512xf32>
    %c0_10 = arith.constant 0 : index
    %c0_11 = arith.constant 0 : index
    %16 = vector.load %arg9[%c0_10, %c0_11] : memref<128x512xf32, #tpu.memory_space<vmem>>, vector<128x512xf32>
    %c0_12 = arith.constant 0 : index
    %c0_13 = arith.constant 0 : index
    %17 = vector.load %arg10[%c0_12, %c0_13] : memref<128x512xf32, #tpu.memory_space<vmem>>, vector<128x512xf32>
    %c0_14 = arith.constant 0 : index
    %c0_15 = arith.constant 0 : index
    %18 = vector.load %arg8[%c0_14, %c0_15] : memref<1x512xf32, #tpu.memory_space<vmem>>, vector<1x512xf32>
    %c0_16 = arith.constant 0 : index
    %c0_17 = arith.constant 0 : index
    %19 = vector.load %arg11[%c0_16, %c0_17] : memref<1x512xf32, #tpu.memory_space<vmem>>, vector<1x512xf32>
    %c0_18 = arith.constant 0 : index
    %c0_19 = arith.constant 0 : index
    %20 = vector.load %arg12[%c0_18, %c0_19] : memref<32x128xf32, #tpu.memory_space<vmem>>, vector<32x128xf32>
    %c0_20 = arith.constant 0 : index
    %c0_21 = arith.constant 0 : index
    %21 = vector.load %arg16[%c0_20, %c0_21] : memref<1x32xf32, #tpu.memory_space<vmem>>, vector<1x32xf32>
    %c0_22 = arith.constant 0 : index
    %c0_23 = arith.constant 0 : index
    %22 = vector.load %arg17[%c0_22, %c0_23] : memref<1x1xf32, #tpu.memory_space<vmem>>, vector<1x1xf32>
    %c0_24 = arith.constant 0 : index
    %c0_25 = arith.constant 0 : index
    %c0_26 = arith.constant 0 : index
    %23 = vector.load %arg4[%c0_24, %c0_25, %c0_26] : memref<1x2x128xf32, #tpu.memory_space<vmem>>, vector<1x1x128xf32>
    %24 = vector.shape_cast %23 : vector<1x1x128xf32> to vector<1x128xf32>
    %c0_27 = arith.constant 0 : index
    %c0_28 = arith.constant 0 : index
    %c0_29 = arith.constant 0 : index
    %25 = vector.load %arg5[%c0_27, %c0_28, %c0_29] : memref<1x2x128xf32, #tpu.memory_space<vmem>>, vector<1x1x128xf32>
    %26 = vector.shape_cast %25 : vector<1x1x128xf32> to vector<1x128xf32>
    %c0_30 = arith.constant 0 : index
    %c1 = arith.constant 1 : index
    %c0_31 = arith.constant 0 : index
    %27 = vector.load %arg4[%c0_30, %c1, %c0_31] : memref<1x2x128xf32, #tpu.memory_space<vmem>>, vector<1x1x128xf32>
    %28 = vector.shape_cast %27 : vector<1x1x128xf32> to vector<1x128xf32>
    %c0_32 = arith.constant 0 : index
    %c1_33 = arith.constant 1 : index
    %c0_34 = arith.constant 0 : index
    %29 = vector.load %arg5[%c0_32, %c1_33, %c0_34] : memref<1x2x128xf32, #tpu.memory_space<vmem>>, vector<1x1x128xf32>
    %30 = vector.shape_cast %29 : vector<1x1x128xf32> to vector<1x128xf32>
    %31 = arith.index_cast %arg0 : i32 to index
    %c0_35 = arith.constant 0 : index
    %32 = memref.load %arg1[%31, %c0_35] : memref<2x8xi32, #tpu.memory_space<smem>>
    %33 = arith.index_cast %32 : i32 to index
    %c0_36 = arith.constant 0 : index
    %c0_37 = arith.constant 0 : index
    %34 = vector.load %arg6[%33, %c0_36, %c0_37] : memref<41x1x512xf32, #tpu.memory_space<vmem>>, vector<1x1x512xf32>
    %35 = vector.shape_cast %34 : vector<1x1x512xf32> to vector<1x512xf32>
    %cst_38 = arith.constant dense<0.000000e+00> : vector<1x512xf32>
    %36 = tpu.matmul %24, %15, %cst_38 {dimension_numbers = #tpu.dot_dimension_numbers<[1], [0], [0], [1], [0, 0, 1, 1], [], []>} : vector<1x128xf32>, vector<128x512xf32>, vector<1x512xf32> -> vector<1x512xf32>
    %37 = arith.addf %35, %36 : vector<1x512xf32>
    %38 = arith.addf %37, %18 : vector<1x512xf32>
    %39 = vector.extract_strided_slice %38 {offsets = [0, 0], sizes = [1, 128], strides = [1, 1]} : vector<1x512xf32> to vector<1x128xf32>
    %40 = arith.negf %39 : vector<1x128xf32>
    %41 = math.exp %40 : vector<1x128xf32>
    %cst_39 = arith.constant 1.000000e+00 : f32
    %42 = vector.broadcast %cst_39 : f32 to vector<1x128xf32>
    %43 = arith.addf %42, %41 : vector<1x128xf32>
    %44 = arith.divf %42, %43 : vector<1x128xf32>
    %45 = vector.extract_strided_slice %38 {offsets = [0, 128], sizes = [1, 128], strides = [1, 1]} : vector<1x512xf32> to vector<1x128xf32>
    %46 = arith.negf %45 : vector<1x128xf32>
    %47 = math.exp %46 : vector<1x128xf32>
    %cst_40 = arith.constant 1.000000e+00 : f32
    %48 = vector.broadcast %cst_40 : f32 to vector<1x128xf32>
    %49 = arith.addf %48, %47 : vector<1x128xf32>
    %50 = arith.divf %48, %49 : vector<1x128xf32>
    %51 = vector.extract_strided_slice %38 {offsets = [0, 256], sizes = [1, 128], strides = [1, 1]} : vector<1x512xf32> to vector<1x128xf32>
    %52 = math.tanh %51 : vector<1x128xf32>
    %53 = vector.extract_strided_slice %38 {offsets = [0, 384], sizes = [1, 128], strides = [1, 1]} : vector<1x512xf32> to vector<1x128xf32>
    %54 = arith.negf %53 : vector<1x128xf32>
    %55 = math.exp %54 : vector<1x128xf32>
    %cst_41 = arith.constant 1.000000e+00 : f32
    %56 = vector.broadcast %cst_41 : f32 to vector<1x128xf32>
    %57 = arith.addf %56, %55 : vector<1x128xf32>
    %58 = arith.divf %56, %57 : vector<1x128xf32>
    %59 = arith.mulf %50, %26 : vector<1x128xf32>
    %60 = arith.mulf %44, %52 : vector<1x128xf32>
    %61 = arith.addf %59, %60 : vector<1x128xf32>
    %62 = math.tanh %61 : vector<1x128xf32>
    %63 = arith.mulf %58, %62 : vector<1x128xf32>
    %cst_42 = arith.constant dense<0.000000e+00> : vector<1x512xf32>
    %64 = tpu.matmul %63, %16, %cst_42 {dimension_numbers = #tpu.dot_dimension_numbers<[1], [0], [0], [1], [0, 0, 1, 1], [], []>} : vector<1x128xf32>, vector<128x512xf32>, vector<1x512xf32> -> vector<1x512xf32>
    %cst_43 = arith.constant dense<0.000000e+00> : vector<1x512xf32>
    %65 = tpu.matmul %28, %17, %cst_43 {dimension_numbers = #tpu.dot_dimension_numbers<[1], [0], [0], [1], [0, 0, 1, 1], [], []>} : vector<1x128xf32>, vector<128x512xf32>, vector<1x512xf32> -> vector<1x512xf32>
    %66 = arith.addf %64, %65 : vector<1x512xf32>
    %67 = arith.addf %66, %19 : vector<1x512xf32>
    %68 = vector.extract_strided_slice %67 {offsets = [0, 0], sizes = [1, 128], strides = [1, 1]} : vector<1x512xf32> to vector<1x128xf32>
    %69 = arith.negf %68 : vector<1x128xf32>
    %70 = math.exp %69 : vector<1x128xf32>
    %cst_44 = arith.constant 1.000000e+00 : f32
    %71 = vector.broadcast %cst_44 : f32 to vector<1x128xf32>
    %72 = arith.addf %71, %70 : vector<1x128xf32>
    %73 = arith.divf %71, %72 : vector<1x128xf32>
    %74 = vector.extract_strided_slice %67 {offsets = [0, 128], sizes = [1, 128], strides = [1, 1]} : vector<1x512xf32> to vector<1x128xf32>
    %75 = arith.negf %74 : vector<1x128xf32>
    %76 = math.exp %75 : vector<1x128xf32>
    %cst_45 = arith.constant 1.000000e+00 : f32
    %77 = vector.broadcast %cst_45 : f32 to vector<1x128xf32>
    %78 = arith.addf %77, %76 : vector<1x128xf32>
    %79 = arith.divf %77, %78 : vector<1x128xf32>
    %80 = vector.extract_strided_slice %67 {offsets = [0, 256], sizes = [1, 128], strides = [1, 1]} : vector<1x512xf32> to vector<1x128xf32>
    %81 = math.tanh %80 : vector<1x128xf32>
    %82 = vector.extract_strided_slice %67 {offsets = [0, 384], sizes = [1, 128], strides = [1, 1]} : vector<1x512xf32> to vector<1x128xf32>
    %83 = arith.negf %82 : vector<1x128xf32>
    %84 = math.exp %83 : vector<1x128xf32>
    %cst_46 = arith.constant 1.000000e+00 : f32
    %85 = vector.broadcast %cst_46 : f32 to vector<1x128xf32>
    %86 = arith.addf %85, %84 : vector<1x128xf32>
    %87 = arith.divf %85, %86 : vector<1x128xf32>
    %88 = arith.mulf %79, %30 : vector<1x128xf32>
    %89 = arith.mulf %73, %81 : vector<1x128xf32>
    %90 = arith.addf %88, %89 : vector<1x128xf32>
    %91 = math.tanh %90 : vector<1x128xf32>
    %92 = arith.mulf %87, %91 : vector<1x128xf32>
    %cst_47 = arith.constant dense<0.000000e+00> : vector<32x1xf32>
    %93 = tpu.matmul %20, %92, %cst_47 {dimension_numbers = #tpu.dot_dimension_numbers<[1], [1], [0], [0], [0, 0, 1, 0], [], []>} : vector<32x128xf32>, vector<1x128xf32>, vector<32x1xf32> -> vector<32x1xf32>
    %94 = vector.broadcast %93 : vector<32x1xf32> to vector<32x128xf32>
    %95 = arith.addf %9, %94 : vector<32x128xf32>
    %96 = math.tanh %95 : vector<32x128xf32>
    %cst_48 = arith.constant dense<0.000000e+00> : vector<1x128xf32>
    %97 = tpu.matmul %21, %96, %cst_48 {dimension_numbers = #tpu.dot_dimension_numbers<[1], [0], [0], [1], [0, 0, 1, 1], [], []>} : vector<1x32xf32>, vector<32x128xf32>, vector<1x128xf32> -> vector<1x128xf32>
    %98 = vector.broadcast %22 : vector<1x1xf32> to vector<1x128xf32>
    %99 = arith.addf %97, %98 : vector<1x128xf32>
    %cst_49 = arith.constant -1.000000e+10 : f32
    %100 = vector.broadcast %cst_49 : f32 to vector<1x128xf32>
    %101 = arith.select %14, %100, %99 : vector<1x128xi1>, vector<1x128xf32>
    %c0_50 = arith.constant 0 : index
    %c0_51 = arith.constant 0 : index
    %c0_52 = arith.constant 0 : index
    %102 = vector.load %arg18[%c0_50, %c0_51, %c0_52] : memref<1x8x128xf32, #tpu.memory_space<vmem>>, vector<1x1x128xf32>
    %103 = vector.shape_cast %102 : vector<1x1x128xf32> to vector<1x128xf32>
    %104 = vector.shape_cast %101 : vector<1x128xf32> to vector<1x1x128xf32>
    tpu.vector_store %arg18[%c0_50, %c0_51, %c0_52], %104 {strides = array<i32>} : memref<1x8x128xf32, #tpu.memory_space<vmem>>, vector<1x1x128xf32>,
    %105 = arith.index_cast %arg0 : i32 to index
    %c1_53 = arith.constant 1 : index
    %106 = memref.load %arg1[%105, %c1_53] : memref<2x8xi32, #tpu.memory_space<smem>>
    %107 = arith.index_cast %106 : i32 to index
    %c0_54 = arith.constant 0 : index
    %c0_55 = arith.constant 0 : index
    %108 = vector.load %arg6[%107, %c0_54, %c0_55] : memref<41x1x512xf32, #tpu.memory_space<vmem>>, vector<1x1x512xf32>
    %109 = vector.shape_cast %108 : vector<1x1x512xf32> to vector<1x512xf32>
    %cst_56 = arith.constant dense<0.000000e+00> : vector<1x512xf32>
    %110 = tpu.matmul %63, %15, %cst_56 {dimension_numbers = #tpu.dot_dimension_numbers<[1], [0], [0], [1], [0, 0, 1, 1], [], []>} : vector<1x128xf32>, vector<128x512xf32>, vector<1x512xf32> -> vector<1x512xf32>
    %111 = arith.addf %109, %110 : vector<1x512xf32>
    %112 = arith.addf %111, %18 : vector<1x512xf32>
    %113 = vector.extract_strided_slice %112 {offsets = [0, 0], sizes = [1, 128], strides = [1, 1]} : vector<1x512xf32> to vector<1x128xf32>
    %114 = arith.negf %113 : vector<1x128xf32>
    %115 = math.exp %114 : vector<1x128xf32>
    %cst_57 = arith.constant 1.000000e+00 : f32
    %116 = vector.broadcast %cst_57 : f32 to vector<1x128xf32>
    %117 = arith.addf %116, %115 : vector<1x128xf32>
    %118 = arith.divf %116, %117 : vector<1x128xf32>
    %119 = vector.extract_strided_slice %112 {offsets = [0, 128], sizes = [1, 128], strides = [1, 1]} : vector<1x512xf32> to vector<1x128xf32>
    %120 = arith.negf %119 : vector<1x128xf32>
    %121 = math.exp %120 : vector<1x128xf32>
    %cst_58 = arith.constant 1.000000e+00 : f32
    %122 = vector.broadcast %cst_58 : f32 to vector<1x128xf32>
    %123 = arith.addf %122, %121 : vector<1x128xf32>
    %124 = arith.divf %122, %123 : vector<1x128xf32>
    %125 = vector.extract_strided_slice %112 {offsets = [0, 256], sizes = [1, 128], strides = [1, 1]} : vector<1x512xf32> to vector<1x128xf32>
    %126 = math.tanh %125 : vector<1x128xf32>
    %127 = vector.extract_strided_slice %112 {offsets = [0, 384], sizes = [1, 128], strides = [1, 1]} : vector<1x512xf32> to vector<1x128xf32>
    %128 = arith.negf %127 : vector<1x128xf32>
    %129 = math.exp %128 : vector<1x128xf32>
    %cst_59 = arith.constant 1.000000e+00 : f32
    %130 = vector.broadcast %cst_59 : f32 to vector<1x128xf32>
    %131 = arith.addf %130, %129 : vector<1x128xf32>
    %132 = arith.divf %130, %131 : vector<1x128xf32>
    %133 = arith.mulf %124, %61 : vector<1x128xf32>
    %134 = arith.mulf %118, %126 : vector<1x128xf32>
    %135 = arith.addf %133, %134 : vector<1x128xf32>
    %136 = math.tanh %135 : vector<1x128xf32>
    %137 = arith.mulf %132, %136 : vector<1x128xf32>
    %cst_60 = arith.constant dense<0.000000e+00> : vector<1x512xf32>
    %138 = tpu.matmul %137, %16, %cst_60 {dimension_numbers = #tpu.dot_dimension_numbers<[1], [0], [0], [1], [0, 0, 1, 1], [], []>} : vector<1x128xf32>, vector<128x512xf32>, vector<1x512xf32> -> vector<1x512xf32>
    %cst_61 = arith.constant dense<0.000000e+00> : vector<1x512xf32>
    %139 = tpu.matmul %92, %17, %cst_61 {dimension_numbers = #tpu.dot_dimension_numbers<[1], [0], [0], [1], [0, 0, 1, 1], [], []>} : vector<1x128xf32>, vector<128x512xf32>, vector<1x512xf32> -> vector<1x512xf32>
    %140 = arith.addf %138, %139 : vector<1x512xf32>
    %141 = arith.addf %140, %19 : vector<1x512xf32>
    %142 = vector.extract_strided_slice %141 {offsets = [0, 0], sizes = [1, 128], strides = [1, 1]} : vector<1x512xf32> to vector<1x128xf32>
    %143 = arith.negf %142 : vector<1x128xf32>
    %144 = math.exp %143 : vector<1x128xf32>
    %cst_62 = arith.constant 1.000000e+00 : f32
    %145 = vector.broadcast %cst_62 : f32 to vector<1x128xf32>
    %146 = arith.addf %145, %144 : vector<1x128xf32>
    %147 = arith.divf %145, %146 : vector<1x128xf32>
    %148 = vector.extract_strided_slice %141 {offsets = [0, 128], sizes = [1, 128], strides = [1, 1]} : vector<1x512xf32> to vector<1x128xf32>
    %149 = arith.negf %148 : vector<1x128xf32>
    %150 = math.exp %149 : vector<1x128xf32>
    %cst_63 = arith.constant 1.000000e+00 : f32
    %151 = vector.broadcast %cst_63 : f32 to vector<1x128xf32>
    %152 = arith.addf %151, %150 : vector<1x128xf32>
    %153 = arith.divf %151, %152 : vector<1x128xf32>
    %154 = vector.extract_strided_slice %141 {offsets = [0, 256], sizes = [1, 128], strides = [1, 1]} : vector<1x512xf32> to vector<1x128xf32>
    %155 = math.tanh %154 : vector<1x128xf32>
    %156 = vector.extract_strided_slice %141 {offsets = [0, 384], sizes = [1, 128], strides = [1, 1]} : vector<1x512xf32> to vector<1x128xf32>
    %157 = arith.negf %156 : vector<1x128xf32>
    %158 = math.exp %157 : vector<1x128xf32>
    %cst_64 = arith.constant 1.000000e+00 : f32
    %159 = vector.broadcast %cst_64 : f32 to vector<1x128xf32>
    %160 = arith.addf %159, %158 : vector<1x128xf32>
    %161 = arith.divf %159, %160 : vector<1x128xf32>
    %162 = arith.mulf %153, %90 : vector<1x128xf32>
    %163 = arith.mulf %147, %155 : vector<1x128xf32>
    %164 = arith.addf %162, %163 : vector<1x128xf32>
    %165 = math.tanh %164 : vector<1x128xf32>
    %166 = arith.mulf %161, %165 : vector<1x128xf32>
    %cst_65 = arith.constant dense<0.000000e+00> : vector<32x1xf32>
    %167 = tpu.matmul %20, %166, %cst_65 {dimension_numbers = #tpu.dot_dimension_numbers<[1], [1], [0], [0], [0, 0, 1, 0], [], []>} : vector<32x128xf32>, vector<1x128xf32>, vector<32x1xf32> -> vector<32x1xf32>
    %168 = vector.broadcast %167 : vector<32x1xf32> to vector<32x128xf32>
    %169 = arith.addf %9, %168 : vector<32x128xf32>
    %170 = math.tanh %169 : vector<32x128xf32>
    %cst_66 = arith.constant dense<0.000000e+00> : vector<1x128xf32>
    %171 = tpu.matmul %21, %170, %cst_66 {dimension_numbers = #tpu.dot_dimension_numbers<[1], [0], [0], [1], [0, 0, 1, 1], [], []>} : vector<1x32xf32>, vector<32x128xf32>, vector<1x128xf32> -> vector<1x128xf32>
    %172 = vector.broadcast %22 : vector<1x1xf32> to vector<1x128xf32>
    %173 = arith.addf %171, %172 : vector<1x128xf32>
    %cst_67 = arith.constant -1.000000e+10 : f32
    %174 = vector.broadcast %cst_67 : f32 to vector<1x128xf32>
    %175 = arith.select %14, %174, %173 : vector<1x128xi1>, vector<1x128xf32>
    %c0_68 = arith.constant 0 : index
    %c1_69 = arith.constant 1 : index
    %c0_70 = arith.constant 0 : index
    %176 = vector.load %arg18[%c0_68, %c1_69, %c0_70] : memref<1x8x128xf32, #tpu.memory_space<vmem>>, vector<1x1x128xf32>
    %177 = vector.shape_cast %176 : vector<1x1x128xf32> to vector<1x128xf32>
    %178 = vector.shape_cast %175 : vector<1x128xf32> to vector<1x1x128xf32>
    tpu.vector_store %arg18[%c0_68, %c1_69, %c0_70], %178 {strides = array<i32>} : memref<1x8x128xf32, #tpu.memory_space<vmem>>, vector<1x1x128xf32>,
    %179 = arith.index_cast %arg0 : i32 to index
    %c2 = arith.constant 2 : index
    %180 = memref.load %arg1[%179, %c2] : memref<2x8xi32, #tpu.memory_space<smem>>
    %181 = arith.index_cast %180 : i32 to index
    %c0_71 = arith.constant 0 : index
    %c0_72 = arith.constant 0 : index
    %182 = vector.load %arg6[%181, %c0_71, %c0_72] : memref<41x1x512xf32, #tpu.memory_space<vmem>>, vector<1x1x512xf32>
    %183 = vector.shape_cast %182 : vector<1x1x512xf32> to vector<1x512xf32>
    %cst_73 = arith.constant dense<0.000000e+00> : vector<1x512xf32>
    %184 = tpu.matmul %137, %15, %cst_73 {dimension_numbers = #tpu.dot_dimension_numbers<[1], [0], [0], [1], [0, 0, 1, 1], [], []>} : vector<1x128xf32>, vector<128x512xf32>, vector<1x512xf32> -> vector<1x512xf32>
    %185 = arith.addf %183, %184 : vector<1x512xf32>
    %186 = arith.addf %185, %18 : vector<1x512xf32>
    %187 = vector.extract_strided_slice %186 {offsets = [0, 0], sizes = [1, 128], strides = [1, 1]} : vector<1x512xf32> to vector<1x128xf32>
    %188 = arith.negf %187 : vector<1x128xf32>
    %189 = math.exp %188 : vector<1x128xf32>
    %cst_74 = arith.constant 1.000000e+00 : f32
    %190 = vector.broadcast %cst_74 : f32 to vector<1x128xf32>
    %191 = arith.addf %190, %189 : vector<1x128xf32>
    %192 = arith.divf %190, %191 : vector<1x128xf32>
    %193 = vector.extract_strided_slice %186 {offsets = [0, 128], sizes = [1, 128], strides = [1, 1]} : vector<1x512xf32> to vector<1x128xf32>
    %194 = arith.negf %193 : vector<1x128xf32>
    %195 = math.exp %194 : vector<1x128xf32>
    %cst_75 = arith.constant 1.000000e+00 : f32
    %196 = vector.broadcast %cst_75 : f32 to vector<1x128xf32>
    %197 = arith.addf %196, %195 : vector<1x128xf32>
    %198 = arith.divf %196, %197 : vector<1x128xf32>
    %199 = vector.extract_strided_slice %186 {offsets = [0, 256], sizes = [1, 128], strides = [1, 1]} : vector<1x512xf32> to vector<1x128xf32>
    %200 = math.tanh %199 : vector<1x128xf32>
    %201 = vector.extract_strided_slice %186 {offsets = [0, 384], sizes = [1, 128], strides = [1, 1]} : vector<1x512xf32> to vector<1x128xf32>
    %202 = arith.negf %201 : vector<1x128xf32>
    %203 = math.exp %202 : vector<1x128xf32>
    %cst_76 = arith.constant 1.000000e+00 : f32
    %204 = vector.broadcast %cst_76 : f32 to vector<1x128xf32>
    %205 = arith.addf %204, %203 : vector<1x128xf32>
    %206 = arith.divf %204, %205 : vector<1x128xf32>
    %207 = arith.mulf %198, %135 : vector<1x128xf32>
    %208 = arith.mulf %192, %200 : vector<1x128xf32>
    %209 = arith.addf %207, %208 : vector<1x128xf32>
    %210 = math.tanh %209 : vector<1x128xf32>
    %211 = arith.mulf %206, %210 : vector<1x128xf32>
    %cst_77 = arith.constant dense<0.000000e+00> : vector<1x512xf32>
    %212 = tpu.matmul %211, %16, %cst_77 {dimension_numbers = #tpu.dot_dimension_numbers<[1], [0], [0], [1], [0, 0, 1, 1], [], []>} : vector<1x128xf32>, vector<128x512xf32>, vector<1x512xf32> -> vector<1x512xf32>
    %cst_78 = arith.constant dense<0.000000e+00> : vector<1x512xf32>
    %213 = tpu.matmul %166, %17, %cst_78 {dimension_numbers = #tpu.dot_dimension_numbers<[1], [0], [0], [1], [0, 0, 1, 1], [], []>} : vector<1x128xf32>, vector<128x512xf32>, vector<1x512xf32> -> vector<1x512xf32>
    %214 = arith.addf %212, %213 : vector<1x512xf32>
    %215 = arith.addf %214, %19 : vector<1x512xf32>
    %216 = vector.extract_strided_slice %215 {offsets = [0, 0], sizes = [1, 128], strides = [1, 1]} : vector<1x512xf32> to vector<1x128xf32>
    %217 = arith.negf %216 : vector<1x128xf32>
    %218 = math.exp %217 : vector<1x128xf32>
    %cst_79 = arith.constant 1.000000e+00 : f32
    %219 = vector.broadcast %cst_79 : f32 to vector<1x128xf32>
    %220 = arith.addf %219, %218 : vector<1x128xf32>
    %221 = arith.divf %219, %220 : vector<1x128xf32>
    %222 = vector.extract_strided_slice %215 {offsets = [0, 128], sizes = [1, 128], strides = [1, 1]} : vector<1x512xf32> to vector<1x128xf32>
    %223 = arith.negf %222 : vector<1x128xf32>
    %224 = math.exp %223 : vector<1x128xf32>
    %cst_80 = arith.constant 1.000000e+00 : f32
    %225 = vector.broadcast %cst_80 : f32 to vector<1x128xf32>
    %226 = arith.addf %225, %224 : vector<1x128xf32>
    %227 = arith.divf %225, %226 : vector<1x128xf32>
    %228 = vector.extract_strided_slice %215 {offsets = [0, 256], sizes = [1, 128], strides = [1, 1]} : vector<1x512xf32> to vector<1x128xf32>
    %229 = math.tanh %228 : vector<1x128xf32>
    %230 = vector.extract_strided_slice %215 {offsets = [0, 384], sizes = [1, 128], strides = [1, 1]} : vector<1x512xf32> to vector<1x128xf32>
    %231 = arith.negf %230 : vector<1x128xf32>
    %232 = math.exp %231 : vector<1x128xf32>
    %cst_81 = arith.constant 1.000000e+00 : f32
    %233 = vector.broadcast %cst_81 : f32 to vector<1x128xf32>
    %234 = arith.addf %233, %232 : vector<1x128xf32>
    %235 = arith.divf %233, %234 : vector<1x128xf32>
    %236 = arith.mulf %227, %164 : vector<1x128xf32>
    %237 = arith.mulf %221, %229 : vector<1x128xf32>
    %238 = arith.addf %236, %237 : vector<1x128xf32>
    %239 = math.tanh %238 : vector<1x128xf32>
    %240 = arith.mulf %235, %239 : vector<1x128xf32>
    %cst_82 = arith.constant dense<0.000000e+00> : vector<32x1xf32>
    %241 = tpu.matmul %20, %240, %cst_82 {dimension_numbers = #tpu.dot_dimension_numbers<[1], [1], [0], [0], [0, 0, 1, 0], [], []>} : vector<32x128xf32>, vector<1x128xf32>, vector<32x1xf32> -> vector<32x1xf32>
    %242 = vector.broadcast %241 : vector<32x1xf32> to vector<32x128xf32>
    %243 = arith.addf %9, %242 : vector<32x128xf32>
    %244 = math.tanh %243 : vector<32x128xf32>
    %cst_83 = arith.constant dense<0.000000e+00> : vector<1x128xf32>
    %245 = tpu.matmul %21, %244, %cst_83 {dimension_numbers = #tpu.dot_dimension_numbers<[1], [0], [0], [1], [0, 0, 1, 1], [], []>} : vector<1x32xf32>, vector<32x128xf32>, vector<1x128xf32> -> vector<1x128xf32>
    %246 = vector.broadcast %22 : vector<1x1xf32> to vector<1x128xf32>
    %247 = arith.addf %245, %246 : vector<1x128xf32>
    %cst_84 = arith.constant -1.000000e+10 : f32
    %248 = vector.broadcast %cst_84 : f32 to vector<1x128xf32>
    %249 = arith.select %14, %248, %247 : vector<1x128xi1>, vector<1x128xf32>
    %c0_85 = arith.constant 0 : index
    %c2_86 = arith.constant 2 : index
    %c0_87 = arith.constant 0 : index
    %250 = vector.load %arg18[%c0_85, %c2_86, %c0_87] : memref<1x8x128xf32, #tpu.memory_space<vmem>>, vector<1x1x128xf32>
    %251 = vector.shape_cast %250 : vector<1x1x128xf32> to vector<1x128xf32>
    %252 = vector.shape_cast %249 : vector<1x128xf32> to vector<1x1x128xf32>
    tpu.vector_store %arg18[%c0_85, %c2_86, %c0_87], %252 {strides = array<i32>} : memref<1x8x128xf32, #tpu.memory_space<vmem>>, vector<1x1x128xf32>,
    %253 = arith.index_cast %arg0 : i32 to index
    %c3 = arith.constant 3 : index
    %254 = memref.load %arg1[%253, %c3] : memref<2x8xi32, #tpu.memory_space<smem>>
    %255 = arith.index_cast %254 : i32 to index
    %c0_88 = arith.constant 0 : index
    %c0_89 = arith.constant 0 : index
    %256 = vector.load %arg6[%255, %c0_88, %c0_89] : memref<41x1x512xf32, #tpu.memory_space<vmem>>, vector<1x1x512xf32>
    %257 = vector.shape_cast %256 : vector<1x1x512xf32> to vector<1x512xf32>
    %cst_90 = arith.constant dense<0.000000e+00> : vector<1x512xf32>
    %258 = tpu.matmul %211, %15, %cst_90 {dimension_numbers = #tpu.dot_dimension_numbers<[1], [0], [0], [1], [0, 0, 1, 1], [], []>} : vector<1x128xf32>, vector<128x512xf32>, vector<1x512xf32> -> vector<1x512xf32>
    %259 = arith.addf %257, %258 : vector<1x512xf32>
    %260 = arith.addf %259, %18 : vector<1x512xf32>
    %261 = vector.extract_strided_slice %260 {offsets = [0, 0], sizes = [1, 128], strides = [1, 1]} : vector<1x512xf32> to vector<1x128xf32>
    %262 = arith.negf %261 : vector<1x128xf32>
    %263 = math.exp %262 : vector<1x128xf32>
    %cst_91 = arith.constant 1.000000e+00 : f32
    %264 = vector.broadcast %cst_91 : f32 to vector<1x128xf32>
    %265 = arith.addf %264, %263 : vector<1x128xf32>
    %266 = arith.divf %264, %265 : vector<1x128xf32>
    %267 = vector.extract_strided_slice %260 {offsets = [0, 128], sizes = [1, 128], strides = [1, 1]} : vector<1x512xf32> to vector<1x128xf32>
    %268 = arith.negf %267 : vector<1x128xf32>
    %269 = math.exp %268 : vector<1x128xf32>
    %cst_92 = arith.constant 1.000000e+00 : f32
    %270 = vector.broadcast %cst_92 : f32 to vector<1x128xf32>
    %271 = arith.addf %270, %269 : vector<1x128xf32>
    %272 = arith.divf %270, %271 : vector<1x128xf32>
    %273 = vector.extract_strided_slice %260 {offsets = [0, 256], sizes = [1, 128], strides = [1, 1]} : vector<1x512xf32> to vector<1x128xf32>
    %274 = math.tanh %273 : vector<1x128xf32>
    %275 = vector.extract_strided_slice %260 {offsets = [0, 384], sizes = [1, 128], strides = [1, 1]} : vector<1x512xf32> to vector<1x128xf32>
    %276 = arith.negf %275 : vector<1x128xf32>
    %277 = math.exp %276 : vector<1x128xf32>
    %cst_93 = arith.constant 1.000000e+00 : f32
    %278 = vector.broadcast %cst_93 : f32 to vector<1x128xf32>
    %279 = arith.addf %278, %277 : vector<1x128xf32>
    %280 = arith.divf %278, %279 : vector<1x128xf32>
    %281 = arith.mulf %272, %209 : vector<1x128xf32>
    %282 = arith.mulf %266, %274 : vector<1x128xf32>
    %283 = arith.addf %281, %282 : vector<1x128xf32>
    %284 = math.tanh %283 : vector<1x128xf32>
    %285 = arith.mulf %280, %284 : vector<1x128xf32>
    %cst_94 = arith.constant dense<0.000000e+00> : vector<1x512xf32>
    %286 = tpu.matmul %285, %16, %cst_94 {dimension_numbers = #tpu.dot_dimension_numbers<[1], [0], [0], [1], [0, 0, 1, 1], [], []>} : vector<1x128xf32>, vector<128x512xf32>, vector<1x512xf32> -> vector<1x512xf32>
    %cst_95 = arith.constant dense<0.000000e+00> : vector<1x512xf32>
    %287 = tpu.matmul %240, %17, %cst_95 {dimension_numbers = #tpu.dot_dimension_numbers<[1], [0], [0], [1], [0, 0, 1, 1], [], []>} : vector<1x128xf32>, vector<128x512xf32>, vector<1x512xf32> -> vector<1x512xf32>
    %288 = arith.addf %286, %287 : vector<1x512xf32>
    %289 = arith.addf %288, %19 : vector<1x512xf32>
    %290 = vector.extract_strided_slice %289 {offsets = [0, 0], sizes = [1, 128], strides = [1, 1]} : vector<1x512xf32> to vector<1x128xf32>
    %291 = arith.negf %290 : vector<1x128xf32>
    %292 = math.exp %291 : vector<1x128xf32>
    %cst_96 = arith.constant 1.000000e+00 : f32
    %293 = vector.broadcast %cst_96 : f32 to vector<1x128xf32>
    %294 = arith.addf %293, %292 : vector<1x128xf32>
    %295 = arith.divf %293, %294 : vector<1x128xf32>
    %296 = vector.extract_strided_slice %289 {offsets = [0, 128], sizes = [1, 128], strides = [1, 1]} : vector<1x512xf32> to vector<1x128xf32>
    %297 = arith.negf %296 : vector<1x128xf32>
    %298 = math.exp %297 : vector<1x128xf32>
    %cst_97 = arith.constant 1.000000e+00 : f32
    %299 = vector.broadcast %cst_97 : f32 to vector<1x128xf32>
    %300 = arith.addf %299, %298 : vector<1x128xf32>
    %301 = arith.divf %299, %300 : vector<1x128xf32>
    %302 = vector.extract_strided_slice %289 {offsets = [0, 256], sizes = [1, 128], strides = [1, 1]} : vector<1x512xf32> to vector<1x128xf32>
    %303 = math.tanh %302 : vector<1x128xf32>
    %304 = vector.extract_strided_slice %289 {offsets = [0, 384], sizes = [1, 128], strides = [1, 1]} : vector<1x512xf32> to vector<1x128xf32>
    %305 = arith.negf %304 : vector<1x128xf32>
    %306 = math.exp %305 : vector<1x128xf32>
    %cst_98 = arith.constant 1.000000e+00 : f32
    %307 = vector.broadcast %cst_98 : f32 to vector<1x128xf32>
    %308 = arith.addf %307, %306 : vector<1x128xf32>
    %309 = arith.divf %307, %308 : vector<1x128xf32>
    %310 = arith.mulf %301, %238 : vector<1x128xf32>
    %311 = arith.mulf %295, %303 : vector<1x128xf32>
    %312 = arith.addf %310, %311 : vector<1x128xf32>
    %313 = math.tanh %312 : vector<1x128xf32>
    %314 = arith.mulf %309, %313 : vector<1x128xf32>
    %cst_99 = arith.constant dense<0.000000e+00> : vector<32x1xf32>
    %315 = tpu.matmul %20, %314, %cst_99 {dimension_numbers = #tpu.dot_dimension_numbers<[1], [1], [0], [0], [0, 0, 1, 0], [], []>} : vector<32x128xf32>, vector<1x128xf32>, vector<32x1xf32> -> vector<32x1xf32>
    %316 = vector.broadcast %315 : vector<32x1xf32> to vector<32x128xf32>
    %317 = arith.addf %9, %316 : vector<32x128xf32>
    %318 = math.tanh %317 : vector<32x128xf32>
    %cst_100 = arith.constant dense<0.000000e+00> : vector<1x128xf32>
    %319 = tpu.matmul %21, %318, %cst_100 {dimension_numbers = #tpu.dot_dimension_numbers<[1], [0], [0], [1], [0, 0, 1, 1], [], []>} : vector<1x32xf32>, vector<32x128xf32>, vector<1x128xf32> -> vector<1x128xf32>
    %320 = vector.broadcast %22 : vector<1x1xf32> to vector<1x128xf32>
    %321 = arith.addf %319, %320 : vector<1x128xf32>
    %cst_101 = arith.constant -1.000000e+10 : f32
    %322 = vector.broadcast %cst_101 : f32 to vector<1x128xf32>
    %323 = arith.select %14, %322, %321 : vector<1x128xi1>, vector<1x128xf32>
    %c0_102 = arith.constant 0 : index
    %c3_103 = arith.constant 3 : index
    %c0_104 = arith.constant 0 : index
    %324 = vector.load %arg18[%c0_102, %c3_103, %c0_104] : memref<1x8x128xf32, #tpu.memory_space<vmem>>, vector<1x1x128xf32>
    %325 = vector.shape_cast %324 : vector<1x1x128xf32> to vector<1x128xf32>
    %326 = vector.shape_cast %323 : vector<1x128xf32> to vector<1x1x128xf32>
    tpu.vector_store %arg18[%c0_102, %c3_103, %c0_104], %326 {strides = array<i32>} : memref<1x8x128xf32, #tpu.memory_space<vmem>>, vector<1x1x128xf32>,
    %327 = arith.index_cast %arg0 : i32 to index
    %c4 = arith.constant 4 : index
    %328 = memref.load %arg1[%327, %c4] : memref<2x8xi32, #tpu.memory_space<smem>>
    %329 = arith.index_cast %328 : i32 to index
    %c0_105 = arith.constant 0 : index
    %c0_106 = arith.constant 0 : index
    %330 = vector.load %arg6[%329, %c0_105, %c0_106] : memref<41x1x512xf32, #tpu.memory_space<vmem>>, vector<1x1x512xf32>
    %331 = vector.shape_cast %330 : vector<1x1x512xf32> to vector<1x512xf32>
    %cst_107 = arith.constant dense<0.000000e+00> : vector<1x512xf32>
    %332 = tpu.matmul %285, %15, %cst_107 {dimension_numbers = #tpu.dot_dimension_numbers<[1], [0], [0], [1], [0, 0, 1, 1], [], []>} : vector<1x128xf32>, vector<128x512xf32>, vector<1x512xf32> -> vector<1x512xf32>
    %333 = arith.addf %331, %332 : vector<1x512xf32>
    %334 = arith.addf %333, %18 : vector<1x512xf32>
    %335 = vector.extract_strided_slice %334 {offsets = [0, 0], sizes = [1, 128], strides = [1, 1]} : vector<1x512xf32> to vector<1x128xf32>
    %336 = arith.negf %335 : vector<1x128xf32>
    %337 = math.exp %336 : vector<1x128xf32>
    %cst_108 = arith.constant 1.000000e+00 : f32
    %338 = vector.broadcast %cst_108 : f32 to vector<1x128xf32>
    %339 = arith.addf %338, %337 : vector<1x128xf32>
    %340 = arith.divf %338, %339 : vector<1x128xf32>
    %341 = vector.extract_strided_slice %334 {offsets = [0, 128], sizes = [1, 128], strides = [1, 1]} : vector<1x512xf32> to vector<1x128xf32>
    %342 = arith.negf %341 : vector<1x128xf32>
    %343 = math.exp %342 : vector<1x128xf32>
    %cst_109 = arith.constant 1.000000e+00 : f32
    %344 = vector.broadcast %cst_109 : f32 to vector<1x128xf32>
    %345 = arith.addf %344, %343 : vector<1x128xf32>
    %346 = arith.divf %344, %345 : vector<1x128xf32>
    %347 = vector.extract_strided_slice %334 {offsets = [0, 256], sizes = [1, 128], strides = [1, 1]} : vector<1x512xf32> to vector<1x128xf32>
    %348 = math.tanh %347 : vector<1x128xf32>
    %349 = vector.extract_strided_slice %334 {offsets = [0, 384], sizes = [1, 128], strides = [1, 1]} : vector<1x512xf32> to vector<1x128xf32>
    %350 = arith.negf %349 : vector<1x128xf32>
    %351 = math.exp %350 : vector<1x128xf32>
    %cst_110 = arith.constant 1.000000e+00 : f32
    %352 = vector.broadcast %cst_110 : f32 to vector<1x128xf32>
    %353 = arith.addf %352, %351 : vector<1x128xf32>
    %354 = arith.divf %352, %353 : vector<1x128xf32>
    %355 = arith.mulf %346, %283 : vector<1x128xf32>
    %356 = arith.mulf %340, %348 : vector<1x128xf32>
    %357 = arith.addf %355, %356 : vector<1x128xf32>
    %358 = math.tanh %357 : vector<1x128xf32>
    %359 = arith.mulf %354, %358 : vector<1x128xf32>
    %cst_111 = arith.constant dense<0.000000e+00> : vector<1x512xf32>
    %360 = tpu.matmul %359, %16, %cst_111 {dimension_numbers = #tpu.dot_dimension_numbers<[1], [0], [0], [1], [0, 0, 1, 1], [], []>} : vector<1x128xf32>, vector<128x512xf32>, vector<1x512xf32> -> vector<1x512xf32>
    %cst_112 = arith.constant dense<0.000000e+00> : vector<1x512xf32>
    %361 = tpu.matmul %314, %17, %cst_112 {dimension_numbers = #tpu.dot_dimension_numbers<[1], [0], [0], [1], [0, 0, 1, 1], [], []>} : vector<1x128xf32>, vector<128x512xf32>, vector<1x512xf32> -> vector<1x512xf32>
    %362 = arith.addf %360, %361 : vector<1x512xf32>
    %363 = arith.addf %362, %19 : vector<1x512xf32>
    %364 = vector.extract_strided_slice %363 {offsets = [0, 0], sizes = [1, 128], strides = [1, 1]} : vector<1x512xf32> to vector<1x128xf32>
    %365 = arith.negf %364 : vector<1x128xf32>
    %366 = math.exp %365 : vector<1x128xf32>
    %cst_113 = arith.constant 1.000000e+00 : f32
    %367 = vector.broadcast %cst_113 : f32 to vector<1x128xf32>
    %368 = arith.addf %367, %366 : vector<1x128xf32>
    %369 = arith.divf %367, %368 : vector<1x128xf32>
    %370 = vector.extract_strided_slice %363 {offsets = [0, 128], sizes = [1, 128], strides = [1, 1]} : vector<1x512xf32> to vector<1x128xf32>
    %371 = arith.negf %370 : vector<1x128xf32>
    %372 = math.exp %371 : vector<1x128xf32>
    %cst_114 = arith.constant 1.000000e+00 : f32
    %373 = vector.broadcast %cst_114 : f32 to vector<1x128xf32>
    %374 = arith.addf %373, %372 : vector<1x128xf32>
    %375 = arith.divf %373, %374 : vector<1x128xf32>
    %376 = vector.extract_strided_slice %363 {offsets = [0, 256], sizes = [1, 128], strides = [1, 1]} : vector<1x512xf32> to vector<1x128xf32>
    %377 = math.tanh %376 : vector<1x128xf32>
    %378 = vector.extract_strided_slice %363 {offsets = [0, 384], sizes = [1, 128], strides = [1, 1]} : vector<1x512xf32> to vector<1x128xf32>
    %379 = arith.negf %378 : vector<1x128xf32>
    %380 = math.exp %379 : vector<1x128xf32>
    %cst_115 = arith.constant 1.000000e+00 : f32
    %381 = vector.broadcast %cst_115 : f32 to vector<1x128xf32>
    %382 = arith.addf %381, %380 : vector<1x128xf32>
    %383 = arith.divf %381, %382 : vector<1x128xf32>
    %384 = arith.mulf %375, %312 : vector<1x128xf32>
    %385 = arith.mulf %369, %377 : vector<1x128xf32>
    %386 = arith.addf %384, %385 : vector<1x128xf32>
    %387 = math.tanh %386 : vector<1x128xf32>
    %388 = arith.mulf %383, %387 : vector<1x128xf32>
    %cst_116 = arith.constant dense<0.000000e+00> : vector<32x1xf32>
    %389 = tpu.matmul %20, %388, %cst_116 {dimension_numbers = #tpu.dot_dimension_numbers<[1], [1], [0], [0], [0, 0, 1, 0], [], []>} : vector<32x128xf32>, vector<1x128xf32>, vector<32x1xf32> -> vector<32x1xf32>
    %390 = vector.broadcast %389 : vector<32x1xf32> to vector<32x128xf32>
    %391 = arith.addf %9, %390 : vector<32x128xf32>
    %392 = math.tanh %391 : vector<32x128xf32>
    %cst_117 = arith.constant dense<0.000000e+00> : vector<1x128xf32>
    %393 = tpu.matmul %21, %392, %cst_117 {dimension_numbers = #tpu.dot_dimension_numbers<[1], [0], [0], [1], [0, 0, 1, 1], [], []>} : vector<1x32xf32>, vector<32x128xf32>, vector<1x128xf32> -> vector<1x128xf32>
    %394 = vector.broadcast %22 : vector<1x1xf32> to vector<1x128xf32>
    %395 = arith.addf %393, %394 : vector<1x128xf32>
    %cst_118 = arith.constant -1.000000e+10 : f32
    %396 = vector.broadcast %cst_118 : f32 to vector<1x128xf32>
    %397 = arith.select %14, %396, %395 : vector<1x128xi1>, vector<1x128xf32>
    %c0_119 = arith.constant 0 : index
    %c4_120 = arith.constant 4 : index
    %c0_121 = arith.constant 0 : index
    %398 = vector.load %arg18[%c0_119, %c4_120, %c0_121] : memref<1x8x128xf32, #tpu.memory_space<vmem>>, vector<1x1x128xf32>
    %399 = vector.shape_cast %398 : vector<1x1x128xf32> to vector<1x128xf32>
    %400 = vector.shape_cast %397 : vector<1x128xf32> to vector<1x1x128xf32>
    tpu.vector_store %arg18[%c0_119, %c4_120, %c0_121], %400 {strides = array<i32>} : memref<1x8x128xf32, #tpu.memory_space<vmem>>, vector<1x1x128xf32>,
    %401 = arith.index_cast %arg0 : i32 to index
    %c5 = arith.constant 5 : index
    %402 = memref.load %arg1[%401, %c5] : memref<2x8xi32, #tpu.memory_space<smem>>
    %403 = arith.index_cast %402 : i32 to index
    %c0_122 = arith.constant 0 : index
    %c0_123 = arith.constant 0 : index
    %404 = vector.load %arg6[%403, %c0_122, %c0_123] : memref<41x1x512xf32, #tpu.memory_space<vmem>>, vector<1x1x512xf32>
    %405 = vector.shape_cast %404 : vector<1x1x512xf32> to vector<1x512xf32>
    %cst_124 = arith.constant dense<0.000000e+00> : vector<1x512xf32>
    %406 = tpu.matmul %359, %15, %cst_124 {dimension_numbers = #tpu.dot_dimension_numbers<[1], [0], [0], [1], [0, 0, 1, 1], [], []>} : vector<1x128xf32>, vector<128x512xf32>, vector<1x512xf32> -> vector<1x512xf32>
    %407 = arith.addf %405, %406 : vector<1x512xf32>
    %408 = arith.addf %407, %18 : vector<1x512xf32>
    %409 = vector.extract_strided_slice %408 {offsets = [0, 0], sizes = [1, 128], strides = [1, 1]} : vector<1x512xf32> to vector<1x128xf32>
    %410 = arith.negf %409 : vector<1x128xf32>
    %411 = math.exp %410 : vector<1x128xf32>
    %cst_125 = arith.constant 1.000000e+00 : f32
    %412 = vector.broadcast %cst_125 : f32 to vector<1x128xf32>
    %413 = arith.addf %412, %411 : vector<1x128xf32>
    %414 = arith.divf %412, %413 : vector<1x128xf32>
    %415 = vector.extract_strided_slice %408 {offsets = [0, 128], sizes = [1, 128], strides = [1, 1]} : vector<1x512xf32> to vector<1x128xf32>
    %416 = arith.negf %415 : vector<1x128xf32>
    %417 = math.exp %416 : vector<1x128xf32>
    %cst_126 = arith.constant 1.000000e+00 : f32
    %418 = vector.broadcast %cst_126 : f32 to vector<1x128xf32>
    %419 = arith.addf %418, %417 : vector<1x128xf32>
    %420 = arith.divf %418, %419 : vector<1x128xf32>
    %421 = vector.extract_strided_slice %408 {offsets = [0, 256], sizes = [1, 128], strides = [1, 1]} : vector<1x512xf32> to vector<1x128xf32>
    %422 = math.tanh %421 : vector<1x128xf32>
    %423 = vector.extract_strided_slice %408 {offsets = [0, 384], sizes = [1, 128], strides = [1, 1]} : vector<1x512xf32> to vector<1x128xf32>
    %424 = arith.negf %423 : vector<1x128xf32>
    %425 = math.exp %424 : vector<1x128xf32>
    %cst_127 = arith.constant 1.000000e+00 : f32
    %426 = vector.broadcast %cst_127 : f32 to vector<1x128xf32>
    %427 = arith.addf %426, %425 : vector<1x128xf32>
    %428 = arith.divf %426, %427 : vector<1x128xf32>
    %429 = arith.mulf %420, %357 : vector<1x128xf32>
    %430 = arith.mulf %414, %422 : vector<1x128xf32>
    %431 = arith.addf %429, %430 : vector<1x128xf32>
    %432 = math.tanh %431 : vector<1x128xf32>
    %433 = arith.mulf %428, %432 : vector<1x128xf32>
    %cst_128 = arith.constant dense<0.000000e+00> : vector<1x512xf32>
    %434 = tpu.matmul %433, %16, %cst_128 {dimension_numbers = #tpu.dot_dimension_numbers<[1], [0], [0], [1], [0, 0, 1, 1], [], []>} : vector<1x128xf32>, vector<128x512xf32>, vector<1x512xf32> -> vector<1x512xf32>
    %cst_129 = arith.constant dense<0.000000e+00> : vector<1x512xf32>
    %435 = tpu.matmul %388, %17, %cst_129 {dimension_numbers = #tpu.dot_dimension_numbers<[1], [0], [0], [1], [0, 0, 1, 1], [], []>} : vector<1x128xf32>, vector<128x512xf32>, vector<1x512xf32> -> vector<1x512xf32>
    %436 = arith.addf %434, %435 : vector<1x512xf32>
    %437 = arith.addf %436, %19 : vector<1x512xf32>
    %438 = vector.extract_strided_slice %437 {offsets = [0, 0], sizes = [1, 128], strides = [1, 1]} : vector<1x512xf32> to vector<1x128xf32>
    %439 = arith.negf %438 : vector<1x128xf32>
    %440 = math.exp %439 : vector<1x128xf32>
    %cst_130 = arith.constant 1.000000e+00 : f32
    %441 = vector.broadcast %cst_130 : f32 to vector<1x128xf32>
    %442 = arith.addf %441, %440 : vector<1x128xf32>
    %443 = arith.divf %441, %442 : vector<1x128xf32>
    %444 = vector.extract_strided_slice %437 {offsets = [0, 128], sizes = [1, 128], strides = [1, 1]} : vector<1x512xf32> to vector<1x128xf32>
    %445 = arith.negf %444 : vector<1x128xf32>
    %446 = math.exp %445 : vector<1x128xf32>
    %cst_131 = arith.constant 1.000000e+00 : f32
    %447 = vector.broadcast %cst_131 : f32 to vector<1x128xf32>
    %448 = arith.addf %447, %446 : vector<1x128xf32>
    %449 = arith.divf %447, %448 : vector<1x128xf32>
    %450 = vector.extract_strided_slice %437 {offsets = [0, 256], sizes = [1, 128], strides = [1, 1]} : vector<1x512xf32> to vector<1x128xf32>
    %451 = math.tanh %450 : vector<1x128xf32>
    %452 = vector.extract_strided_slice %437 {offsets = [0, 384], sizes = [1, 128], strides = [1, 1]} : vector<1x512xf32> to vector<1x128xf32>
    %453 = arith.negf %452 : vector<1x128xf32>
    %454 = math.exp %453 : vector<1x128xf32>
    %cst_132 = arith.constant 1.000000e+00 : f32
    %455 = vector.broadcast %cst_132 : f32 to vector<1x128xf32>
    %456 = arith.addf %455, %454 : vector<1x128xf32>
    %457 = arith.divf %455, %456 : vector<1x128xf32>
    %458 = arith.mulf %449, %386 : vector<1x128xf32>
    %459 = arith.mulf %443, %451 : vector<1x128xf32>
    %460 = arith.addf %458, %459 : vector<1x128xf32>
    %461 = math.tanh %460 : vector<1x128xf32>
    %462 = arith.mulf %457, %461 : vector<1x128xf32>
    %cst_133 = arith.constant dense<0.000000e+00> : vector<32x1xf32>
    %463 = tpu.matmul %20, %462, %cst_133 {dimension_numbers = #tpu.dot_dimension_numbers<[1], [1], [0], [0], [0, 0, 1, 0], [], []>} : vector<32x128xf32>, vector<1x128xf32>, vector<32x1xf32> -> vector<32x1xf32>
    %464 = vector.broadcast %463 : vector<32x1xf32> to vector<32x128xf32>
    %465 = arith.addf %9, %464 : vector<32x128xf32>
    %466 = math.tanh %465 : vector<32x128xf32>
    %cst_134 = arith.constant dense<0.000000e+00> : vector<1x128xf32>
    %467 = tpu.matmul %21, %466, %cst_134 {dimension_numbers = #tpu.dot_dimension_numbers<[1], [0], [0], [1], [0, 0, 1, 1], [], []>} : vector<1x32xf32>, vector<32x128xf32>, vector<1x128xf32> -> vector<1x128xf32>
    %468 = vector.broadcast %22 : vector<1x1xf32> to vector<1x128xf32>
    %469 = arith.addf %467, %468 : vector<1x128xf32>
    %cst_135 = arith.constant -1.000000e+10 : f32
    %470 = vector.broadcast %cst_135 : f32 to vector<1x128xf32>
    %471 = arith.select %14, %470, %469 : vector<1x128xi1>, vector<1x128xf32>
    %c0_136 = arith.constant 0 : index
    %c5_137 = arith.constant 5 : index
    %c0_138 = arith.constant 0 : index
    %472 = vector.load %arg18[%c0_136, %c5_137, %c0_138] : memref<1x8x128xf32, #tpu.memory_space<vmem>>, vector<1x1x128xf32>
    %473 = vector.shape_cast %472 : vector<1x1x128xf32> to vector<1x128xf32>
    %474 = vector.shape_cast %471 : vector<1x128xf32> to vector<1x1x128xf32>
    tpu.vector_store %arg18[%c0_136, %c5_137, %c0_138], %474 {strides = array<i32>} : memref<1x8x128xf32, #tpu.memory_space<vmem>>, vector<1x1x128xf32>,
    %475 = arith.index_cast %arg0 : i32 to index
    %c6 = arith.constant 6 : index
    %476 = memref.load %arg1[%475, %c6] : memref<2x8xi32, #tpu.memory_space<smem>>
    %477 = arith.index_cast %476 : i32 to index
    %c0_139 = arith.constant 0 : index
    %c0_140 = arith.constant 0 : index
    %478 = vector.load %arg6[%477, %c0_139, %c0_140] : memref<41x1x512xf32, #tpu.memory_space<vmem>>, vector<1x1x512xf32>
    %479 = vector.shape_cast %478 : vector<1x1x512xf32> to vector<1x512xf32>
    %cst_141 = arith.constant dense<0.000000e+00> : vector<1x512xf32>
    %480 = tpu.matmul %433, %15, %cst_141 {dimension_numbers = #tpu.dot_dimension_numbers<[1], [0], [0], [1], [0, 0, 1, 1], [], []>} : vector<1x128xf32>, vector<128x512xf32>, vector<1x512xf32> -> vector<1x512xf32>
    %481 = arith.addf %479, %480 : vector<1x512xf32>
    %482 = arith.addf %481, %18 : vector<1x512xf32>
    %483 = vector.extract_strided_slice %482 {offsets = [0, 0], sizes = [1, 128], strides = [1, 1]} : vector<1x512xf32> to vector<1x128xf32>
    %484 = arith.negf %483 : vector<1x128xf32>
    %485 = math.exp %484 : vector<1x128xf32>
    %cst_142 = arith.constant 1.000000e+00 : f32
    %486 = vector.broadcast %cst_142 : f32 to vector<1x128xf32>
    %487 = arith.addf %486, %485 : vector<1x128xf32>
    %488 = arith.divf %486, %487 : vector<1x128xf32>
    %489 = vector.extract_strided_slice %482 {offsets = [0, 128], sizes = [1, 128], strides = [1, 1]} : vector<1x512xf32> to vector<1x128xf32>
    %490 = arith.negf %489 : vector<1x128xf32>
    %491 = math.exp %490 : vector<1x128xf32>
    %cst_143 = arith.constant 1.000000e+00 : f32
    %492 = vector.broadcast %cst_143 : f32 to vector<1x128xf32>
    %493 = arith.addf %492, %491 : vector<1x128xf32>
    %494 = arith.divf %492, %493 : vector<1x128xf32>
    %495 = vector.extract_strided_slice %482 {offsets = [0, 256], sizes = [1, 128], strides = [1, 1]} : vector<1x512xf32> to vector<1x128xf32>
    %496 = math.tanh %495 : vector<1x128xf32>
    %497 = vector.extract_strided_slice %482 {offsets = [0, 384], sizes = [1, 128], strides = [1, 1]} : vector<1x512xf32> to vector<1x128xf32>
    %498 = arith.negf %497 : vector<1x128xf32>
    %499 = math.exp %498 : vector<1x128xf32>
    %cst_144 = arith.constant 1.000000e+00 : f32
    %500 = vector.broadcast %cst_144 : f32 to vector<1x128xf32>
    %501 = arith.addf %500, %499 : vector<1x128xf32>
    %502 = arith.divf %500, %501 : vector<1x128xf32>
    %503 = arith.mulf %494, %431 : vector<1x128xf32>
    %504 = arith.mulf %488, %496 : vector<1x128xf32>
    %505 = arith.addf %503, %504 : vector<1x128xf32>
    %506 = math.tanh %505 : vector<1x128xf32>
    %507 = arith.mulf %502, %506 : vector<1x128xf32>
    %cst_145 = arith.constant dense<0.000000e+00> : vector<1x512xf32>
    %508 = tpu.matmul %507, %16, %cst_145 {dimension_numbers = #tpu.dot_dimension_numbers<[1], [0], [0], [1], [0, 0, 1, 1], [], []>} : vector<1x128xf32>, vector<128x512xf32>, vector<1x512xf32> -> vector<1x512xf32>
    %cst_146 = arith.constant dense<0.000000e+00> : vector<1x512xf32>
    %509 = tpu.matmul %462, %17, %cst_146 {dimension_numbers = #tpu.dot_dimension_numbers<[1], [0], [0], [1], [0, 0, 1, 1], [], []>} : vector<1x128xf32>, vector<128x512xf32>, vector<1x512xf32> -> vector<1x512xf32>
    %510 = arith.addf %508, %509 : vector<1x512xf32>
    %511 = arith.addf %510, %19 : vector<1x512xf32>
    %512 = vector.extract_strided_slice %511 {offsets = [0, 0], sizes = [1, 128], strides = [1, 1]} : vector<1x512xf32> to vector<1x128xf32>
    %513 = arith.negf %512 : vector<1x128xf32>
    %514 = math.exp %513 : vector<1x128xf32>
    %cst_147 = arith.constant 1.000000e+00 : f32
    %515 = vector.broadcast %cst_147 : f32 to vector<1x128xf32>
    %516 = arith.addf %515, %514 : vector<1x128xf32>
    %517 = arith.divf %515, %516 : vector<1x128xf32>
    %518 = vector.extract_strided_slice %511 {offsets = [0, 128], sizes = [1, 128], strides = [1, 1]} : vector<1x512xf32> to vector<1x128xf32>
    %519 = arith.negf %518 : vector<1x128xf32>
    %520 = math.exp %519 : vector<1x128xf32>
    %cst_148 = arith.constant 1.000000e+00 : f32
    %521 = vector.broadcast %cst_148 : f32 to vector<1x128xf32>
    %522 = arith.addf %521, %520 : vector<1x128xf32>
    %523 = arith.divf %521, %522 : vector<1x128xf32>
    %524 = vector.extract_strided_slice %511 {offsets = [0, 256], sizes = [1, 128], strides = [1, 1]} : vector<1x512xf32> to vector<1x128xf32>
    %525 = math.tanh %524 : vector<1x128xf32>
    %526 = vector.extract_strided_slice %511 {offsets = [0, 384], sizes = [1, 128], strides = [1, 1]} : vector<1x512xf32> to vector<1x128xf32>
    %527 = arith.negf %526 : vector<1x128xf32>
    %528 = math.exp %527 : vector<1x128xf32>
    %cst_149 = arith.constant 1.000000e+00 : f32
    %529 = vector.broadcast %cst_149 : f32 to vector<1x128xf32>
    %530 = arith.addf %529, %528 : vector<1x128xf32>
    %531 = arith.divf %529, %530 : vector<1x128xf32>
    %532 = arith.mulf %523, %460 : vector<1x128xf32>
    %533 = arith.mulf %517, %525 : vector<1x128xf32>
    %534 = arith.addf %532, %533 : vector<1x128xf32>
    %535 = math.tanh %534 : vector<1x128xf32>
    %536 = arith.mulf %531, %535 : vector<1x128xf32>
    %cst_150 = arith.constant dense<0.000000e+00> : vector<32x1xf32>
    %537 = tpu.matmul %20, %536, %cst_150 {dimension_numbers = #tpu.dot_dimension_numbers<[1], [1], [0], [0], [0, 0, 1, 0], [], []>} : vector<32x128xf32>, vector<1x128xf32>, vector<32x1xf32> -> vector<32x1xf32>
    %538 = vector.broadcast %537 : vector<32x1xf32> to vector<32x128xf32>
    %539 = arith.addf %9, %538 : vector<32x128xf32>
    %540 = math.tanh %539 : vector<32x128xf32>
    %cst_151 = arith.constant dense<0.000000e+00> : vector<1x128xf32>
    %541 = tpu.matmul %21, %540, %cst_151 {dimension_numbers = #tpu.dot_dimension_numbers<[1], [0], [0], [1], [0, 0, 1, 1], [], []>} : vector<1x32xf32>, vector<32x128xf32>, vector<1x128xf32> -> vector<1x128xf32>
    %542 = vector.broadcast %22 : vector<1x1xf32> to vector<1x128xf32>
    %543 = arith.addf %541, %542 : vector<1x128xf32>
    %cst_152 = arith.constant -1.000000e+10 : f32
    %544 = vector.broadcast %cst_152 : f32 to vector<1x128xf32>
    %545 = arith.select %14, %544, %543 : vector<1x128xi1>, vector<1x128xf32>
    %c0_153 = arith.constant 0 : index
    %c6_154 = arith.constant 6 : index
    %c0_155 = arith.constant 0 : index
    %546 = vector.load %arg18[%c0_153, %c6_154, %c0_155] : memref<1x8x128xf32, #tpu.memory_space<vmem>>, vector<1x1x128xf32>
    %547 = vector.shape_cast %546 : vector<1x1x128xf32> to vector<1x128xf32>
    %548 = vector.shape_cast %545 : vector<1x128xf32> to vector<1x1x128xf32>
    tpu.vector_store %arg18[%c0_153, %c6_154, %c0_155], %548 {strides = array<i32>} : memref<1x8x128xf32, #tpu.memory_space<vmem>>, vector<1x1x128xf32>,
    %549 = arith.index_cast %arg0 : i32 to index
    %c7 = arith.constant 7 : index
    %550 = memref.load %arg1[%549, %c7] : memref<2x8xi32, #tpu.memory_space<smem>>
    %551 = arith.index_cast %550 : i32 to index
    %c0_156 = arith.constant 0 : index
    %c0_157 = arith.constant 0 : index
    %552 = vector.load %arg6[%551, %c0_156, %c0_157] : memref<41x1x512xf32, #tpu.memory_space<vmem>>, vector<1x1x512xf32>
    %553 = vector.shape_cast %552 : vector<1x1x512xf32> to vector<1x512xf32>
    %cst_158 = arith.constant dense<0.000000e+00> : vector<1x512xf32>
    %554 = tpu.matmul %507, %15, %cst_158 {dimension_numbers = #tpu.dot_dimension_numbers<[1], [0], [0], [1], [0, 0, 1, 1], [], []>} : vector<1x128xf32>, vector<128x512xf32>, vector<1x512xf32> -> vector<1x512xf32>
    %555 = arith.addf %553, %554 : vector<1x512xf32>
    %556 = arith.addf %555, %18 : vector<1x512xf32>
    %557 = vector.extract_strided_slice %556 {offsets = [0, 0], sizes = [1, 128], strides = [1, 1]} : vector<1x512xf32> to vector<1x128xf32>
    %558 = arith.negf %557 : vector<1x128xf32>
    %559 = math.exp %558 : vector<1x128xf32>
    %cst_159 = arith.constant 1.000000e+00 : f32
    %560 = vector.broadcast %cst_159 : f32 to vector<1x128xf32>
    %561 = arith.addf %560, %559 : vector<1x128xf32>
    %562 = arith.divf %560, %561 : vector<1x128xf32>
    %563 = vector.extract_strided_slice %556 {offsets = [0, 128], sizes = [1, 128], strides = [1, 1]} : vector<1x512xf32> to vector<1x128xf32>
    %564 = arith.negf %563 : vector<1x128xf32>
    %565 = math.exp %564 : vector<1x128xf32>
    %cst_160 = arith.constant 1.000000e+00 : f32
    %566 = vector.broadcast %cst_160 : f32 to vector<1x128xf32>
    %567 = arith.addf %566, %565 : vector<1x128xf32>
    %568 = arith.divf %566, %567 : vector<1x128xf32>
    %569 = vector.extract_strided_slice %556 {offsets = [0, 256], sizes = [1, 128], strides = [1, 1]} : vector<1x512xf32> to vector<1x128xf32>
    %570 = math.tanh %569 : vector<1x128xf32>
    %571 = vector.extract_strided_slice %556 {offsets = [0, 384], sizes = [1, 128], strides = [1, 1]} : vector<1x512xf32> to vector<1x128xf32>
    %572 = arith.negf %571 : vector<1x128xf32>
    %573 = math.exp %572 : vector<1x128xf32>
    %cst_161 = arith.constant 1.000000e+00 : f32
    %574 = vector.broadcast %cst_161 : f32 to vector<1x128xf32>
    %575 = arith.addf %574, %573 : vector<1x128xf32>
    %576 = arith.divf %574, %575 : vector<1x128xf32>
    %577 = arith.mulf %568, %505 : vector<1x128xf32>
    %578 = arith.mulf %562, %570 : vector<1x128xf32>
    %579 = arith.addf %577, %578 : vector<1x128xf32>
    %580 = math.tanh %579 : vector<1x128xf32>
    %581 = arith.mulf %576, %580 : vector<1x128xf32>
    %cst_162 = arith.constant dense<0.000000e+00> : vector<1x512xf32>
    %582 = tpu.matmul %581, %16, %cst_162 {dimension_numbers = #tpu.dot_dimension_numbers<[1], [0], [0], [1], [0, 0, 1, 1], [], []>} : vector<1x128xf32>, vector<128x512xf32>, vector<1x512xf32> -> vector<1x512xf32>
    %cst_163 = arith.constant dense<0.000000e+00> : vector<1x512xf32>
    %583 = tpu.matmul %536, %17, %cst_163 {dimension_numbers = #tpu.dot_dimension_numbers<[1], [0], [0], [1], [0, 0, 1, 1], [], []>} : vector<1x128xf32>, vector<128x512xf32>, vector<1x512xf32> -> vector<1x512xf32>
    %584 = arith.addf %582, %583 : vector<1x512xf32>
    %585 = arith.addf %584, %19 : vector<1x512xf32>
    %586 = vector.extract_strided_slice %585 {offsets = [0, 0], sizes = [1, 128], strides = [1, 1]} : vector<1x512xf32> to vector<1x128xf32>
    %587 = arith.negf %586 : vector<1x128xf32>
    %588 = math.exp %587 : vector<1x128xf32>
    %cst_164 = arith.constant 1.000000e+00 : f32
    %589 = vector.broadcast %cst_164 : f32 to vector<1x128xf32>
    %590 = arith.addf %589, %588 : vector<1x128xf32>
    %591 = arith.divf %589, %590 : vector<1x128xf32>
    %592 = vector.extract_strided_slice %585 {offsets = [0, 128], sizes = [1, 128], strides = [1, 1]} : vector<1x512xf32> to vector<1x128xf32>
    %593 = arith.negf %592 : vector<1x128xf32>
    %594 = math.exp %593 : vector<1x128xf32>
    %cst_165 = arith.constant 1.000000e+00 : f32
    %595 = vector.broadcast %cst_165 : f32 to vector<1x128xf32>
    %596 = arith.addf %595, %594 : vector<1x128xf32>
    %597 = arith.divf %595, %596 : vector<1x128xf32>
    %598 = vector.extract_strided_slice %585 {offsets = [0, 256], sizes = [1, 128], strides = [1, 1]} : vector<1x512xf32> to vector<1x128xf32>
    %599 = math.tanh %598 : vector<1x128xf32>
    %600 = vector.extract_strided_slice %585 {offsets = [0, 384], sizes = [1, 128], strides = [1, 1]} : vector<1x512xf32> to vector<1x128xf32>
    %601 = arith.negf %600 : vector<1x128xf32>
    %602 = math.exp %601 : vector<1x128xf32>
    %cst_166 = arith.constant 1.000000e+00 : f32
    %603 = vector.broadcast %cst_166 : f32 to vector<1x128xf32>
    %604 = arith.addf %603, %602 : vector<1x128xf32>
    %605 = arith.divf %603, %604 : vector<1x128xf32>
    %606 = arith.mulf %597, %534 : vector<1x128xf32>
    %607 = arith.mulf %591, %599 : vector<1x128xf32>
    %608 = arith.addf %606, %607 : vector<1x128xf32>
    %609 = math.tanh %608 : vector<1x128xf32>
    %610 = arith.mulf %605, %609 : vector<1x128xf32>
    %cst_167 = arith.constant dense<0.000000e+00> : vector<32x1xf32>
    %611 = tpu.matmul %20, %610, %cst_167 {dimension_numbers = #tpu.dot_dimension_numbers<[1], [1], [0], [0], [0, 0, 1, 0], [], []>} : vector<32x128xf32>, vector<1x128xf32>, vector<32x1xf32> -> vector<32x1xf32>
    %612 = vector.broadcast %611 : vector<32x1xf32> to vector<32x128xf32>
    %613 = arith.addf %9, %612 : vector<32x128xf32>
    %614 = math.tanh %613 : vector<32x128xf32>
    %cst_168 = arith.constant dense<0.000000e+00> : vector<1x128xf32>
    %615 = tpu.matmul %21, %614, %cst_168 {dimension_numbers = #tpu.dot_dimension_numbers<[1], [0], [0], [1], [0, 0, 1, 1], [], []>} : vector<1x32xf32>, vector<32x128xf32>, vector<1x128xf32> -> vector<1x128xf32>
    %616 = vector.broadcast %22 : vector<1x1xf32> to vector<1x128xf32>
    %617 = arith.addf %615, %616 : vector<1x128xf32>
    %cst_169 = arith.constant -1.000000e+10 : f32
    %618 = vector.broadcast %cst_169 : f32 to vector<1x128xf32>
    %619 = arith.select %14, %618, %617 : vector<1x128xi1>, vector<1x128xf32>
    %c0_170 = arith.constant 0 : index
    %c7_171 = arith.constant 7 : index
    %c0_172 = arith.constant 0 : index
    %620 = vector.load %arg18[%c0_170, %c7_171, %c0_172] : memref<1x8x128xf32, #tpu.memory_space<vmem>>, vector<1x1x128xf32>
    %621 = vector.shape_cast %620 : vector<1x1x128xf32> to vector<1x128xf32>
    %622 = vector.shape_cast %619 : vector<1x128xf32> to vector<1x1x128xf32>
    tpu.vector_store %arg18[%c0_170, %c7_171, %c0_172], %622 {strides = array<i32>} : memref<1x8x128xf32, #tpu.memory_space<vmem>>, vector<1x1x128xf32>,
    return
  }
  func.func @transform_0(%arg0: i32, %arg1: memref<2x8xi32, #tpu.memory_space<smem>>, %arg2: memref<2xi32, #tpu.memory_space<smem>>) -> (i32, i32, i32) {
    %c0_i32 = arith.constant 0 : i32
    %c0_i32_0 = arith.constant 0 : i32
    %c0_i32_1 = arith.constant 0 : i32
    return %arg0, %c0_i32, %c0_i32_0 : i32, i32, i32
  }
  func.func @transform_1(%arg0: i32, %arg1: memref<2x8xi32, #tpu.memory_space<smem>>, %arg2: memref<2xi32, #tpu.memory_space<smem>>) -> (i32, i32, i32) {
    %c0_i32 = arith.constant 0 : i32
    %c0_i32_0 = arith.constant 0 : i32
    %c0_i32_1 = arith.constant 0 : i32
    return %arg0, %c0_i32, %c0_i32_0 : i32, i32, i32
  }
  func.func @transform_2(%arg0: i32, %arg1: memref<2x8xi32, #tpu.memory_space<smem>>, %arg2: memref<2xi32, #tpu.memory_space<smem>>) -> (i32, i32, i32) {
    %c0_i32 = arith.constant 0 : i32
    %c0_i32_0 = arith.constant 0 : i32
    %c0_i32_1 = arith.constant 0 : i32
    return %arg0, %c0_i32, %c0_i32_0 : i32, i32, i32
  }
  func.func @transform_3(%arg0: i32, %arg1: memref<2x8xi32, #tpu.memory_space<smem>>, %arg2: memref<2xi32, #tpu.memory_space<smem>>) -> (i32, i32, i32) {
    %c0_i32 = arith.constant 0 : i32
    %c0_i32_0 = arith.constant 0 : i32
    %c0_i32_1 = arith.constant 0 : i32
    %c0_i32_2 = arith.constant 0 : i32
    return %c0_i32, %c0_i32_0, %c0_i32_1 : i32, i32, i32
  }
  func.func @transform_4(%arg0: i32, %arg1: memref<2x8xi32, #tpu.memory_space<smem>>, %arg2: memref<2xi32, #tpu.memory_space<smem>>) -> (i32, i32) {
    %c0_i32 = arith.constant 0 : i32
    %c0_i32_0 = arith.constant 0 : i32
    %c0_i32_1 = arith.constant 0 : i32
    return %c0_i32, %c0_i32_0 : i32, i32
  }
  func.func @transform_5(%arg0: i32, %arg1: memref<2x8xi32, #tpu.memory_space<smem>>, %arg2: memref<2xi32, #tpu.memory_space<smem>>) -> (i32, i32) {
    %c0_i32 = arith.constant 0 : i32
    %c0_i32_0 = arith.constant 0 : i32
    %c0_i32_1 = arith.constant 0 : i32
    return %c0_i32, %c0_i32_0 : i32, i32
  }
  func.func @transform_6(%arg0: i32, %arg1: memref<2x8xi32, #tpu.memory_space<smem>>, %arg2: memref<2xi32, #tpu.memory_space<smem>>) -> (i32, i32) {
    %c0_i32 = arith.constant 0 : i32
    %c0_i32_0 = arith.constant 0 : i32
    %c0_i32_1 = arith.constant 0 : i32
    return %c0_i32, %c0_i32_0 : i32, i32
  }
  func.func @transform_7(%arg0: i32, %arg1: memref<2x8xi32, #tpu.memory_space<smem>>, %arg2: memref<2xi32, #tpu.memory_space<smem>>) -> (i32, i32) {
    %c0_i32 = arith.constant 0 : i32
    %c0_i32_0 = arith.constant 0 : i32
    %c0_i32_1 = arith.constant 0 : i32
    return %c0_i32, %c0_i32_0 : i32, i32
  }
  func.func @transform_8(%arg0: i32, %arg1: memref<2x8xi32, #tpu.memory_space<smem>>, %arg2: memref<2xi32, #tpu.memory_space<smem>>) -> (i32, i32) {
    %c0_i32 = arith.constant 0 : i32
    %c0_i32_0 = arith.constant 0 : i32
    %c0_i32_1 = arith.constant 0 : i32
    return %c0_i32, %c0_i32_0 : i32, i32
  }
  func.func @transform_9(%arg0: i32, %arg1: memref<2x8xi32, #tpu.memory_space<smem>>, %arg2: memref<2xi32, #tpu.memory_space<smem>>) -> (i32, i32) {
    %c0_i32 = arith.constant 0 : i32
    %c0_i32_0 = arith.constant 0 : i32
    %c0_i32_1 = arith.constant 0 : i32
    return %c0_i32, %c0_i32_0 : i32, i32
  }
  func.func @transform_10(%arg0: i32, %arg1: memref<2x8xi32, #tpu.memory_space<smem>>, %arg2: memref<2xi32, #tpu.memory_space<smem>>) -> (i32, i32) {
    %c0_i32 = arith.constant 0 : i32
    %c0_i32_0 = arith.constant 0 : i32
    %c0_i32_1 = arith.constant 0 : i32
    return %c0_i32, %c0_i32_0 : i32, i32
  }
  func.func @transform_11(%arg0: i32, %arg1: memref<2x8xi32, #tpu.memory_space<smem>>, %arg2: memref<2xi32, #tpu.memory_space<smem>>) -> (i32, i32) {
    %c0_i32 = arith.constant 0 : i32
    %c0_i32_0 = arith.constant 0 : i32
    %c0_i32_1 = arith.constant 0 : i32
    return %c0_i32, %c0_i32_0 : i32, i32
  }
  func.func @transform_12(%arg0: i32, %arg1: memref<2x8xi32, #tpu.memory_space<smem>>, %arg2: memref<2xi32, #tpu.memory_space<smem>>) -> (i32, i32) {
    %c0_i32 = arith.constant 0 : i32
    %c0_i32_0 = arith.constant 0 : i32
    %c0_i32_1 = arith.constant 0 : i32
    return %c0_i32, %c0_i32_0 : i32, i32
  }
  func.func @transform_13(%arg0: i32, %arg1: memref<2x8xi32, #tpu.memory_space<smem>>, %arg2: memref<2xi32, #tpu.memory_space<smem>>) -> (i32, i32) {
    %c0_i32 = arith.constant 0 : i32
    %c0_i32_0 = arith.constant 0 : i32
    %c0_i32_1 = arith.constant 0 : i32
    return %c0_i32, %c0_i32_0 : i32, i32
  }
  func.func @transform_14(%arg0: i32, %arg1: memref<2x8xi32, #tpu.memory_space<smem>>, %arg2: memref<2xi32, #tpu.memory_space<smem>>) -> (i32, i32) {
    %c0_i32 = arith.constant 0 : i32
    %c0_i32_0 = arith.constant 0 : i32
    %c0_i32_1 = arith.constant 0 : i32
    return %c0_i32, %c0_i32_0 : i32, i32
  }
  func.func @transform_15(%arg0: i32, %arg1: memref<2x8xi32, #tpu.memory_space<smem>>, %arg2: memref<2xi32, #tpu.memory_space<smem>>) -> (i32, i32, i32) {
    %c0_i32 = arith.constant 0 : i32
    %c0_i32_0 = arith.constant 0 : i32
    %c0_i32_1 = arith.constant 0 : i32
    return %arg0, %c0_i32, %c0_i32_0 : i32, i32, i32
  }
}

</mosaic_0001>

<bundles_post_ra>
// kernel: tpu_custom_call.1
= control target key start
LH: loop header
LB: loop body
LE: loop exit
PB: predicated region body
PF: predicated region fallthrough
CT: control target
= control target key end

     0   :  { %s10707_s0 = inlined_call_operand.hbm [shape: s32[2,8], index: 0, kind: input, shape index: {}]   ;;  %s10708_s2 = inlined_call_operand.hbm [shape: f32[2,48,128], index: 2, kind: input, shape index: {}]   ;;  %s10709_s3 = inlined_call_operand.vmem [shape: f32[2,2,128], index: 3, kind: input, shape index: {}]   ;;  %s10710_s4 = inlined_call_operand.vmem [shape: f32[2,2,128], index: 4, kind: input, shape index: {}]   ;;  %s10711_s5 = inlined_call_operand.hbm [shape: f32[41,1,512], index: 5, kind: input, shape index: {}]   ;;  %s10712_s6 = inlined_call_operand.hbm [shape: f32[128,512], index: 6, kind: input, shape index: {}]   ;;  %s10713_s7 = inlined_call_operand.vmem [shape: f32[1,512], index: 7, kind: input, shape index: {}]   ;;  %s10714_s8 = inlined_call_operand.hbm [shape: f32[128,512], index: 8, kind: input, shape index: {}]   ;;  %s10715_s9 = inlined_call_operand.hbm [shape: f32[128,512], index: 9, kind: input, shape index: {}]   ;;  %s10716_s10 = inlined_call_operand.vmem [shape: f32[1,512], index: 10, kind: input, shape index: {}]   ;;  %s10717_s11 = inlined_call_operand.vmem [shape: f32[32,128], index: 11, kind: input, shape index: {}]   ;;  %s10718_s12 = inlined_call_operand.vmem [shape: f32[32,1], index: 12, kind: input, shape index: {}]   ;;  %s10719_s13 = inlined_call_operand.vmem [shape: f32[32,48], index: 13, kind: input, shape index: {}]   ;;  %s10720_s14 = inlined_call_operand.vmem [shape: f32[32,1], index: 14, kind: input, shape index: {}]   ;;  %s10721_s15 = inlined_call_operand.vmem [shape: f32[1,32], index: 15, kind: input, shape index: {}]   ;;  %s10722_s17 = inlined_call_operand.hbm [shape: f32[2,8,128], index: 17, kind: output, shape index: {}]   ;;  %s10723_s1 = inlined_call_operand.vmem [shape: s32[2], index: 1, kind: input, shape index: {}]   ;;  %s10724_s16 = inlined_call_operand.<no memory space> [shape: f32[1,1], index: 16, kind: input, shape index: {}]  }
   0x1   :  { %10977 = sst [smem:[#allocation130_spill]] %s10707_s0 }
   0x2   :  { %10978 = sst [smem:[#allocation131_spill]] %s10708_s2  ;;  %s10985_s26 = sld [smem:[#allocation130_spill]] }
   0x3   :  { %10979 = sst [smem:[#allocation132_spill]] %s10710_s4 }
   0x4   :  { %10980 = sst [smem:[#allocation133_spill]] %s10713_s7 }
   0x5   :  { %10981 = sst [smem:[#allocation134_spill]] %s10716_s10 }
   0x6   :  { %10982 = sst [smem:[#allocation135_spill]] %s10717_s11 }
   0x7   :  { %10983 = sst [smem:[#allocation136_spill]] %s10721_s15 }
   0x8   :  { %10984 = sst [smem:[#allocation137_spill]] %s10722_s17  ;;  %s8428_s11 = scalar_lea.hbm %s10985_s26, 32 }
   0x9   :  { %p8429_p0 = scmp.ne.s32.totalorder %s10985_s26, %s8428_s11  ;;  %p8432_p1 = scmp.lt.u32.totalorder %s8428_s11, %s10985_s26 }
   0xb   :  { %p8434_p2 = pnand %p8432_p1, %p8429_p0 }
   0xd   :  { %8437 = shalt.err (!%p8434_p2)  }
   0xe   :  { %s8670_s30 = smov [#allocation3]   ;;  %v28_v0 = vstv %s10724_s16  ;;  %s24_s23 = sshll.u32 %s10723_s1, 4  ;;  %s25_s23 = int_to_ptr.vmem [resolvable:$true] %s24_s23 }
   0xf   :  { %23 = dma.hbm_to_smem %s10985_s26, 32, %s8670_s30, [#allocation2]  ;;  %29 = vst [vmem:[#allocation5] sm:$0x1] %v28_v0 }
  0x10   :  { %s8438_s24 = scalar_lea.vmem %s25_s23, 16  ;;  %p8443_p4 = scmp.lt.s32.totalorder %s25_s23, %s25_s23 }
  0x11   :  { %p8439_p3 = scmp.ne.s32.totalorder %s25_s23, %s8438_s24  ;;  %p8444_p5 = scmp.lt.s32.totalorder %s8438_s24, %s8438_s24 }
  0x13   :  { %p8445_p6 = por %p8444_p5, %p8443_p4 }
  0x15   :  { %p8446_p7 = pnand %p8445_p6, %p8439_p3 }
  0x17   :  { %8449 = shalt.err (!%p8446_p7)  }
  0x18   :  { %s8671_s11 = smov [#allocation4]  }
  0x19   :  { %27 = dma.vmem_to_smem %s25_s23, 16, %s8671_s11, [#allocation2] }
  0x1a   :  { %8636 = dma.done.wait [#allocation2], 48 }
  0x1b   :  { %8637 = vsyncadd [#allocation2], 4294967248 }
  0x1c   :  { %31 = sfence }
  0x1d   :  { %32 = vsyncpa [#allocation7], 0 }
  0x1e   :  { %34 = vsyncpa [#allocation7 + $0x1], 0 }
  0x1f   :  { %35 = vsyncpa [#allocation10], 0 }
  0x20   :  { %36 = vsyncpa [#allocation13], 0 }
  0x21   :  { %37 = vsyncpa [#allocation8], 0 }
  0x22   :  { %39 = vsyncpa [#allocation8 + $0x1], 0  ;;  %s8797_s1 = smov 0   ;;  %s8799_s16 = smov 0  }
  0x23   :  { %s8801_s25 = smov 0   ;;  %s8803_s26 = smov 0  }
  0x24 LB: > { %10986 = sst [smem:[#allocation21_spill]] %s8656_s1  ;;  %s8818_s27 = sadd.s32 4294967295, %s8668_s26   ;;  %s8668_s26 = sphi %s8803_s26, %s11611_s26   ;;  %s8664_s25 = sphi %s8801_s25, %s11610_s25   ;;  %s8660_s16 = sphi %s8799_s16, %s11609_s16   ;;  %s8656_s1 = sphi %s8797_s1, %s11608_s1  }
  0x25   : > { %s6118_s28 = sadd.s32 4294967294, %s8668_s26   ;;  %p65_p8 = scmp.ne.s32.totalorder %s8660_s16, %s8656_s1 }
  0x26   : > { %p10730_p9 = scmp.eq.s32.totalorder %s8818_s27, 0  ;;  %p399_p11 = scmp.eq.s32.totalorder %s6118_s28, 1 }
  0x27   : > { %p6119_p13 = scmp.ge.s32.totalorder %s8668_s26, 1  ;;  %p406_p1 = scmp.lt.s32.totalorder %s8668_s26, 3 }
  0x28   : > { %p8827_p12 = por %p10730_p9, %p65_p8  ;;  %p8832_p0 = por %p399_p11, %p65_p8 }
  0x29   : > { %p8837_p2 = pnand %p6119_p13, %p406_p1  ;;  %s8672_s18 = smov [#allocation9]  }
  0x2a   : > { %s10987_s29 = scalar_select %p8827_p12, 1, 0 }
  0x2b   : > { %s10988_s0 = scalar_select %p8832_p0, 1, 0 }
  0x2c   : > { %s10990_s30 = scalar_select %p8837_p2, 1, 0 }
  0x2d   : > { %10989 = sst [smem:[#allocation22_spill]] %s10988_s0  ;;  %s418_s19 = sshll.u32 %s8672_s18, 4  ;;  %s419_s19 = int_to_ptr.vmem [resolvable:$true] %s418_s19 }
  0x2e   : > { %p8014_p3 = pneg %p8837_p2  ;;  %s8673_s20 = smov [#allocation12]  }
  0x2f   : > { %s447_s21 = sshll.u32 %s8673_s20, 4  ;;  %s8450_s24 = scalar_lea.hbm %s10711_s5, 2624  ;;  %s448_s21 = int_to_ptr.vmem [resolvable:$true] %s447_s21 }
  0x30   : > { %p8846_p5 = pnand %p8014_p3, %p10730_p9  ;;  %p8451_p6 = scmp.ne.s32.totalorder %s10711_s5, %s8450_s24 }
  0x31   : > { %p8457_p13 = scmp.lt.u32.totalorder %s8450_s24, %s10711_s5 }
  0x32   : > { %p8858_p7 = pneg %p8846_p5 }
  0x34   : > { %p8453_p8 = pnand %p8858_p7, %p8451_p6 }
  0x36   : > { %p8454_p11 = pneg %p8453_p8 }
  0x38   : > { %p8459_p1 = pnand %p8457_p13, %p8454_p11 }
  0x3a   : > { %8462 = shalt.err (!%p8459_p1)
}
  0x3b   : > { %s8463_s20 = scalar_lea.vmem %s419_s19, 2624  ;;  %p8471_p10 = scmp.lt.s32.totalorder %s419_s19, %s419_s19 }
  0x3c   : > { %p8464_p3 = scmp.ne.s32.totalorder %s419_s19, %s8463_s20  ;;  %p8472_p0 = scmp.lt.s32.totalorder %s8463_s20, %s8463_s20 }
  0x3e   : > { %p8466_p4 = pnand %p8464_p3, %p8858_p7  ;;  %p8473_p12 = por %p8472_p0, %p8471_p10 }
  0x40   : > { %p8467_p9 = pneg %p8466_p4 }
  0x42   : > { %p8474_p2 = pnand %p8473_p12, %p8467_p9 }
  0x44   : > { %8477 = shalt.err (!%p8474_p2)
}
  0x45   : > { %s8674_s22 = smov 64   ;;  %s8675_s23 = smov 4  }
  0x46   : > { %8017 = dma.hbm_to_vmem [thread:$0]  (!%p8846_p5), %s10711_s5, 2624, %s419_s19, [#allocation10], %s8674_s22, %s8674_s22, %s8675_s23  }
  0x47   : > { %s8676_s24 = smov [#allocation11]   ;;  %s8478_s15 = scalar_lea.hbm %s10714_s8, 8192 }
  0x48   : > { %s431_s11 = sshll.u32 %s8676_s24, 4  ;;  %p8479_p9 = scmp.ne.s32.totalorder %s10714_s8, %s8478_s15  ;;  %s432_s11 = int_to_ptr.vmem [resolvable:$true] %s431_s11 }
  0x49   : > { %p8485_p0 = scmp.lt.u32.totalorder %s8478_s15, %s10714_s8 }
  0x4a   : > { %p8481_p10 = pnand %p8479_p9, %p8858_p7 }
  0x4c   : > { %p8482_p12 = pneg %p8481_p10 }
  0x4e   : > { %p8487_p2 = pnand %p8485_p0, %p8482_p12 }
  0x50   : > { %8490 = shalt.err (!%p8487_p2)
}
  0x51   : > { %s8491_s19 = scalar_lea.vmem %s448_s21, 8192  ;;  %p8499_p11 = scmp.lt.s32.totalorder %s448_s21, %s448_s21 }
  0x52   : > { %p8492_p4 = scmp.ne.s32.totalorder %s448_s21, %s8491_s19  ;;  %p8500_p13 = scmp.lt.s32.totalorder %s8491_s19, %s8491_s19 }
  0x54   : > { %p8494_p6 = pnand %p8492_p4, %p8858_p7  ;;  %p8501_p1 = por %p8500_p13, %p8499_p11 }
  0x56   : > { %p8495_p8 = pneg %p8494_p6 }
  0x58   : > { %p8502_p3 = pnand %p8501_p1, %p8495_p8 }
  0x5a   : > { %8505 = shalt.err (!%p8502_p3)
}
  0x5b   : > { %s8677_s10 = smov 512   ;;  %s8678_s17 = smov 32  }
  0x5c   : > { %8023 = dma.hbm_to_vmem [thread:$0]  (!%p8846_p5), %s10714_s8, 8192, %s448_s21, [#allocation13], %s8677_s10, %s8677_s10, %s8678_s17  }
  0x5d   : > { %s8506_s23 = scalar_lea.hbm %s10712_s6, 8192 }
  0x5e   : > { %p8507_p9 = scmp.ne.s32.totalorder %s10712_s6, %s8506_s23  ;;  %p8513_p0 = scmp.lt.u32.totalorder %s8506_s23, %s10712_s6 }
  0x60   : > { %p8509_p10 = pnand %p8507_p9, %p8858_p7 }
  0x62   : > { %p8510_p12 = pneg %p8509_p10 }
  0x64   : > { %p8515_p2 = pnand %p8513_p0, %p8510_p12 }
  0x66   : > { %8518 = shalt.err (!%p8515_p2)
}
  0x67   : > { %s8519_s20 = scalar_lea.vmem %s432_s11, 8192  ;;  %p8527_p11 = scmp.lt.s32.totalorder %s432_s11, %s432_s11 }
  0x68   : > { %p8520_p4 = scmp.ne.s32.totalorder %s432_s11, %s8519_s20  ;;  %p8528_p13 = scmp.lt.s32.totalorder %s8519_s20, %s8519_s20 }
  0x6a   : > { %p8522_p6 = pnand %p8520_p4, %p8858_p7  ;;  %p8529_p1 = por %p8528_p13, %p8527_p11 }
  0x6c   : > { %p8523_p8 = pneg %p8522_p6 }
  0x6e   : > { %p8530_p3 = pnand %p8529_p1, %p8523_p8 }
  0x70   : > { %8533 = shalt.err (!%p8530_p3)
}
  0x71   : > { %8020 = dma.hbm_to_vmem [thread:$0]  (!%p8846_p5), %s10712_s6, 8192, %s432_s11, [#allocation10], %s8677_s10, %s8677_s10, %s8678_s17  }
  0x72   : > { %s8679_s4 = smov [#allocation14]   ;;  %s8534_s23 = scalar_lea.hbm %s10715_s9, 8192 }
  0x73   : > { %s460_s7 = sshll.u32 %s8679_s4, 4  ;;  %p8535_p9 = scmp.ne.s32.totalorder %s10715_s9, %s8534_s23  ;;  %s461_s7 = int_to_ptr.vmem [resolvable:$true] %s460_s7 }
  0x74   : > { %p8541_p0 = scmp.lt.u32.totalorder %s8534_s23, %s10715_s9 }
  0x75   : > { %p8537_p10 = pnand %p8535_p9, %p8858_p7 }
  0x77   : > { %p8538_p12 = pneg %p8537_p10 }
  0x79   : > { %p8543_p2 = pnand %p8541_p0, %p8538_p12 }
  0x7b   : > { %8546 = shalt.err (!%p8543_p2)
}
  0x7c   : > { %s8547_s11 = scalar_lea.vmem %s461_s7, 8192  ;;  %p8555_p11 = scmp.lt.s32.totalorder %s461_s7, %s461_s7 }
  0x7d   : > { %p8548_p4 = scmp.ne.s32.totalorder %s461_s7, %s8547_s11  ;;  %p8556_p13 = scmp.lt.s32.totalorder %s8547_s11, %s8547_s11 }
  0x7f   : > { %p8550_p6 = pnand %p8548_p4, %p8858_p7  ;;  %p8557_p1 = por %p8556_p13, %p8555_p11 }
  0x81   : > { %p8551_p8 = pneg %p8550_p6 }
  0x83   : > { %p8558_p3 = pnand %p8557_p1, %p8551_p8 }
  0x85   : > { %8561 = shalt.err (!%p8558_p3)
}
  0x86   : > { %8026 = dma.hbm_to_vmem [thread:$0]  (!%p8846_p5), %s10715_s9, 8192, %s461_s7, [#allocation13], %s8677_s10, %s8677_s10, %s8678_s17  }
  0x87   : > { %s8938_s18 = sadd.s32 1, %s8668_s26   ;;  %s52_s2 = sadd.s32 1, %s8664_s25 }
  0x88   : > { %s49_s19 = ssub.s32 %s8668_s26, %s8938_s18  ;;  %p59_p7 = scmp.ne.s32.totalorder %s8664_s25, %s8660_s16 }
  0x89   : > { %p50_p9 = scmp.eq.s32.totalorder %s49_s19, 0  ;;  %p60_p10 = scmp.eq.s32.totalorder %s8668_s26, 0 }
  0x8a   : > { %p10993_p12 = scmp.eq.s32.totalorder %s8818_s27, 1  ;;  %p8039_p2 = scmp.lt.s32.totalorder %s8668_s26, 2 }
  0x8b   : > { %s8954_s15 = scalar_select %p50_p9, %s8664_s25, %s52_s2  }
  0x8c   : > { %p8948_p0 = por %p10993_p12, %p59_p7  ;;  %p61_p4 = por %p60_p10, %p59_p7 }
  0x8d   : > { %s495_s22 = sand.u32 1, %s8664_s25   ;;  %s7992_s10 = smul.u32 768, %s8668_s26 }
  0x8e   : > { %s7991_s23 = smul.u32 48, %s495_s22  ;;  %p8958_p5 = pnand %p8039_p2, %p61_p4 }
  0x8f   : > { %s10996_s0 = sld [smem:[#allocation131_spill]]  ;;  %s8969_s20 = scalar_lea.sflag [#allocation7], %s495_s22 }
  0x90   : > { %s499_s28 = scalar_lea.vmem [#allocation6], %s7991_s23  ;;  %p8564_p8 = pneg %p8958_p5 }
  0x91   : > { %s506_s11 = sshll.u32 %s499_s28, 4  ;;  %s8967_s11 = int_to_ptr.vmem [resolvable:$true] %s506_s11 }
  0x95   : > { %s8965_s24 = scalar_lea.hbm %s10996_s0, %s7992_s10  ;;  %s8567_s10 = scalar_lea.hbm %s10996_s0, 1536 }
  0x96   : > { %s8562_s21 = scalar_lea.hbm %s8965_s24, 768  ;;  %p8568_p1 = scmp.lt.u32.totalorder %s8965_s24, %s10996_s0 }
  0x97   : > { %p8563_p6 = scmp.ne.s32.totalorder %s8965_s24, %s8562_s21  ;;  %p8569_p3 = scmp.lt.u32.totalorder %s8567_s10, %s8562_s21 }
  0x98   : > { %p8571_p9 = scmp.lt.u32.totalorder %s8562_s21, %s8965_s24 }
  0x99   : > { %p8565_p11 = pnand %p8564_p8, %p8563_p6  ;;  %p8570_p7 = por %p8569_p3, %p8568_p1 }
  0x9b   : > { %p8566_p13 = pneg %p8565_p11  ;;  %p8572_p10 = por %p8571_p9, %p8570_p7 }
  0x9d   : > { %p8573_p12 = pnand %p8572_p10, %p8566_p13 }
  0x9f   : > { %8576 = shalt.err (!%p8573_p12)
}
  0xa0   : > { %s8577_s22 = scalar_lea.vmem %s8967_s11, 768  ;;  %s8680_s23 = smov [#allocation6]  }
  0xa1   : > { %p8578_p2 = scmp.ne.s32.totalorder %s8967_s11, %s8577_s22  ;;  %s8582_s28 = sshll.u32 %s8680_s23, 4  ;;  %s8583_s28 = int_to_ptr.vmem [resolvable:$false] %s8582_s28 }
  0xa2   : > { %s8584_s2 = scalar_lea.vmem %s8583_s28, 1536  ;;  %p8585_p11 = scmp.lt.s32.totalorder %s8967_s11, %s8583_s28 }
  0xa3   : > { %p8580_p4 = pnand %p8578_p2, %p8564_p8  ;;  %p8586_p1 = scmp.lt.s32.totalorder %s8584_s2, %s8577_s22 }
  0xa5   : > { %p8581_p6 = pneg %p8580_p4  ;;  %p8587_p3 = por %p8586_p1, %p8585_p11 }
  0xa7   : > { %p8588_p7 = pnand %p8587_p3, %p8581_p6 }
  0xa9   : > { %8591 = shalt.err (!%p8588_p7)
}
  0xaa   : > { %s8681_s21 = smov 128   ;;  %s8682_s19 = smov 8  }
  0xab   : > { %8030 = dma.hbm_to_vmem [thread:$0]  (!%p8958_p5), %s8965_s24, 768, %s8967_s11, %s8969_s20, %s8681_s21, %s8681_s21, %s8682_s19  }
  0xac   : > { %p10997_p8 = scmp.ne.s32.totalorder %s10990_s30, 0 }
  0xae   : > { %532 = sbr.rel (%p10997_p8) target bundleno = 6283 (0x188b), region = 80 }
  0xb5   : > { %s9000_s10 = sand.u32 1, %s8660_s16   ;;  %p10998_p13 = scmp.ne.s32.totalorder %s10987_s29, 0 }
  0xb6   : > { %s7993_s7 = smul.u32 48, %s9000_s10  ;;  %s535_s1 = scalar_lea.sflag [#allocation7], %s9000_s10 }
  0xb8   : > { %s538_s22 = scalar_lea.vmem [#allocation6], %s7993_s7 }
  0xb9   : > { %8639 = dma.done.wait (%p10998_p13), %s535_s1, 768  }
  0xba   : > { %8641 = vsyncadd (%p10998_p13), %s535_s1, 4294966528  ;;  %p10999_p9 = scmp.eq.s32.totalorder %s8818_s27, 0 }
  0xbc   : > { %8643 = dma.done.wait (%p10999_p9), [#allocation10], 10816   ;;  %p11000_p5 = pmov %p10999_p9 }
  0xbe   : > { %8645 = vsyncadd (%p11000_p5), [#allocation10], 4294956480  ;;  %p11001_p10 = pmov %p11000_p5 }
  0xbf   : > { %p11002_p12 = pmov %p11000_p5 }
  0xc0   : > { %8647 = dma.done.wait (%p11001_p10), [#allocation13], 16384  }
  0xc1   : > { %8649 = vsyncadd (%p11002_p12), [#allocation13], 4294950912  ;;  %v10736_v1 = vmov 0.0   ;;  %v8684_v2 = vmov 0   ;;  %v621_v3 = vld [vmem:[%s538_s22] sm:$0xff]  ;;  %v622_v4 = vld [vmem:[%s538_s22 + $0x8] sm:$0xff] }
  0xc2   : > { %1055 = vmatprep.mubr.f32.mxu1 %v10736_v1  ;;  %8094 = vset.pattern.permute.xlu1 %v8684_v2  ;;  %v623_v5 = vld [vmem:[%s538_s22 + $0x10] sm:$0xff]  ;;  %vm651_vm0 = vcmask 392192   ;;  %v6363_v6 = vpack.c.bf16 %v622_v4, %v621_v3  ;;  %v624_v7 = vld [vmem:[%s538_s22 + $0x18] sm:$0xff]  ;;  %v625_v8 = vld [vmem:[%s538_s22 + $0x20] sm:$0xff]  ;;  %p609_p2 = scmp.lt.s32.totalorder %s8818_s27, 1  ;;  %s9370_s1 = sshll.u32 %s8818_s27, 7 }
  0xc3   : > { %8095 = vset.pattern.permute.xlu0 %v8684_v2  ;;  %v626_v9 = vld [vmem:[%s538_s22 + $0x28] sm:$0xff]  ;;  %v6367_v10 = vpack.c.bf16 %v624_v7, %v623_v5  ;;  %s987_s22 = sld [smem:[#allocation3 + %s9370_s1]]  ;;  %vm8687_vm1 = vmmov 0   ;;  %vm1561_vm2 = vcmask 261120  }
  0xc4   : > { %v617_v11 = vld [vmem:[%s10719_s13] sm:$0xff]  ;;  %v783_v12 = vld [vmem:[#allocation11 + $0x8] sm:$0xff]  ;;  %6364 = vmatprep.subr.bf16.mxu0 %v6363_v6  ;;  %v6371_v18 = vpack.c.bf16 %v626_v9, %v625_v8  ;;  %v784_v31 = vld [vmem:[#allocation11 + $0x10] sm:$0xff]  ;;  %s9096_s2 = scalar_select %p609_p2, %s8818_s27, 1 }
  0xc5   : > { %v787_v13 = vld [vmem:[#allocation11 + $0x28] sm:$0xff]  ;;  %6269 = vmatprep.mubr.msk.f32.mxu0 %vm651_vm0, %v617_v11  ;;  %v782_v15 = vld [vmem:[#allocation11] sm:$0xff]  ;;  %6366 = vmatpush3.bf16.msra.mxu0 %v6363_v6  ;;  %v785_v19 = vld [vmem:[#allocation11 + $0x18] sm:$0xff]  ;;  %s11105_s20 = sld [smem:[#allocation133_spill]]  ;;  %s11106_s21 = sld [smem:[#allocation132_spill]] }
  0xc6   : > { %v9021_v14 = vpack.c.bf16 %v787_v13, %v783_v12  ;;  %v786_v16 = vld [vmem:[#allocation11 + $0x20] sm:$0xff]  ;;  %6368 = vmatprep.subr.bf16.mxu0 %v6367_v10  ;;  %v791_v20 = vld [vmem:[#allocation11 + $0x48] sm:$0xff]  ;;  %v789_v22 = vld [vmem:[#allocation11 + $0x38] sm:$0xff]  ;;  %s6132_s30 = sshll.u32 %s9096_s2, 1  ;;  %s11107_s7 = sld [smem:[#allocation134_spill]] }
  0xc7   : > { %v9023_v17 = vpack.c.bf16 %v786_v16, %v782_v15  ;;  %v795_v21 = vld [vmem:[#allocation11 + $0x68] sm:$0xff]  ;;  %v790_v24 = vld [vmem:[#allocation11 + $0x40] sm:$0xff]  ;;  %v9032_v30 = vpack.c.bf16 %v789_v22, %v785_v19  ;;  %v788_v32 = vld [vmem:[#allocation11 + $0x30] sm:$0xff]  ;;  %s9136_s23 = scalar_lea.vmem %s10709_s3, %s6132_s30  ;;  %s11124_s11 = sld [smem:[#allocation136_spill]] }
  0xc8   : > { %11003 = vst [vmem:[#allocation23_spill] sm:$0xff] %v9021_v14  ;;  %6376 = vmatprep.subr.bf16.mxu1 %v9021_v14  ;;  %v9027_v23 = vpack.c.bf16 %v795_v21, %v791_v20  ;;  %v794_v25 = vld [vmem:[#allocation11 + $0x60] sm:$0xff]  ;;  %v799_v27 = vld [vmem:[#allocation11 + $0x88] sm:$0xff]  ;;  %v793_v35 = vld [vmem:[#allocation11 + $0x58] sm:$0xff]  ;;  %v9043_v43 = vpack.c.bf16 %v788_v32, %v784_v31  ;;  %s2254_s2 = sadd.s32 2, %s9370_s1 }
  0xc9   : > { %11004 = vst [vmem:[#allocation24_spill] sm:$0xff] %v9023_v17  ;;  %6378 = vmatpush1.bf16.msra.mxu1 %v9023_v17  ;;  %v9029_v26 = vpack.c.bf16 %v794_v25, %v790_v24  ;;  %6370 = vmatpush3.bf16.msra.mxu0 %v6367_v10  ;;  %v803_v28 = vld [vmem:[#allocation11 + $0xa8] sm:$0xff]  ;;  %v798_v29 = vld [vmem:[#allocation11 + $0x80] sm:$0xff]  ;;  %11007 = vst [vmem:[#allocation27_spill] sm:$0xff] %v9032_v30  ;;  %s6139_s29 = sshll.u32 %s987_s22, 2 }
  0xca   : > { %11005 = vst [vmem:[#allocation25_spill] sm:$0xff] %v9027_v23  ;;  %6380 = vmatprep.subr.bf16.mxu1 %v9027_v23  ;;  %6372 = vmatprep.subr.bf16.mxu0 %v6371_v18  ;;  %v9034_v33 = vpack.c.bf16 %v803_v28, %v799_v27  ;;  %v802_v34 = vld [vmem:[#allocation11 + $0xa0] sm:$0xff]  ;;  %v797_v36 = vld [vmem:[#allocation11 + $0x78] sm:$0xff]  ;;  %v807_v38 = vld [vmem:[#allocation11 + $0xc8] sm:$0xff]  ;;  %s989_s17 = scalar_lea.vmem [#allocation9], %s6139_s29  ;;  %s2871_s29 = sadd.s32 3, %s9370_s1 }
  0xcb   : > { %11006 = vst [vmem:[#allocation26_spill] sm:$0xff] %v9029_v26  ;;  %v9037_v37 = vpack.c.bf16 %v802_v34, %v798_v29  ;;  %v811_v39 = vld [vmem:[#allocation11 + $0xe8] sm:$0xff]  ;;  %v806_v40 = vld [vmem:[#allocation11 + $0xc0] sm:$0xff]  ;;  %11010 = vst [vmem:[#allocation30_spill] sm:$0xff] %v9043_v43  ;;  %v9048_v46 = vpack.c.bf16 %v797_v36, %v793_v35  ;;  %s9393_s19 = scalar_lea.vmem %s11106_s21, %s6132_s30  ;;  %s2255_s30 = sld [smem:[#allocation3 + %s2254_s2]] }
  0xcc   : > { %11008 = vst [vmem:[#allocation28_spill] sm:$0xff] %v9034_v33  ;;  %v810_v41 = vld [vmem:[#allocation11 + $0xe0] sm:$0xff]  ;;  %v792_v44 = vld [vmem:[#allocation11 + $0x50] sm:$0xff]  ;;  %v9045_v45 = vpack.c.bf16 %v811_v39, %v807_v38  ;;  %v815_v48 = vld [vmem:[#allocation11 + $0x108] sm:$0xff]  ;;  %s2872_s24 = sld [smem:[#allocation3 + %s2871_s29]]  ;;  %s3488_s2 = sadd.s32 4, %s9370_s1 }
  0xcd   : > { %6382 = vmatpush1.bf16.msra.mxu1 %v9029_v26  ;;  %11009 = vst [vmem:[#allocation29_spill] sm:$0xff] %v9037_v37  ;;  %6374 = vmatpush3.bf16.msra.mxu0 %v6371_v18  ;;  %v618_v42 = vld [vmem:[%s10719_s13 + $0x8] sm:$0xff]  ;;  %11012 = vst [vmem:[#allocation32_spill] sm:$0xff] %v9048_v46  ;;  %v796_v47 = vld [vmem:[#allocation11 + $0x70] sm:$0xff]  ;;  %v9051_v52 = vpack.c.bf16 %v810_v41, %v806_v40  ;;  %s4105_s29 = sadd.s32 5, %s9370_s1 }
  0xce   : > { %6384 = vmatprep.subr.bf16.mxu1 %v9034_v33  ;;  %11011 = vst [vmem:[#allocation31_spill] sm:$0xff] %v9045_v45  ;;  %6408 = vmatprep.subr.bf16.mxu0 %v9032_v30  ;;  %v819_v49 = vld [vmem:[#allocation11 + $0x128] sm:$0xff]  ;;  %v801_v50 = vld [vmem:[#allocation11 + $0x98] sm:$0xff]  ;;  %v814_v54 = vld [vmem:[#allocation11 + $0x100] sm:$0xff]  ;;  %v9058_v56 = vpack.c.bf16 %v796_v47, %v792_v44 }
  0xcf   : > { %v805_v51 = vld [vmem:[#allocation11 + $0xb8] sm:$0xff]  ;;  %11013 = vst [vmem:[#allocation33_spill] sm:$0xff] %v9051_v52  ;;  %v9055_v53 = vpack.c.bf16 %v819_v49, %v815_v48  ;;  %v818_v55 = vld [vmem:[#allocation11 + $0x120] sm:$0xff]  ;;  %v823_v57 = vld [vmem:[#allocation11 + $0x148] sm:$0xff] }
  0xd0   : > { %6270 = vmatmul.mubr.msk.f32.vlgmr.msra.gmra.mrb[0].mxu0 %vm651_vm0, %v618_v42  ;;  %11015 = vst [vmem:[#allocation35_spill] sm:$0xff] %v9058_v56  ;;  %v827_v58 = vld [vmem:[#allocation11 + $0x168] sm:$0xff]  ;;  %v9061_v59 = vpack.c.bf16 %v805_v51, %v801_v50  ;;  %v800_v60 = vld [vmem:[#allocation11 + $0x90] sm:$0xff]  ;;  %v809_v62 = vld [vmem:[#allocation11 + $0xd8] sm:$0xff]  ;;  %v9064_v0 = vpack.c.bf16 %v818_v55, %v814_v54 }
  0xd1   : > { %6386 = vmatpush1.bf16.msra.mxu1 %v9037_v37  ;;  %11014 = vst [vmem:[#allocation34_spill] sm:$0xff] %v9055_v53  ;;  %6410 = vmatpush1.bf16.msra.mxu0 %v9043_v43  ;;  %v804_v61 = vld [vmem:[#allocation11 + $0xb0] sm:$0xff]  ;;  %v813_v63 = vld [vmem:[#allocation11 + $0xf8] sm:$0xff]  ;;  %v9067_v2 = vpack.c.bf16 %v827_v58, %v823_v57  ;;  %v822_v3 = vld [vmem:[#allocation11 + $0x140] sm:$0xff] }
  0xd2   : > { %6388 = vmatprep.subr.bf16.mxu1 %v9045_v45  ;;  %6412 = vmatprep.subr.bf16.mxu0 %v9048_v46  ;;  %11016 = vst [vmem:[#allocation36_spill] sm:$0xff] %v9061_v59  ;;  %11017 = vst [vmem:[#allocation37_spill] sm:$0xff] %v9064_v0  ;;  %v826_v4 = vld [vmem:[#allocation11 + $0x160] sm:$0xff]  ;;  %v9070_v5 = vpack.c.bf16 %v804_v61, %v800_v60  ;;  %v808_v6 = vld [vmem:[#allocation11 + $0xd0] sm:$0xff]  ;;  %v9074_v9 = vpack.c.bf16 %v813_v63, %v809_v62 }
  0xd3   : > { %11018 = vst [vmem:[#allocation38_spill] sm:$0xff] %v9067_v2  ;;  %v831_v7 = vld [vmem:[#allocation11 + $0x188] sm:$0xff]  ;;  %v812_v10 = vld [vmem:[#allocation11 + $0xf0] sm:$0xff]  ;;  %v817_v13 = vld [vmem:[#allocation11 + $0x118] sm:$0xff]  ;;  %v9083_v16 = vpack.c.bf16 %v826_v4, %v822_v3 }
  0xd4   : > { %11019 = vst [vmem:[#allocation39_spill] sm:$0xff] %v9070_v5  ;;  %v835_v8 = vld [vmem:[#allocation11 + $0x1a8] sm:$0xff]  ;;  %11020 = vst [vmem:[#allocation40_spill] sm:$0xff] %v9074_v9  ;;  %v620_v12 = vld [vmem:[%s10719_s13 + $0x18] sm:$0xff]  ;;  %v9091_v21 = vpack.c.bf16 %v812_v10, %v808_v6 }
  0xd5   : > { %6390 = vmatpush1.bf16.msra.mxu1 %v9051_v52  ;;  %6414 = vmatpush1.bf16.msra.mxu0 %v9058_v56  ;;  %v619_v11 = vld [vmem:[%s10719_s13 + $0x10] sm:$0xff]  ;;  %v821_v15 = vld [vmem:[#allocation11 + $0x138] sm:$0xff]  ;;  %11021 = vst [vmem:[#allocation41_spill] sm:$0xff] %v9083_v16  ;;  %v9087_v18 = vpack.c.bf16 %v835_v8, %v831_v7  ;;  %v830_v19 = vld [vmem:[#allocation11 + $0x180] sm:$0xff] }
  0xd6   : > { %6392 = vmatprep.subr.bf16.mxu1 %v9055_v53  ;;  %6416 = vmatprep.subr.bf16.mxu0 %v9061_v59  ;;  %v834_v20 = vld [vmem:[#allocation11 + $0x1a0] sm:$0xff]  ;;  %11023 = vst [vmem:[#allocation43_spill] sm:$0xff] %v9091_v21  ;;  %v839_v22 = vld [vmem:[#allocation11 + $0x1c8] sm:$0xff]  ;;  %v9100_v25 = vpack.c.bf16 %v821_v15, %v817_v13  ;;  %v816_v27 = vld [vmem:[#allocation11 + $0x110] sm:$0xff] }
  0xd7   : > { %6272 = vmatprep.mubr.msk.f32.mxu0 %vm651_vm0, %v619_v11  ;;  %11022 = vst [vmem:[#allocation42_spill] sm:$0xff] %v9087_v18  ;;  %v843_v24 = vld [vmem:[#allocation11 + $0x1e8] sm:$0xff]  ;;  %v820_v28 = vld [vmem:[#allocation11 + $0x130] sm:$0xff]  ;;  %v627_v29 = vld [vmem:[%s10720_s14] sm:$0xff]  ;;  %v9106_v34 = vpack.c.bf16 %v834_v20, %v830_v19 }
  0xd8   : > { %6273 = vmatmul.mubr.msk.f32.gmra.mrb[2].mxu0 %vm651_vm0, %v620_v12  ;;  %11024 = vst [vmem:[#allocation44_spill] sm:$0xff] %v9100_v25  ;;  %v825_v31 = vld [vmem:[#allocation11 + $0x158] sm:$0xff]  ;;  %633 = vperm.xlu1 %8094, %v627_v29   ;;  %v9112_v36 = vpack.c.bf16 %v843_v24, %v839_v22  ;;  %v838_v38 = vld [vmem:[#allocation11 + $0x1c0] sm:$0xff]  ;;  %v9118_v41 = vpack.c.bf16 %v820_v28, %v816_v27  ;;  %v629_v42 = vld [vmem:[%s10720_s14 + $0x10] sm:$0xff] }
  0xd9   : > { %6394 = vmatpush1.bf16.msra.mxu1 %v9064_v0  ;;  %6418 = vmatpush1.bf16.msra.mxu0 %v9070_v5  ;;  %v829_v32 = vld [vmem:[#allocation11 + $0x178] sm:$0xff]  ;;  %11025 = vst [vmem:[#allocation45_spill] sm:$0xff] %v9106_v34  ;;  %v842_v39 = vld [vmem:[#allocation11 + $0x1e0] sm:$0xff]  ;;  %v824_v47 = vld [vmem:[#allocation11 + $0x150] sm:$0xff] }
  0xda   : > { %6396 = vmatprep.subr.bf16.mxu1 %v9067_v2  ;;  %1126 = vmatprep.mubr.f32.mxu0 %v10736_v1  ;;  %v749_v35 = vld [vmem:[%s10718_s12] sm:$0xff]  ;;  %11026 = vst [vmem:[#allocation46_spill] sm:$0xff] %v9112_v36  ;;  %v628_v40 = vld [vmem:[%s10720_s14 + $0x8] sm:$0xff]  ;;  %11027 = vst [vmem:[#allocation47_spill] sm:$0xff] %v9118_v41  ;;  %v9125_v44 = vpack.c.bf16 %v829_v32, %v825_v31  ;;  %v9128_v51 = vpack.c.bf16 %v842_v39, %v838_v38 }
  0xdb   : > { %6420 = vmatprep.subr.bf16.mxu0 %v9074_v9  ;;  %755 = vperm.xlu0 %8095, %v749_v35   ;;  %v828_v48 = vld [vmem:[#allocation11 + $0x170] sm:$0xff]  ;;  %v833_v49 = vld [vmem:[#allocation11 + $0x198] sm:$0xff]  ;;  %v750_v54 = vld [vmem:[%s10718_s12 + $0x8] sm:$0xff] }
  0xdc   : > { %11028 = vst [vmem:[#allocation48_spill] sm:$0xff] %v9125_v44  ;;  %v837_v50 = vld [vmem:[#allocation11 + $0x1b8] sm:$0xff]  ;;  %11029 = vst [vmem:[#allocation49_spill] sm:$0xff] %v9128_v51  ;;  %638 = vperm.xlu1 %8094, %v628_v40   ;;  %v9142_v55 = vpack.c.bf16 %v828_v48, %v824_v47  ;;  %v832_v60 = vld [vmem:[#allocation11 + $0x190] sm:$0xff] }
  0xdd   : > { %6398 = vmatpush1.bf16.msra.mxu1 %v9083_v16  ;;  %6422 = vmatpush1.bf16.msra.mxu0 %v9091_v21  ;;  %v630_v57 = vld [vmem:[%s10720_s14 + $0x18] sm:$0xff]  ;;  %v9148_v58 = vpack.c.bf16 %v837_v50, %v833_v49  ;;  %v982_v3 = vld [vmem:[%s9136_s23] sm:$0x1]  ;;  %v911_v15 = vld [vmem:[#allocation14 + $0x8] sm:$0xff] }
  0xde   : > { %6400 = vmatprep.subr.bf16.mxu1 %v9087_v18  ;;  %6424 = vmatprep.subr.bf16.mxu0 %v9100_v25  ;;  %11030 = vst [vmem:[#allocation50_spill] sm:$0xff] %v9142_v55  ;;  %v836_v61 = vld [vmem:[#allocation11 + $0x1b0] sm:$0xff]  ;;  %v841_v62 = vld [vmem:[#allocation11 + $0x1d8] sm:$0xff]  ;;  %v915_v19 = vld [vmem:[#allocation14 + $0x28] sm:$0xff] }
  0xdf   : > { %643 = vperm.xlu0 %8095, %v629_v42   ;;  %11031 = vst [vmem:[#allocation51_spill] sm:$0xff] %v9148_v58  ;;  %v845_v63 = vld [vmem:[#allocation11 + $0x1f8] sm:$0xff]  ;;  %v9153_v4 = vpack.c.bf16 %v836_v61, %v832_v60  ;;  %v840_v7 = vld [vmem:[#allocation11 + $0x1d0] sm:$0xff]  ;;  %v9168_v22 = vpack.c.bf16 %v915_v19, %v911_v15  ;;  %v910_v27 = vld [vmem:[#allocation14] sm:$0xff] }
  0xe0   : > { %760 = vperm.xlu1 %8094, %v750_v54   ;;  %v9156_v6 = vpack.c.bf16 %v845_v63, %v841_v62  ;;  %v844_v8 = vld [vmem:[#allocation11 + $0x1f0] sm:$0xff]  ;;  %v913_v11 = vld [vmem:[#allocation14 + $0x18] sm:$0xff]  ;;  %v914_v28 = vld [vmem:[#allocation14 + $0x20] sm:$0xff] }
  0xe1   : > { %6402 = vmatpush1.bf16.msra.mxu1 %v9106_v34  ;;  %6426 = vmatpush1.bf16.msra.mxu0 %v9118_v41  ;;  %11032 = vst [vmem:[#allocation52_spill] sm:$0xff] %v9153_v4  ;;  %v9160_v10 = vpack.c.bf16 %v844_v8, %v840_v7  ;;  %v917_v12 = vld [vmem:[#allocation14 + $0x38] sm:$0xff]  ;;  %v912_v20 = vld [vmem:[#allocation14 + $0x10] sm:$0xff]  ;;  %11036 = vst [vmem:[#allocation56_spill] sm:$0xff] %v9168_v22  ;;  %v9172_v31 = vpack.c.bf16 %v914_v28, %v910_v27 }
  0xe2   : > { %6404 = vmatprep.subr.bf16.mxu1 %v9112_v36  ;;  %6428 = vmatprep.subr.bf16.mxu0 %v9125_v44  ;;  %11033 = vst [vmem:[#allocation53_spill] sm:$0xff] %v9156_v6  ;;  %v9165_v13 = vpack.c.bf16 %v917_v12, %v913_v11  ;;  %v916_v24 = vld [vmem:[#allocation14 + $0x30] sm:$0xff]  ;;  %v921_v32 = vld [vmem:[#allocation14 + $0x58] sm:$0xff]  ;;  %v919_v39 = vld [vmem:[#allocation14 + $0x48] sm:$0xff] }
  0xe3   : > { %648 = vperm.xlu0 %8095, %v630_v57   ;;  %11034 = vst [vmem:[#allocation54_spill] sm:$0xff] %v9160_v10  ;;  %v9170_v29 = vpack.c.bf16 %v916_v24, %v912_v20  ;;  %11038 = vst [vmem:[#allocation58_spill] sm:$0xff] %v9172_v31  ;;  %v925_v35 = vld [vmem:[#allocation14 + $0x78] sm:$0xff]  ;;  %v923_v40 = vld [vmem:[#allocation14 + $0x68] sm:$0xff] }
  0xe4   : > { %11035 = vst [vmem:[#allocation55_spill] sm:$0xff] %v9165_v13  ;;  %v9175_v38 = vpack.c.bf16 %v925_v35, %v921_v32  ;;  %v920_v42 = vld [vmem:[#allocation14 + $0x50] sm:$0xff]  ;;  %v9180_v47 = vpack.c.bf16 %v923_v40, %v919_v39  ;;  %v918_v50 = vld [vmem:[#allocation14 + $0x40] sm:$0xff]  ;;  %v929_v60 = vld [vmem:[#allocation14 + $0x98] sm:$0xff] }
  0xe5   : > { %6406 = vmatpush1.bf16.msra.mxu1 %v9128_v51  ;;  %6430 = vmatpush1.bf16.msra.mxu0 %v9142_v55  ;;  %11037 = vst [vmem:[#allocation57_spill] sm:$0xff] %v9170_v29  ;;  %v924_v48 = vld [vmem:[#allocation14 + $0x70] sm:$0xff]  ;;  %v922_v54 = vld [vmem:[#allocation14 + $0x60] sm:$0xff]  ;;  %v933_v61 = vld [vmem:[#allocation14 + $0xb8] sm:$0xff] }
  0xe6   : > { %6432 = vmatprep.subr.bf16.mxu0 %v9148_v58  ;;  %6440 = vmatprep.subr.bf16.mxu1 %v9168_v22  ;;  %11039 = vst [vmem:[#allocation59_spill] sm:$0xff] %v9175_v38  ;;  %11040 = vst [vmem:[#allocation60_spill] sm:$0xff] %v9180_v47  ;;  %v9182_v49 = vpack.c.bf16 %v924_v48, %v920_v42  ;;  %v9186_v57 = vpack.c.bf16 %v922_v54, %v918_v50  ;;  %v927_v63 = vld [vmem:[#allocation14 + $0x88] sm:$0xff]  ;;  %v928_v7 = vld [vmem:[#allocation14 + $0x90] sm:$0xff] }
  0xe7   : > { %v9189_v62 = vpack.c.bf16 %v933_v61, %v929_v60  ;;  %v932_v11 = vld [vmem:[#allocation14 + $0xb0] sm:$0xff]  ;;  %v926_v12 = vld [vmem:[#allocation14 + $0x80] sm:$0xff]  ;;  %v937_v24 = vld [vmem:[#allocation14 + $0xd8] sm:$0xff] }
  0xe8   : > { %1056 = vmatmul.mubr.f32.vlgmr.msra.gmra.mrb[0].mxu1 %v982_v3  ;;  %11041 = vst [vmem:[#allocation61_spill] sm:$0xff] %v9182_v49  ;;  %11042 = vst [vmem:[#allocation62_spill] sm:$0xff] %v9186_v57  ;;  %v930_v15 = vld [vmem:[#allocation14 + $0xa0] sm:$0xff]  ;;  %v9194_v19 = vpack.c.bf16 %v932_v11, %v928_v7  ;;  %v941_v27 = vld [vmem:[#allocation14 + $0xf8] sm:$0xff] }
  0xe9   : > { %1259 = vmatprep.mubr.f32.mxu1 %v10736_v1  ;;  %6434 = vmatpush1.bf16.msra.mxu0 %v9153_v4  ;;  %11043 = vst [vmem:[#allocation63_spill] sm:$0xff] %v9189_v62  ;;  %v9196_v20 = vpack.c.bf16 %v930_v15, %v926_v12  ;;  %v9201_v28 = vpack.c.bf16 %v941_v27, %v937_v24  ;;  %v935_v32 = vld [vmem:[#allocation14 + $0xc8] sm:$0xff]  ;;  %v936_v39 = vld [vmem:[#allocation14 + $0xd0] sm:$0xff]  ;;  %v934_v48 = vld [vmem:[#allocation14 + $0xc0] sm:$0xff] }
  0xea   : > { %6436 = vmatprep.subr.bf16.mxu0 %v9156_v6  ;;  %6442 = vmatpush1.bf16.msra.mxu1 %v9172_v31  ;;  %11045 = vst [vmem:[#allocation65_spill] sm:$0xff] %v9194_v19  ;;  %v939_v35 = vld [vmem:[#allocation14 + $0xe8] sm:$0xff]  ;;  %v940_v42 = vld [vmem:[#allocation14 + $0xf0] sm:$0xff]  ;;  %v938_v50 = vld [vmem:[#allocation14 + $0xe0] sm:$0xff] }
  0xeb   : > { %6444 = vmatprep.subr.bf16.mxu1 %v9180_v47  ;;  %11046 = vst [vmem:[#allocation66_spill] sm:$0xff] %v9196_v20  ;;  %11047 = vst [vmem:[#allocation67_spill] sm:$0xff] %v9201_v28  ;;  %v9203_v40 = vpack.c.bf16 %v939_v35, %v935_v32  ;;  %v9206_v54 = vpack.c.bf16 %v940_v42, %v936_v39  ;;  %v9208_v60 = vpack.c.bf16 %v938_v50, %v934_v48  ;;  %v945_v61 = vld [vmem:[#allocation14 + $0x118] sm:$0xff]  ;;  %v943_v7 = vld [vmem:[#allocation14 + $0x108] sm:$0xff] }
  0xec   : > { %v947_v11 = vld [vmem:[#allocation14 + $0x128] sm:$0xff]  ;;  %v944_v15 = vld [vmem:[#allocation14 + $0x110] sm:$0xff]  ;;  %v942_v27 = vld [vmem:[#allocation14 + $0x100] sm:$0xff] }
  0xed   : > { %6438 = vmatpush1.bf16.msra.mxu0 %v9160_v10  ;;  %11048 = vst [vmem:[#allocation68_spill] sm:$0xff] %v9203_v40  ;;  %11049 = vst [vmem:[#allocation69_spill] sm:$0xff] %v9206_v54  ;;  %v9215_v12 = vpack.c.bf16 %v947_v11, %v943_v7  ;;  %v948_v24 = vld [vmem:[#allocation14 + $0x130] sm:$0xff]  ;;  %v946_v35 = vld [vmem:[#allocation14 + $0x120] sm:$0xff] }
  0xee   : > { %6472 = vmatprep.subr.bf16.mxu0 %v9165_v13  ;;  %6446 = vmatpush1.bf16.msra.mxu1 %v9186_v57  ;;  %11050 = vst [vmem:[#allocation70_spill] sm:$0xff] %v9208_v60  ;;  %v9218_v32 = vpack.c.bf16 %v948_v24, %v944_v15  ;;  %v9221_v39 = vpack.c.bf16 %v946_v35, %v942_v27  ;;  %v953_v42 = vld [vmem:[#allocation14 + $0x158] sm:$0xff]  ;;  %v952_v7 = vld [vmem:[#allocation14 + $0x150] sm:$0xff]  ;;  %v950_v24 = vld [vmem:[#allocation14 + $0x140] sm:$0xff] }
  0xef   : > { %11052 = vst [vmem:[#allocation72_spill] sm:$0xff] %v9215_v12  ;;  %v957_v48 = vld [vmem:[#allocation14 + $0x178] sm:$0xff]  ;;  %v956_v15 = vld [vmem:[#allocation14 + $0x170] sm:$0xff]  ;;  %v850_v47 = vld [vmem:[#allocation12 + $0x20] sm:$0xff] }
  0xf0   : > { %1127 = vmatmul.mubr.f32.vlgmr.msra.gmra.mrb[4].mxu0 %v982_v3  ;;  %v931_v3 = vld [vmem:[#allocation14 + $0xa8] sm:$0xff]  ;;  %11053 = vst [vmem:[#allocation73_spill] sm:$0xff] %v9218_v32  ;;  %11054 = vst [vmem:[#allocation74_spill] sm:$0xff] %v9221_v39  ;;  %v9224_v50 = vpack.c.bf16 %v957_v48, %v953_v42  ;;  %v9230_v27 = vpack.c.bf16 %v956_v15, %v952_v7  ;;  %v961_v42 = vld [vmem:[#allocation14 + $0x198] sm:$0xff] }
  0xf1   : > { %1330 = vmatprep.mubr.f32.mxu0 %v10736_v1  ;;  %6474 = vmatpush1.bf16.msra.mxu0 %v9170_v29  ;;  %v9191_v8 = vpack.c.bf16 %v931_v3, %v927_v63  ;;  %v949_v63 = vld [vmem:[#allocation14 + $0x138] sm:$0xff]  ;;  %v954_v1 = vld [vmem:[#allocation14 + $0x160] sm:$0xff]  ;;  %v856_v31 = vld [vmem:[#allocation12 + $0x50] sm:$0xff] }
  0xf2   : > { %6476 = vmatprep.subr.bf16.mxu0 %v9175_v38  ;;  %v9213_v3 = vpack.c.bf16 %v949_v63, %v945_v61  ;;  %11055 = vst [vmem:[#allocation75_spill] sm:$0xff] %v9224_v50  ;;  %v951_v61 = vld [vmem:[#allocation14 + $0x148] sm:$0xff]  ;;  %11057 = vst [vmem:[#allocation77_spill] sm:$0xff] %v9230_v27  ;;  %v9232_v35 = vpack.c.bf16 %v954_v1, %v950_v24  ;;  %v965_v48 = vld [vmem:[#allocation14 + $0x1b8] sm:$0xff] }
  0xf3   : > { %11044 = vst [vmem:[#allocation64_spill] sm:$0xff] %v9191_v8  ;;  %6448 = vmatprep.subr.bf16.mxu1 %v9191_v8  ;;  %v955_v63 = vld [vmem:[#allocation14 + $0x168] sm:$0xff]  ;;  %v958_v7 = vld [vmem:[#allocation14 + $0x180] sm:$0xff]  ;;  %v972_v8 = vld [vmem:[#allocation14 + $0x1f0] sm:$0xff] }
  0xf4   : > { %6450 = vmatpush1.bf16.msra.mxu1 %v9196_v20  ;;  %11051 = vst [vmem:[#allocation71_spill] sm:$0xff] %v9213_v3  ;;  %v9227_v11 = vpack.c.bf16 %v955_v63, %v951_v61  ;;  %11058 = vst [vmem:[#allocation78_spill] sm:$0xff] %v9232_v35  ;;  %v963_v61 = vld [vmem:[#allocation14 + $0x1a8] sm:$0xff]  ;;  %v960_v63 = vld [vmem:[#allocation14 + $0x190] sm:$0xff] }
  0xf5   : > { %6478 = vmatpush1.bf16.msra.mxu0 %v9182_v49  ;;  %6452 = vmatprep.subr.bf16.mxu1 %v9203_v40  ;;  %v964_v40 = vld [vmem:[#allocation14 + $0x1b0] sm:$0xff]  ;;  %v962_v15 = vld [vmem:[#allocation14 + $0x1a0] sm:$0xff]  ;;  %v881_v0 = vld [vmem:[#allocation12 + $0x118] sm:$0xff] }
  0xf6   : > { %6480 = vmatprep.subr.bf16.mxu0 %v9189_v62  ;;  %11056 = vst [vmem:[#allocation76_spill] sm:$0xff] %v9227_v11  ;;  %v9242_v1 = vpack.c.bf16 %v964_v40, %v960_v63  ;;  %v9244_v24 = vpack.c.bf16 %v962_v15, %v958_v7  ;;  %v966_v40 = vld [vmem:[#allocation14 + $0x1c0] sm:$0xff]  ;;  %v868_v36 = vld [vmem:[#allocation12 + $0xb0] sm:$0xff]  ;;  %v885_v53 = vld [vmem:[#allocation12 + $0x138] sm:$0xff] }
  0xf7   : > { %v970_v63 = vld [vmem:[#allocation14 + $0x1e0] sm:$0xff]  ;;  %v887_v37 = vld [vmem:[#allocation12 + $0x148] sm:$0xff]  ;;  %v897_v26 = vld [vmem:[#allocation12 + $0x198] sm:$0xff] }
  0xf8   : > { %6454 = vmatpush1.bf16.msra.mxu1 %v9208_v60  ;;  %11061 = vst [vmem:[#allocation81_spill] sm:$0xff] %v9242_v1  ;;  %11062 = vst [vmem:[#allocation82_spill] sm:$0xff] %v9244_v24  ;;  %v9256_v15 = vpack.c.bf16 %v970_v63, %v966_v40  ;;  %v984_v40 = vld [vmem:[%s9136_s23 + $0x1] sm:$0x1]  ;;  %v874_v2 = vld [vmem:[#allocation12 + $0xe0] sm:$0xff]  ;;  %s1637_s23 = sadd.s32 1, %s9370_s1 }
  0xf9   : > { %6482 = vmatpush1.bf16.msra.mxu0 %v9194_v19  ;;  %6456 = vmatprep.subr.bf16.mxu1 %v9215_v12  ;;  %v9236_v12 = vpack.c.bf16 %v965_v48, %v961_v42  ;;  %v969_v42 = vld [vmem:[#allocation14 + $0x1d8] sm:$0xff]  ;;  %v882_v45 = vld [vmem:[#allocation12 + $0x120] sm:$0xff]  ;;  %v891_v33 = vld [vmem:[#allocation12 + $0x168] sm:$0xff]  ;;  %s1638_s28 = sld [smem:[#allocation3 + %s1637_s23]]  ;;  %s6163_s23 = sshll.u32 %s2872_s24, 2 }
  0xfa   : > { %6484 = vmatprep.subr.bf16.mxu0 %v9201_v28  ;;  %v973_v48 = vld [vmem:[#allocation14 + $0x1f8] sm:$0xff]  ;;  %11066 = vst [vmem:[#allocation86_spill] sm:$0xff] %v9256_v15  ;;  %s4106_s24 = sld [smem:[#allocation3 + %s4105_s29]]  ;;  %s5339_s29 = sadd.s32 7, %s9370_s1 }
  0xfb   : > { %11059 = vst [vmem:[#allocation79_spill] sm:$0xff] %v9236_v12  ;;  %v901_v23 = vld [vmem:[#allocation12 + $0x1b8] sm:$0xff] }
  0xfc   : > { %6458 = vmatpush1.bf16.msra.mxu1 %v9221_v39  ;;  %v959_v39 = vld [vmem:[#allocation14 + $0x188] sm:$0xff]  ;;  %v905_v17 = vld [vmem:[#allocation12 + $0x1d8] sm:$0xff] }
  0xfd   : > { %6486 = vmatpush1.bf16.msra.mxu0 %v9206_v54  ;;  %6460 = vmatprep.subr.bf16.mxu1 %v9227_v11  ;;  %v9239_v60 = vpack.c.bf16 %v963_v61, %v959_v39  ;;  %v9248_v11 = vpack.c.bf16 %v973_v48, %v969_v42  ;;  %v971_v39 = vld [vmem:[#allocation14 + $0x1e8] sm:$0xff]  ;;  %v968_v61 = vld [vmem:[#allocation14 + $0x1d0] sm:$0xff]  ;;  %v849_v42 = vld [vmem:[#allocation12 + $0x18] sm:$0xff] }
  0xfe   : > { %6488 = vmatprep.subr.bf16.mxu0 %v9213_v3  ;;  %v9254_v7 = vpack.c.bf16 %v972_v8, %v968_v61  ;;  %v853_v48 = vld [vmem:[#allocation12 + $0x38] sm:$0xff]  ;;  %v852_v8 = vld [vmem:[#allocation12 + $0x30] sm:$0xff]  ;;  %v846_v61 = vld [vmem:[#allocation12] sm:$0xff] }
  0xff   : > { %11060 = vst [vmem:[#allocation80_spill] sm:$0xff] %v9239_v60  ;;  %11063 = vst [vmem:[#allocation83_spill] sm:$0xff] %v9248_v11  ;;  %v909_v14 = vld [vmem:[#allocation12 + $0x1f8] sm:$0xff]  ;;  %s6147_s21 = sshll.u32 %s1638_s28, 2  ;;  %s2874_s28 = scalar_lea.vmem [#allocation9], %s6163_s23 }
 0x100   : > { %6462 = vmatpush1.bf16.msra.mxu1 %v9232_v35  ;;  %v967_v35 = vld [vmem:[#allocation14 + $0x1c8] sm:$0xff]  ;;  %11065 = vst [vmem:[#allocation85_spill] sm:$0xff] %v9254_v7  ;;  %s6179_s23 = sshll.u32 %s4106_s24, 2  ;;  %s5340_s24 = sld [smem:[#allocation3 + %s5339_s29]] }
 0x101   : > { %6490 = vmatpush1.bf16.msra.mxu0 %v9218_v32  ;;  %6464 = vmatprep.subr.bf16.mxu1 %v9239_v60  ;;  %v9251_v20 = vpack.c.bf16 %v971_v39, %v967_v35  ;;  %v9260_v60 = vpack.c.bf16 %v853_v48, %v849_v42  ;;  %v847_v35 = vld [vmem:[#allocation12 + $0x8] sm:$0xff]  ;;  %v857_v42 = vld [vmem:[#allocation12 + $0x58] sm:$0xff] }
 0x102   : > { %6492 = vmatprep.subr.bf16.mxu0 %v9224_v50  ;;  %v851_v39 = vld [vmem:[#allocation12 + $0x28] sm:$0xff]  ;;  %v861_v48 = vld [vmem:[#allocation12 + $0x78] sm:$0xff] }
 0x103   : > { %11064 = vst [vmem:[#allocation84_spill] sm:$0xff] %v9251_v20  ;;  %11067 = vst [vmem:[#allocation87_spill] sm:$0xff] %v9260_v60  ;;  %v9263_v57 = vpack.c.bf16 %v851_v39, %v847_v35  ;;  %v9273_v35 = vpack.c.bf16 %v861_v48, %v857_v42  ;;  %v855_v39 = vld [vmem:[#allocation12 + $0x48] sm:$0xff]  ;;  %v869_v42 = vld [vmem:[#allocation12 + $0xb8] sm:$0xff] }
 0x104   : > { %6466 = vmatpush1.bf16.msra.mxu1 %v9244_v24  ;;  %v848_v24 = vld [vmem:[#allocation12 + $0x10] sm:$0xff]  ;;  %v863_v48 = vld [vmem:[#allocation12 + $0x88] sm:$0xff] }
 0x105   : > { %6494 = vmatpush1.bf16.msra.mxu0 %v9230_v27  ;;  %6468 = vmatprep.subr.bf16.mxu1 %v9251_v20  ;;  %11068 = vst [vmem:[#allocation88_spill] sm:$0xff] %v9263_v57  ;;  %v9267_v63 = vpack.c.bf16 %v852_v8, %v848_v24  ;;  %v9269_v20 = vpack.c.bf16 %v850_v47, %v846_v61  ;;  %11071 = vst [vmem:[#allocation91_spill] sm:$0xff] %v9273_v35  ;;  %v860_v24 = vld [vmem:[#allocation12 + $0x70] sm:$0xff]  ;;  %v854_v47 = vld [vmem:[#allocation12 + $0x40] sm:$0xff]  ;;  %v11073_v61 = vmov 0.0  }
 0x106   : > { %6496 = vmatprep.subr.bf16.mxu0 %v9236_v12  ;;  %v858_v8 = vld [vmem:[#allocation12 + $0x60] sm:$0xff] }
 0x107   : > { %11069 = vst [vmem:[#allocation89_spill] sm:$0xff] %v9267_v63  ;;  %11070 = vst [vmem:[#allocation90_spill] sm:$0xff] %v9269_v20  ;;  %v9282_v51 = vpack.c.bf16 %v858_v8, %v854_v47  ;;  %v866_v47 = vld [vmem:[#allocation12 + $0xa0] sm:$0xff]  ;;  %v873_v8 = vld [vmem:[#allocation12 + $0xd8] sm:$0xff] }
 0x108   : > { %6470 = vmatpush1.bf16.msra.mxu1 %v9256_v15  ;;  %v859_v15 = vld [vmem:[#allocation12 + $0x68] sm:$0xff] }
 0x109   : > { %6498 = vmatpush1.bf16.msra.mxu0 %v9242_v1  ;;  %6504 = vmatprep.subr.bf16.mxu1 %v9263_v57  ;;  %v9276_v22 = vpack.c.bf16 %v859_v15, %v855_v39  ;;  %v9280_v57 = vpack.c.bf16 %v860_v24, %v856_v31  ;;  %11075 = vst [vmem:[#allocation94_spill] sm:$0xff] %v9282_v51  ;;  %v867_v39 = vld [vmem:[#allocation12 + $0xa8] sm:$0xff]  ;;  %v862_v24 = vld [vmem:[#allocation12 + $0x80] sm:$0xff] }
 0x10a   : > { %6500 = vmatprep.subr.bf16.mxu0 %v9248_v11  ;;  %v9289_v34 = vpack.c.bf16 %v867_v39, %v863_v48  ;;  %v9295_v18 = vpack.c.bf16 %v866_v47, %v862_v24  ;;  %v870_v39 = vld [vmem:[#allocation12 + $0xc0] sm:$0xff]  ;;  %v879_v24 = vld [vmem:[#allocation12 + $0x108] sm:$0xff] }
 0x10b   : > { %1260 = vmatmul.mubr.f32.vlgmr.msra.gmra.mrb[2].mxu1 %v984_v40  ;;  %11072 = vst [vmem:[#allocation92_spill] sm:$0xff] %v9276_v22  ;;  %11074 = vst [vmem:[#allocation93_spill] sm:$0xff] %v9280_v57  ;;  %v883_v47 = vld [vmem:[#allocation12 + $0x128] sm:$0xff] }
 0x10c   : > { %6506 = vmatpush1.bf16.msra.mxu1 %v9269_v20  ;;  %1401 = vmatprep.mubr.f32.mxu1 %v11073_v61  ;;  %v864_v20 = vld [vmem:[#allocation12 + $0x90] sm:$0xff]  ;;  %11077 = vst [vmem:[#allocation96_spill] sm:$0xff] %v9289_v34  ;;  %11079 = vst [vmem:[#allocation98_spill] sm:$0xff] %v9295_v18  ;;  %v9312_v52 = vpack.c.bf16 %v883_v47, %v879_v24  ;;  %v886_v24 = vld [vmem:[#allocation12 + $0x140] sm:$0xff]  ;;  %v9324_v47 = vpack.c.bf16 %v891_v33, %v887_v37 }
 0x10d   : > { %6502 = vmatpush1.bf16.msra.mxu0 %v9254_v7  ;;  %6508 = vmatprep.subr.bf16.mxu1 %v9276_v22  ;;  %v9291_v31 = vpack.c.bf16 %v868_v36, %v864_v20  ;;  %v875_v22 = vld [vmem:[#allocation12 + $0xe8] sm:$0xff]  ;;  %v872_v36 = vld [vmem:[#allocation12 + $0xd0] sm:$0xff]  ;;  %v894_v37 = vld [vmem:[#allocation12 + $0x180] sm:$0xff] }
 0x10e   : > { %6536 = vmatprep.subr.bf16.mxu0 %v9260_v60  ;;  %v876_v20 = vld [vmem:[#allocation12 + $0xf0] sm:$0xff]  ;;  %11085 = vst [vmem:[#allocation104_spill] sm:$0xff] %v9312_v52  ;;  %11089 = vst [vmem:[#allocation108_spill] sm:$0xff] %v9324_v47 }
 0x10f   : > { %11078 = vst [vmem:[#allocation97_spill] sm:$0xff] %v9291_v31  ;;  %v900_v33 = vld [vmem:[#allocation12 + $0x1b0] sm:$0xff] }
 0x110   : > { %1331 = vmatmul.mubr.f32.vlgmr.msra.gmra.mrb[6].mxu0 %v984_v40  ;;  %v865_v40 = vld [vmem:[#allocation12 + $0x98] sm:$0xff]  ;;  %6510 = vmatpush1.bf16.msra.mxu1 %v9282_v51  ;;  %v9303_v51 = vpack.c.bf16 %v876_v20, %v872_v36 }
 0x111   : > { %6538 = vmatpush1.bf16.msra.mxu0 %v9267_v63  ;;  %1472 = vmatprep.mubr.f32.mxu0 %v11073_v61  ;;  %v9286_v15 = vpack.c.bf16 %v869_v42, %v865_v40  ;;  %v877_v40 = vld [vmem:[#allocation12 + $0xf8] sm:$0xff]  ;;  %v871_v42 = vld [vmem:[#allocation12 + $0xc8] sm:$0xff] }
 0x112   : > { %6540 = vmatprep.subr.bf16.mxu0 %v9273_v35  ;;  %6512 = vmatprep.subr.bf16.mxu1 %v9289_v34  ;;  %v9298_v16 = vpack.c.bf16 %v877_v40, %v873_v8  ;;  %v9300_v48 = vpack.c.bf16 %v875_v22, %v871_v42  ;;  %11082 = vst [vmem:[#allocation101_spill] sm:$0xff] %v9303_v51  ;;  %v880_v40 = vld [vmem:[#allocation12 + $0x110] sm:$0xff]  ;;  %v878_v34 = vld [vmem:[#allocation12 + $0x100] sm:$0xff]  ;;  %v889_v36 = vld [vmem:[#allocation12 + $0x158] sm:$0xff] }
 0x113   : > { %11076 = vst [vmem:[#allocation95_spill] sm:$0xff] %v9286_v15  ;;  %v9307_v8 = vpack.c.bf16 %v874_v2, %v870_v39  ;;  %v9309_v22 = vpack.c.bf16 %v885_v53, %v881_v0  ;;  %v884_v42 = vld [vmem:[#allocation12 + $0x130] sm:$0xff]  ;;  %v893_v20 = vld [vmem:[#allocation12 + $0x178] sm:$0xff]  ;;  %v9319_v53 = vpack.c.bf16 %v882_v45, %v878_v34  ;;  %v9333_v34 = vpack.c.bf16 %v901_v23, %v897_v26 }
 0x114   : > { %11080 = vst [vmem:[#allocation99_spill] sm:$0xff] %v9298_v16  ;;  %11081 = vst [vmem:[#allocation100_spill] sm:$0xff] %v9300_v48  ;;  %6514 = vmatpush1.bf16.msra.mxu1 %v9295_v18  ;;  %v9315_v18 = vpack.c.bf16 %v884_v42, %v880_v40  ;;  %v9321_v0 = vpack.c.bf16 %v893_v20, %v889_v36  ;;  %v888_v2 = vld [vmem:[#allocation12 + $0x150] sm:$0xff]  ;;  %v895_v40 = vld [vmem:[#allocation12 + $0x188] sm:$0xff]  ;;  %v9345_v26 = vpack.c.bf16 %v909_v14, %v905_v17 }
 0x115   : > { %6542 = vmatpush1.bf16.msra.mxu0 %v9280_v57  ;;  %11083 = vst [vmem:[#allocation102_spill] sm:$0xff] %v9307_v8  ;;  %11084 = vst [vmem:[#allocation103_spill] sm:$0xff] %v9309_v22  ;;  %6516 = vmatprep.subr.bf16.mxu1 %v9300_v48  ;;  %v892_v39 = vld [vmem:[#allocation12 + $0x170] sm:$0xff]  ;;  %v890_v48 = vld [vmem:[#allocation12 + $0x160] sm:$0xff] }
 0x116   : > { %6544 = vmatprep.subr.bf16.mxu0 %v9286_v15  ;;  %11086 = vst [vmem:[#allocation105_spill] sm:$0xff] %v9315_v18  ;;  %11087 = vst [vmem:[#allocation106_spill] sm:$0xff] %v9319_v53  ;;  %v899_v42 = vld [vmem:[#allocation12 + $0x1a8] sm:$0xff]  ;;  %v9331_v45 = vpack.c.bf16 %v890_v48, %v886_v24  ;;  %v896_v36 = vld [vmem:[#allocation12 + $0x190] sm:$0xff] }
 0x117   : > { %11088 = vst [vmem:[#allocation107_spill] sm:$0xff] %v9321_v0  ;;  %11092 = vst [vmem:[#allocation111_spill] sm:$0xff] %v9333_v34  ;;  %v9336_v20 = vpack.c.bf16 %v899_v42, %v895_v40  ;;  %v904_v48 = vld [vmem:[#allocation12 + $0x1d0] sm:$0xff]  ;;  %v902_v42 = vld [vmem:[#allocation12 + $0x1c0] sm:$0xff] }
 0x118   : > { %6518 = vmatpush1.bf16.msra.mxu1 %v9307_v8  ;;  %v9327_v8 = vpack.c.bf16 %v892_v39, %v888_v2  ;;  %11091 = vst [vmem:[#allocation110_spill] sm:$0xff] %v9331_v45  ;;  %v903_v2 = vld [vmem:[#allocation12 + $0x1c8] sm:$0xff]  ;;  %11096 = vst [vmem:[#allocation115_spill] sm:$0xff] %v9345_v26  ;;  %v908_v24 = vld [vmem:[#allocation12 + $0x1f0] sm:$0xff] }
 0x119   : > { %6546 = vmatpush1.bf16.msra.mxu0 %v9291_v31  ;;  %6520 = vmatprep.subr.bf16.mxu1 %v9312_v52  ;;  %11093 = vst [vmem:[#allocation112_spill] sm:$0xff] %v9336_v20  ;;  %v898_v52 = vld [vmem:[#allocation12 + $0x1a0] sm:$0xff]  ;;  %v907_v39 = vld [vmem:[#allocation12 + $0x1e8] sm:$0xff] }
 0x11a   : > { %6548 = vmatprep.subr.bf16.mxu0 %v9298_v16  ;;  %11090 = vst [vmem:[#allocation109_spill] sm:$0xff] %v9327_v8  ;;  %v9343_v23 = vpack.c.bf16 %v898_v52, %v894_v37  ;;  %v9348_v40 = vpack.c.bf16 %v907_v39, %v903_v2  ;;  %v10836_v39 = vlaneseq }
 0x11c   : > { %6522 = vmatpush1.bf16.msra.mxu1 %v9319_v53  ;;  %v9339_v53 = vpack.c.bf16 %v900_v33, %v896_v36  ;;  %11095 = vst [vmem:[#allocation114_spill] sm:$0xff] %v9343_v23  ;;  %11097 = vst [vmem:[#allocation116_spill] sm:$0xff] %v9348_v40  ;;  %v9351_v36 = vpack.c.bf16 %v908_v24, %v904_v48 }
 0x11d   : > { %6550 = vmatpush1.bf16.msra.mxu0 %v9303_v51  ;;  %6524 = vmatprep.subr.bf16.mxu1 %v9324_v47  ;;  %v906_v47 = vld [vmem:[#allocation12 + $0x1e0] sm:$0xff] }
 0x11e   : > { %6552 = vmatprep.subr.bf16.mxu0 %v9309_v22  ;;  %11094 = vst [vmem:[#allocation113_spill] sm:$0xff] %v9339_v53  ;;  %11098 = vst [vmem:[#allocation117_spill] sm:$0xff] %v9351_v36  ;;  %v9355_v52 = vpack.c.bf16 %v906_v47, %v902_v42  ;;  %v8685_v47 = vmov 1966171168  }
 0x11f   : > { %v1140_v48 = vunpack.c.l.s4 %v8685_v47 }
 0x120   : > { %6526 = vmatpush1.bf16.msra.mxu1 %v9331_v45  ;;  %11099 = vst [vmem:[#allocation118_spill] sm:$0xff] %v9355_v52 }
 0x121   : > { %6554 = vmatpush1.bf16.msra.mxu0 %v9315_v18  ;;  %6528 = vmatprep.subr.bf16.mxu1 %v9336_v20 }
 0x122   : > { %6556 = vmatprep.subr.bf16.mxu0 %v9321_v0 }
 0x124   : > { %6530 = vmatpush1.bf16.msra.mxu1 %v9343_v23 }
 0x125   : > { %6558 = vmatpush1.bf16.msra.mxu0 %v9327_v8  ;;  %6532 = vmatprep.subr.bf16.mxu1 %v9348_v40 }
 0x126   : > { %6560 = vmatprep.subr.bf16.mxu0 %v9333_v34 }
 0x128   : > { %6534 = vmatpush1.bf16.msra.mxu1 %v9355_v52  ;;  %v1141_v52 = vunpack.c.0.s8 %v1140_v48  ;;  %v9385_v48 = vld [vmem:[%s11105_s20] sm:$0xf] }
 0x129   : > { %6562 = vmatpush1.bf16.msra.mxu0 %v9339_v53 }
 0x12a   : > { %6564 = vmatprep.subr.bf16.mxu0 %v9345_v26 }
 0x12d   : > { %6566 = vmatpush1.bf16.msra.mxu0 %v9351_v36 }
 0x12e   : > { %6606 = vmatprep.subr.bf16.mxu0 %v9032_v30  ;;  %v9374_v30 = vshrl.u32 %v10836_v39, 7 }
 0x130   : > { %v9377_v40 = vsub.s32 %v1141_v52, %v9374_v30 }
 0x132   : > { %11104 = vst [vmem:[#allocation123_spill] sm:$0xff] %v9377_v40 }
 0x1a3   : > { %v9361_v14 = vpop.f32.mrb[0].mxu0 }
 0x1a4   : > { %11100 = vst [vmem:[#allocation119_spill] sm:$0xff] %v9361_v14  ;;  %v9363_v17 = vpop.f32.mrb[1].mxu0  ;;  %v990_v14 = vld [vmem:[%s989_s17] sm:$0xf]  ;;  %s11109_s17 = sld [smem:[#allocation135_spill]] }
 0x1a5   : > { %11101 = vst [vmem:[#allocation120_spill] sm:$0xff] %v9363_v17 }
 0x1ab   : > { %v9365_v33 = vpop.f32.mrb[2].mxu0 }
 0x1ac   : > { %11102 = vst [vmem:[#allocation121_spill] sm:$0xff] %v9365_v33  ;;  %v9367_v37 = vpop.f32.mrb[3].mxu0 }
 0x1ad   : > { %11103 = vst [vmem:[#allocation122_spill] sm:$0xff] %v9367_v37 }
 0x1bb   : > { %v1057_v2 = vpop.f32.mrb[0].mxu1 }
 0x1bc   : > { %v1059_v24 = vpop.f32.mrb[1].mxu1 }
 0x1bd   : > { %v1137_v42 = vcombine.low %v1057_v2, %v1059_v24 }
 0x1bf   : > { %v1145_v45 = vrot.slane %v1137_v42, %v9377_v40 }
 0x1c3   : > { %v1128_v23 = vpop.f32.mrb[4].mxu0 }
 0x1c4   : > { %v1130_v20 = vpop.f32.mrb[5].mxu0 }
 0x1c5   : > { %v1138_v33 = vcombine.low %v1128_v23, %v1130_v20 }
 0x1c7   : > { %v1152_v47 = vrot.slane %v1138_v33, %v9377_v40 }
 0x1c9   : > { %v1153_v37 = vcombine.low %v1145_v45, %v1152_v47 }
 0x1cb   : > { %v1160_v2 = vrot.slane %v1153_v37, %v9377_v40 }
 0x1cd   : > { %v1162_v52 = vadd.f32 %v1160_v2, %v990_v14 }
 0x1cf   : > { %v1163_v24 = vadd.f32 %v1162_v52, %v9385_v48 }
 0x1d1   : > { %v6140_v39 = vmul.f32 -1.442695, %v1163_v24  ;;  %v1171_v17 = vrot.slane %v1163_v24, 1  ;;  %v1182_v23 = vrot.slane %v1163_v24, 3  ;;  %v1179_v42 = vrot.slane %v1163_v24, 2 }
 0x1d3   : > { %8096 = vpow2.f32 %v6140_v39  ;;  %v6141_v20 = vmul.f32 -1.442695, %v1171_v17  ;;  %v6142_v45 = vmul.f32 -1.442695, %v1182_v23  ;;  %v983_v39 = vld [vmem:[%s9393_s19] sm:$0x1] }
 0x1d5   : > { %8098 = vpow2.f32 %v6141_v20 }
 0x1d6   : > { %8100 = vpow2.f32 %v6142_v45 }
 0x1dd   : > { %v8097_v33 = vpop.eup %8096 }
 0x1de   : > { %v1167_v47 = vadd.f32 1.0, %v8097_v33 }
 0x1df   : > { %v8099_v37 = vpop.eup %8098 }
 0x1e0   : > { %8102 = vrcp.f32 %v1167_v47  ;;  %v1176_v40 = vadd.f32 1.0, %v8099_v37  ;;  %v8101_v14 = vpop.eup %8100  ;;  %v9439_v47 = vsub.s32 0, %v9374_v30  ;;  %v975_v37 = vld [vmem:[%s11107_s7] sm:$0xf]  ;;  %s6155_s7 = sshll.u32 %s2255_s30, 2  ;;  %s3489_s30 = sld [smem:[#allocation3 + %s3488_s2]] }
 0x1e1   : > { %8104 = vtanh.f32 %v1179_v42  ;;  %v1187_v24 = vadd.f32 1.0, %v8101_v14  ;;  %v1486_v14 = vsub.s32 1, %v9374_v30  ;;  %s2257_s22 = scalar_lea.vmem [#allocation9], %s6155_s7 }
 0x1e2   : > { %8106 = vrcp.f32 %v1176_v40 }
 0x1e3   : > { %8108 = vrcp.f32 %v1187_v24  ;;  %v1494_v24 = vsub.s32 3, %v9374_v30 }
 0x1e6   : > { %s6171_s7 = sshll.u32 %s3489_s30, 2 }
 0x1ea   : > { %v8103_v17 = vpop.eup %8102 }
 0x1eb   : > { %v8105_v2 = vpop.eup %8104 }
 0x1ec   : > { %v8107_v52 = vpop.eup %8106  ;;  %v1191_v23 = vmul.f32 %v8105_v2, %v8103_v17  ;;  %v9446_v17 = vrot.slane %v975_v37, %v9439_v47 }
 0x1ed   : > { %v1190_v20 = vmul.f32 %v8107_v52, %v983_v39  ;;  %v8109_v40 = vpop.eup %8108  ;;  %v9448_v39 = vrot.slane %v975_v37, %v1486_v14 }
 0x1ee   : > { %11108 = vst [vmem:[#allocation124_spill] sm:$0xff] %v9446_v17 }
 0x1ef   : > { %v9396_v45 = vadd.f32 %v1191_v23, %v1190_v20 }
 0x1f1   : > { %8110 = vtanh.f32 %v9396_v45 }
 0x1fb   : > { %v8111_v33 = vpop.eup %8110 }
 0x1fc   : > { %v9399_v42 = vmul.f32 %v8111_v33, %v8109_v40 }
 0x1fe   : > { %1402 = vmatmul.mubr.f32.vlgmr.msra.gmra.mrb[2].mxu1 %v9399_v42  ;;  %1473 = vmatmul.mubr.f32.vlgmr.msra.gmra.mrb[6].mxu0 %v9399_v42 }
 0x1ff   : > { %6608 = vmatpush1.bf16.msra.mxu0 %v9043_v43  ;;  %1777 = vmatprep.mubr.f32.mxu0 %v11073_v61  ;;  %v11168_v43 = vld [vmem:[#allocation110_spill] sm:$0xff] }
 0x200   : > { %6610 = vmatprep.subr.bf16.mxu0 %v9048_v46  ;;  %6283 = vmatprep.mubr.msk.f32.mxu1 %vm8687_vm1, %v11073_v61  ;;  %v11167_v46 = vld [vmem:[#allocation108_spill] sm:$0xff] }
 0x203   : > { %6612 = vmatpush1.bf16.msra.mxu0 %v9058_v56  ;;  %v11165_v56 = vld [vmem:[#allocation104_spill] sm:$0xff] }
 0x204   : > { %6614 = vmatprep.subr.bf16.mxu0 %v9061_v59  ;;  %v11164_v59 = vld [vmem:[#allocation102_spill] sm:$0xff] }
 0x207   : > { %6616 = vmatpush1.bf16.msra.mxu0 %v9070_v5  ;;  %v11163_v5 = vld [vmem:[#allocation100_spill] sm:$0xff] }
 0x208   : > { %6618 = vmatprep.subr.bf16.mxu0 %v9074_v9  ;;  %v11162_v9 = vld [vmem:[#allocation98_spill] sm:$0xff] }
 0x20b   : > { %6620 = vmatpush1.bf16.msra.mxu0 %v9091_v21  ;;  %v11161_v21 = vld [vmem:[#allocation96_spill] sm:$0xff] }
 0x20c   : > { %6622 = vmatprep.subr.bf16.mxu0 %v9100_v25  ;;  %v11160_v25 = vld [vmem:[#allocation94_spill] sm:$0xff] }
 0x20f   : > { %6624 = vmatpush1.bf16.msra.mxu0 %v9118_v41  ;;  %v11159_v41 = vld [vmem:[#allocation92_spill] sm:$0xff] }
 0x210   : > { %6626 = vmatprep.subr.bf16.mxu0 %v9125_v44  ;;  %v11158_v44 = vld [vmem:[#allocation90_spill] sm:$0xff] }
 0x213   : > { %6628 = vmatpush1.bf16.msra.mxu0 %v9142_v55  ;;  %v11157_v55 = vld [vmem:[#allocation88_spill] sm:$0xff] }
 0x214   : > { %6630 = vmatprep.subr.bf16.mxu0 %v9148_v58  ;;  %v11156_v58 = vld [vmem:[#allocation86_spill] sm:$0xff] }
 0x217   : > { %6632 = vmatpush1.bf16.msra.mxu0 %v9153_v4  ;;  %v11155_v4 = vld [vmem:[#allocation84_spill] sm:$0xff] }
 0x218   : > { %6634 = vmatprep.subr.bf16.mxu0 %v9156_v6  ;;  %v11154_v6 = vld [vmem:[#allocation82_spill] sm:$0xff] }
 0x21b   : > { %6636 = vmatpush1.bf16.msra.mxu0 %v9160_v10  ;;  %v11153_v10 = vld [vmem:[#allocation80_spill] sm:$0xff] }
 0x21c   : > { %6670 = vmatprep.subr.bf16.mxu0 %v9165_v13  ;;  %v11152_v13 = vld [vmem:[#allocation78_spill] sm:$0xff] }
 0x21e   : > { %1778 = vmatmul.mubr.f32.vlgmr.msra.gmra.mrb[8].mxu0 %v9399_v42 }
 0x21f   : > { %6672 = vmatpush1.bf16.msra.mxu0 %v9170_v29  ;;  %1981 = vmatprep.mubr.f32.mxu0 %v11073_v61  ;;  %v11150_v29 = vld [vmem:[#allocation74_spill] sm:$0xff] }
 0x220   : > { %6674 = vmatprep.subr.bf16.mxu0 %v9175_v38  ;;  %v11149_v38 = vld [vmem:[#allocation72_spill] sm:$0xff] }
 0x223   : > { %6676 = vmatpush1.bf16.msra.mxu0 %v9182_v49  ;;  %v11148_v49 = vld [vmem:[#allocation70_spill] sm:$0xff] }
 0x224   : > { %6678 = vmatprep.subr.bf16.mxu0 %v9189_v62  ;;  %v11147_v62 = vld [vmem:[#allocation68_spill] sm:$0xff] }
 0x227   : > { %6680 = vmatpush1.bf16.msra.mxu0 %v9194_v19  ;;  %v11146_v19 = vld [vmem:[#allocation66_spill] sm:$0xff] }
 0x228   : > { %6682 = vmatprep.subr.bf16.mxu0 %v9201_v28  ;;  %v11145_v28 = vld [vmem:[#allocation64_spill] sm:$0xff] }
 0x22b   : > { %6684 = vmatpush1.bf16.msra.mxu0 %v9206_v54  ;;  %v11144_v54 = vld [vmem:[#allocation62_spill] sm:$0xff] }
 0x22c   : > { %6686 = vmatprep.subr.bf16.mxu0 %v9213_v3 }
 0x22f   : > { %6688 = vmatpush1.bf16.msra.mxu0 %v9218_v32 }
 0x230   : > { %6690 = vmatprep.subr.bf16.mxu0 %v9224_v50 }
 0x233   : > { %6692 = vmatpush1.bf16.msra.mxu0 %v9230_v27 }
 0x234   : > { %6694 = vmatprep.subr.bf16.mxu0 %v9236_v12 }
 0x237   : > { %6696 = vmatpush1.bf16.msra.mxu0 %v9242_v1  ;;  %v1490_v1 = vsub.s32 2, %v9374_v30  ;;  %v985_v30 = vld [vmem:[%s9393_s19 + $0x1] sm:$0x1]  ;;  %s1640_s19 = scalar_lea.vmem [#allocation9], %s6147_s21  ;;  %s4722_s21 = sadd.s32 6, %s9370_s1 }
 0x238   : > { %6698 = vmatprep.subr.bf16.mxu0 %v9248_v11  ;;  %v9453_v11 = vrot.slane %v975_v37, %v1494_v24 }
 0x239   : > { %v9457_v12 = vrot.slane %v975_v37, %v1490_v1 }
 0x23b   : > { %6700 = vmatpush1.bf16.msra.mxu0 %v9254_v7 }
 0x23c   : > { %6734 = vmatprep.subr.bf16.mxu0 %v9260_v60 }
 0x2d1   : > { %v1403_v2 = vpop.f32.mrb[2].mxu1  ;;  %v1474_v52 = vpop.f32.mrb[6].mxu0 }
 0x2d2   : > { %v1500_v20 = vadd.f32 %v9446_v17, %v1403_v2  ;;  %v1405_v23 = vpop.f32.mrb[3].mxu1  ;;  %v1476_v40 = vpop.f32.mrb[7].mxu0  ;;  %v1502_v2 = vadd.f32 %v9457_v12, %v1474_v52 }
 0x2d3   : > { %v1501_v33 = vadd.f32 %v9448_v39, %v1405_v23  ;;  %v1503_v14 = vadd.f32 %v9453_v11, %v1476_v40 }
 0x2d4   : > { %v6143_v60 = vmul.f32 -1.442695, %v1500_v20 }
 0x2d5   : > { %v6144_v7 = vmul.f32 -1.442695, %v1501_v33  ;;  %v6145_v27 = vmul.f32 -1.442695, %v1503_v14 }
 0x2d6   : > { %8112 = vpow2.f32 %v6143_v60 }
 0x2d7   : > { %8114 = vpow2.f32 %v6144_v7 }
 0x2d8   : > { %8116 = vpow2.f32 %v6145_v27 }
 0x2d9   : > { %8118 = vtanh.f32 %v1502_v2  ;;  %v9475_v2 = vld [vmem:[%s11109_s17 + $0x18] sm:$0xff] }
 0x2da   : > { %11110 = vst [vmem:[#allocation125_spill] sm:$0xff] %v9475_v2 }
 0x2e0   : > { %v8113_v50 = vpop.eup %8112 }
 0x2e1   : > { %v8115_v32 = vpop.eup %8114  ;;  %v1507_v3 = vadd.f32 1.0, %v8113_v50 }
 0x2e2   : > { %v1513_v20 = vadd.f32 1.0, %v8115_v32  ;;  %v8117_v60 = vpop.eup %8116 }
 0x2e3   : > { %8120 = vrcp.f32 %v1507_v3  ;;  %v8119_v24 = vpop.eup %8118  ;;  %v1520_v40 = vadd.f32 1.0, %v8117_v60 }
 0x2e4   : > { %8122 = vrcp.f32 %v1513_v20  ;;  %v9480_v20 = vld [vmem:[%s11109_s17] sm:$0xff] }
 0x2e5   : > { %8124 = vrcp.f32 %v1520_v40  ;;  %11111 = vst [vmem:[#allocation126_spill] sm:$0xff] %v9480_v20 }
 0x2ed   : > { %v8121_v23 = vpop.eup %8120 }
 0x2ee   : > { %v8123_v7 = vpop.eup %8122  ;;  %v1524_v33 = vmul.f32 %v8121_v23, %v8119_v24  ;;  %v9493_v23 = vld [vmem:[%s11109_s17 + $0x8] sm:$0xff] }
 0x2ef   : > { %v1523_v1 = vmul.f32 %v8123_v7, %v985_v30  ;;  %v8125_v3 = vpop.eup %8124  ;;  %11112 = vst [vmem:[#allocation127_spill] sm:$0xff] %v9493_v23 }
 0x2f1   : > { %v9461_v37 = vadd.f32 %v1524_v33, %v1523_v1  ;;  %v9463_v14 = vpop.f32.mrb[8].mxu0  ;;  %v9501_v33 = vld [vmem:[%s11109_s17 + $0x10] sm:$0xff] }
 0x2f2   : > { %v9465_v52 = vpop.f32.mrb[9].mxu0  ;;  %11113 = vst [vmem:[#allocation128_spill] sm:$0xff] %v9501_v33  ;;  %v751_v1 = vld [vmem:[%s10718_s12 + $0x10] sm:$0xff] }
 0x2f3   : > { %8126 = vtanh.f32 %v9461_v37 }
 0x2fd   : > { %v8127_v50 = vpop.eup %8126 }
 0x2fe   : > { %v9470_v27 = vmul.f32 %v8127_v50, %v8125_v3  ;;  %v11114_v3 = vld [vmem:[#allocation23_spill] sm:$0xff] }
 0x2ff   : > { %v752_v50 = vld [vmem:[%s10718_s12 + $0x18] sm:$0xff] }
 0x300   : > { %1982 = vmatmul.mubr.f32.vlgmr.msra.gmra.mrb[10].mxu0 %v9470_v27  ;;  %v1531_v60 = vrot.slane %v9470_v27, %v9439_v47 }
 0x301   : > { %6736 = vmatpush1.bf16.msra.mxu0 %v9267_v63  ;;  %2123 = vmatprep.mubr.f32.mxu0 %v11073_v61  ;;  %v11143_v63 = vld [vmem:[#allocation60_spill] sm:$0xff] }
 0x302   : > { %v1535_v24 = vmul.f32 %v1531_v60, %v9475_v2  ;;  %v1532_v30 = vmul.f32 %v1531_v60, %v9480_v20  ;;  %6738 = vmatprep.subr.bf16.mxu0 %v9273_v35  ;;  %v1533_v7 = vmul.f32 %v1531_v60, %v9493_v23  ;;  %v1534_v40 = vmul.f32 %v1531_v60, %v9501_v33  ;;  %v11142_v35 = vld [vmem:[#allocation58_spill] sm:$0xff] }
 0x303   : > { %v10869_v60 = vmov 0.0|0.0  }
 0x304   : > { %1542 = vadd.xlane.f32.xlu1 %v1535_v24  ;;  %1536 = vadd.xlane.f32.xlu0 %v1532_v30  ;;  %v756_v24 = vpop.permute.xlu0 %755  ;;  %v634_v30 = vpop.permute.xlu1 %633 }
 0x305   : > { %6740 = vmatpush1.bf16.msra.mxu0 %v9280_v57  ;;  %6567 = vmatprep.subr.bf16.mxu1 %v10869_v60 }
 0x306   : > { %6742 = vmatprep.subr.bf16.mxu0 %v9286_v15 }
 0x308   : > { %1538 = vadd.xlane.f32.xlu0 %v1533_v7  ;;  %v644_v7 = vpop.permute.xlu0 %643 }
 0x309   : > { %6744 = vmatpush1.bf16.msra.mxu0 %v9291_v31  ;;  %v11119_v31 = vld [vmem:[#allocation122_spill] sm:$0xff] }
 0x30a   : > { %6746 = vmatprep.subr.bf16.mxu0 %v9298_v16 }
 0x30c   : > { %1540 = vadd.xlane.f32.xlu0 %v1534_v40  ;;  %v639_v40 = vpop.permute.xlu1 %638 }
 0x30d   : > { %6748 = vmatpush1.bf16.msra.mxu0 %v9303_v51 }
 0x30e   : > { %6750 = vmatprep.subr.bf16.mxu0 %v9309_v22 }
 0x311   : > { %6752 = vmatpush1.bf16.msra.mxu0 %v9315_v18 }
 0x312   : > { %6754 = vmatprep.subr.bf16.mxu0 %v9321_v0 }
 0x315   : > { %765 = vperm.xlu1 %8094, %v751_v1   ;;  %6756 = vmatpush1.bf16.msra.mxu0 %v9327_v8  ;;  %v11115_v1 = vld [vmem:[#allocation120_spill] sm:$0xff]  ;;  %v761_v8 = vpop.permute.xlu1 %760 }
 0x316   : > { %6758 = vmatprep.subr.bf16.mxu0 %v9333_v34  ;;  %v731_v32 = vadd.f32 %v11115_v1, %v634_v30  ;;  %v741_v30 = vadd.f32 %v11119_v31, %v644_v7  ;;  %v11128_v7 = vld [vmem:[#allocation26_spill] sm:$0xff] }
 0x318   : > { %v9527_v34 = vadd.f32 %v756_v24, %v731_v32 }
 0x319   : > { %6760 = vmatpush1.bf16.msra.mxu0 %v9339_v53 }
 0x31a   : > { %6762 = vmatprep.subr.bf16.mxu0 %v9345_v26  ;;  %v11116_v26 = vld [vmem:[#allocation119_spill] sm:$0xff]  ;;  %11117 = vst [vmem:[#allocation120_spill] sm:$0xff] %v9527_v34 }
 0x31b   : > { %v736_v53 = vadd.f32 %v11116_v26, %v639_v40  ;;  %v11121_v26 = vld [vmem:[#allocation121_spill] sm:$0xff] }
 0x31d   : > { %6764 = vmatpush1.bf16.msra.mxu0 %v9351_v36  ;;  %v649_v36 = vpop.permute.xlu0 %648  ;;  %v9530_v60 = vadd.f32 %v761_v8, %v736_v53 }
 0x31e   : > { %6772 = vmatprep.subr.bf16.mxu0 %v11114_v3  ;;  %v746_v32 = vadd.f32 %v11121_v26, %v649_v36  ;;  %v9545_v36 = vld [vmem:[%s11124_s11] sm:$0x1]  ;;  %v11131_v26 = vld [vmem:[#allocation31_spill] sm:$0xff] }
 0x31f   : > { %11118 = vst [vmem:[#allocation119_spill] sm:$0xff] %v9530_v60  ;;  %11125 = vst [vmem:[#allocation129_spill] sm:$0xff] %v9545_v36 }
 0x322   : > { %770 = vperm.xlu0 %8095, %v752_v50  }
 0x391   : > { %v1537_v50 = vpop.xlane.xlu0 %1536  ;;  %v1543_v22 = vpop.xlane.xlu1 %1542 }
 0x392   : > { %v1544_v0 = vadd.f32 %v1537_v50, %v9527_v34  ;;  %v11172_v34 = vld [vmem:[#allocation118_spill] sm:$0xff] }
 0x394   : > { %8128 = vtanh.f32 %v1544_v0 }
 0x395   : > { %v1539_v18 = vpop.xlane.xlu0 %1538  ;;  %v766_v16 = vpop.permute.xlu1 %765 }
 0x396   : > { %v1545_v51 = vadd.f32 %v1539_v18, %v9530_v60  ;;  %v9534_v15 = vadd.f32 %v766_v16, %v741_v30  ;;  %v11129_v30 = vld [vmem:[#allocation28_spill] sm:$0xff] }
 0x398   : > { %8130 = vtanh.f32 %v1545_v51  ;;  %11120 = vst [vmem:[#allocation122_spill] sm:$0xff] %v9534_v15  ;;  %v11123_v51 = vmov 0.0|0.0  }
 0x399   : > { %v1541_v1 = vpop.xlane.xlu0 %1540 }
 0x39a   : > { %v1546_v40 = vadd.f32 %v1541_v1, %v9534_v15  ;;  %v11130_v1 = vld [vmem:[#allocation29_spill] sm:$0xff]  ;;  %v11171_v15 = vld [vmem:[#allocation116_spill] sm:$0xff] }
 0x39c   : > { %8132 = vtanh.f32 %v1546_v40  ;;  %v11134_v40 = vld [vmem:[#allocation37_spill] sm:$0xff] }
 0x39e   : > { %v8129_v24 = vpop.eup %8128 }
 0x3a1   : > { %v771_v50 = vpop.permute.xlu0 %770 }
 0x3a2   : > { %v8131_v8 = vpop.eup %8130  ;;  %v9538_v53 = vadd.f32 %v771_v50, %v746_v32  ;;  %v11132_v32 = vld [vmem:[#allocation33_spill] sm:$0xff]  ;;  %v11135_v50 = vld [vmem:[#allocation38_spill] sm:$0xff] }
 0x3a3   : > { %v6568_v57 = vpack.c.bf16 %v8131_v8, %v8129_v24  ;;  %v11133_v24 = vld [vmem:[#allocation34_spill] sm:$0xff]  ;;  %v11136_v8 = vld [vmem:[#allocation41_spill] sm:$0xff] }
 0x3a4   : > { %11122 = vst [vmem:[#allocation121_spill] sm:$0xff] %v9538_v53  ;;  %v1547_v18 = vadd.f32 %v1543_v22, %v9538_v53  ;;  %v11126_v22 = vld [vmem:[#allocation24_spill] sm:$0xff]  ;;  %v11170_v53 = vld [vmem:[#allocation114_spill] sm:$0xff] }
 0x3a5   : > { %6569 = vmatpush3.bf16.msra.mxu1 %v6568_v57  ;;  %v11127_v57 = vld [vmem:[#allocation25_spill] sm:$0xff] }
 0x3a6   : > { %6570 = vmatprep.subr.bf16.mxu1 %v11123_v51  ;;  %8134 = vtanh.f32 %v1547_v18  ;;  %v8133_v31 = vpop.eup %8132  ;;  %v11137_v18 = vld [vmem:[#allocation42_spill] sm:$0xff] }
 0x3b0   : > { %v8135_v16 = vpop.eup %8134 }
 0x3b1   : > { %v6571_v0 = vpack.c.bf16 %v8135_v16, %v8133_v31  ;;  %v11138_v31 = vld [vmem:[#allocation45_spill] sm:$0xff]  ;;  %v11139_v16 = vld [vmem:[#allocation46_spill] sm:$0xff] }
 0x3b3   : > { %6572 = vmatpush3.bf16.msra.mxu1 %v6571_v0  ;;  %v11140_v0 = vld [vmem:[#allocation49_spill] sm:$0xff] }
 0x3b4   : > { %6574 = vmatprep.subr.bf16.mxu1 %v11114_v3  ;;  %v11141_v3 = vld [vmem:[#allocation56_spill] sm:$0xff] }
 0x3b6   : > { %6284 = vmatmul.mubr.msk.f32.vlgmr.msra.gmra.mrb[4].mxu1 %vm1561_vm2, %v9545_v36  ;;  %v11169_v36 = vld [vmem:[#allocation112_spill] sm:$0xff] }
 0x3b7   : > { %6576 = vmatpush1.bf16.msra.mxu1 %v11126_v22  ;;  %1706 = vmatprep.mubr.f32.mxu1 %v11073_v61 }
 0x3b8   : > { %6578 = vmatprep.subr.bf16.mxu1 %v11127_v57 }
 0x3bb   : > { %6580 = vmatpush1.bf16.msra.mxu1 %v11128_v7 }
 0x3bc   : > { %6582 = vmatprep.subr.bf16.mxu1 %v11129_v30 }
 0x3bf   : > { %6584 = vmatpush1.bf16.msra.mxu1 %v11130_v1 }
 0x3c0   : > { %6586 = vmatprep.subr.bf16.mxu1 %v11131_v26 }
 0x3c3   : > { %6588 = vmatpush1.bf16.msra.mxu1 %v11132_v32 }
 0x3c4   : > { %6590 = vmatprep.subr.bf16.mxu1 %v11133_v24 }
 0x3c7   : > { %6592 = vmatpush1.bf16.msra.mxu1 %v11134_v40 }
 0x3c8   : > { %6594 = vmatprep.subr.bf16.mxu1 %v11135_v50 }
 0x3cb   : > { %6596 = vmatpush1.bf16.msra.mxu1 %v11136_v8 }
 0x3cc   : > { %6598 = vmatprep.subr.bf16.mxu1 %v11137_v18 }
 0x3cf   : > { %6600 = vmatpush1.bf16.msra.mxu1 %v11138_v31 }
 0x3d0   : > { %6602 = vmatprep.subr.bf16.mxu1 %v11139_v16 }
 0x3d3   : > { %6604 = vmatpush1.bf16.msra.mxu1 %v11140_v0 }
 0x3d4   : > { %6638 = vmatprep.subr.bf16.mxu1 %v11141_v3 }
 0x3d6   : > { %1707 = vmatmul.mubr.f32.vlgmr.msra.gmra.mrb[6].mxu1 %v9399_v42  ;;  %v11151_v42 = vld [vmem:[#allocation76_spill] sm:$0xff] }
 0x3d7   : > { %6640 = vmatpush1.bf16.msra.mxu1 %v11142_v35  ;;  %1910 = vmatprep.mubr.f32.mxu1 %v11073_v61 }
 0x3d8   : > { %6642 = vmatprep.subr.bf16.mxu1 %v11143_v63 }
 0x3db   : > { %6644 = vmatpush1.bf16.msra.mxu1 %v11144_v54 }
 0x3dc   : > { %6646 = vmatprep.subr.bf16.mxu1 %v11145_v28 }
 0x3df   : > { %6648 = vmatpush1.bf16.msra.mxu1 %v11146_v19 }
 0x3e0   : > { %6650 = vmatprep.subr.bf16.mxu1 %v11147_v62 }
 0x3e3   : > { %6652 = vmatpush1.bf16.msra.mxu1 %v11148_v49 }
 0x3e4   : > { %6654 = vmatprep.subr.bf16.mxu1 %v11149_v38 }
 0x3e7   : > { %6656 = vmatpush1.bf16.msra.mxu1 %v11150_v29 }
 0x3e8   : > { %6658 = vmatprep.subr.bf16.mxu1 %v11151_v42 }
 0x3eb   : > { %6660 = vmatpush1.bf16.msra.mxu1 %v11152_v13 }
 0x3ec   : > { %6662 = vmatprep.subr.bf16.mxu1 %v11153_v10 }
 0x3ef   : > { %6664 = vmatpush1.bf16.msra.mxu1 %v11154_v6 }
 0x3f0   : > { %6666 = vmatprep.subr.bf16.mxu1 %v11155_v4 }
 0x3f3   : > { %6668 = vmatpush1.bf16.msra.mxu1 %v11156_v58 }
 0x3f4   : > { %6702 = vmatprep.subr.bf16.mxu1 %v11157_v55 }
 0x3f6   : > { %1911 = vmatmul.mubr.f32.vlgmr.msra.gmra.mrb[8].mxu1 %v9470_v27  ;;  %v11166_v27 = vld [vmem:[#allocation106_spill] sm:$0xff] }
 0x3f7   : > { %6704 = vmatpush1.bf16.msra.mxu1 %v11158_v44  ;;  %2052 = vmatprep.mubr.f32.mxu1 %v11073_v61 }
 0x3f8   : > { %6706 = vmatprep.subr.bf16.mxu1 %v11159_v41 }
 0x3fb   : > { %6708 = vmatpush1.bf16.msra.mxu1 %v11160_v25 }
 0x3fc   : > { %6710 = vmatprep.subr.bf16.mxu1 %v11161_v21 }
 0x3ff   : > { %6712 = vmatpush1.bf16.msra.mxu1 %v11162_v9 }
 0x400   : > { %6714 = vmatprep.subr.bf16.mxu1 %v11163_v5 }
 0x403   : > { %6716 = vmatpush1.bf16.msra.mxu1 %v11164_v59 }
 0x404   : > { %6718 = vmatprep.subr.bf16.mxu1 %v11165_v56 }
 0x407   : > { %6720 = vmatpush1.bf16.msra.mxu1 %v11166_v27 }
 0x408   : > { %6722 = vmatprep.subr.bf16.mxu1 %v11167_v46 }
 0x40b   : > { %6724 = vmatpush1.bf16.msra.mxu1 %v11168_v43  ;;  %v11174_v43 = vld [vmem:[#allocation123_spill] sm:$0xff] }
 0x40c   : > { %6726 = vmatprep.subr.bf16.mxu1 %v11169_v36  ;;  %v11175_v36 = vcombine.low %v9463_v14, %v9465_v52 }
 0x40f   : > { %6728 = vmatpush1.bf16.msra.mxu1 %v11170_v53  ;;  %v1803_v53 = vrot.slane %v11175_v36, %v11174_v43 }
 0x410   : > { %6730 = vmatprep.subr.bf16.mxu1 %v11171_v15 }
 0x413   : > { %6732 = vmatpush1.bf16.msra.mxu1 %v11172_v34  ;;  %v1641_v34 = vld [vmem:[%s1640_s19] sm:$0xf]  ;;  %s4723_s19 = sld [smem:[#allocation3 + %s4722_s21]] }
 0x414   : > { %6765 = vmatprep.subr.bf16.mxu1 %v11123_v51  ;;  %s779_s21 = sld [smem:[#allocation4 + %s8818_s27]] }
 0x419   : > { %s6187_s2 = sshll.u32 %s4723_s19, 2  ;;  %s6131_s19 = sshll.u32 %s9000_s10, 3 }
 0x41a   : > { %s4725_s30 = scalar_lea.vmem [#allocation9], %s6187_s2  ;;  %s608_s27 = scalar_lea.vmem [#allocation15], %s6131_s19 }
 0x41b   : > { %s5970_s2 = sshll.u32 %s608_s27, 4  ;;  %s10663_s2 = int_to_ptr.vmem [resolvable:$true] %s5970_s2 }
 0x489   : > { %v9603_v60 = vpop.f32.mrb[4].mxu1 }
 0x48a   : > { %11173 = vst [vmem:[#allocation24_spill] sm:$0xff] %v9603_v60  ;;  %v6285_v59 = vpop.f32.mrb[5].mxu1 }
 0x4a9   : > { %v1708_v27 = vpop.f32.mrb[6].mxu1 }
 0x4aa   : > { %v1710_v46 = vpop.f32.mrb[7].mxu1 }
 0x4ab   : > { %v1788_v56 = vcombine.low %v1708_v27, %v1710_v46 }
 0x4ad   : > { %v1796_v15 = vrot.slane %v1788_v56, %v11174_v43 }
 0x4af   : > { %v1804_v5 = vcombine.low %v1796_v15, %v1803_v53 }
 0x4b1   : > { %v1811_v51 = vrot.slane %v1804_v5, %v11174_v43 }
 0x4b3   : > { %v1813_v60 = vadd.f32 %v1811_v51, %v1641_v34 }
 0x4b5   : > { %v1814_v59 = vadd.f32 %v1813_v60, %v9385_v48 }
 0x4b7   : > { %v6148_v9 = vmul.f32 -1.442695, %v1814_v59  ;;  %v1822_v21 = vrot.slane %v1814_v59, 1  ;;  %v1833_v46 = vrot.slane %v1814_v59, 3  ;;  %v1830_v14 = vrot.slane %v1814_v59, 2 }
 0x4b9   : > { %8136 = vpow2.f32 %v6148_v9  ;;  %v6149_v2 = vmul.f32 -1.442695, %v1822_v21  ;;  %v6150_v27 = vmul.f32 -1.442695, %v1833_v46 }
 0x4bb   : > { %8138 = vpow2.f32 %v6149_v2 }
 0x4bc   : > { %8140 = vpow2.f32 %v6150_v27 }
 0x4c3   : > { %v8137_v33 = vpop.eup %8136 }
 0x4c4   : > { %v1818_v52 = vadd.f32 1.0, %v8137_v33 }
 0x4c5   : > { %v8139_v36 = vpop.eup %8138 }
 0x4c6   : > { %8142 = vrcp.f32 %v1818_v52  ;;  %v1827_v56 = vadd.f32 1.0, %v8139_v36  ;;  %v8141_v5 = vpop.eup %8140 }
 0x4c7   : > { %8144 = vtanh.f32 %v1830_v14  ;;  %v1838_v53 = vadd.f32 1.0, %v8141_v5 }
 0x4c8   : > { %8146 = vrcp.f32 %v1827_v56 }
 0x4c9   : > { %8148 = vrcp.f32 %v1838_v53 }
 0x4d0   : > { %v8143_v15 = vpop.eup %8142 }
 0x4d1   : > { %v8145_v34 = vpop.eup %8144 }
 0x4d2   : > { %v8147_v60 = vpop.eup %8146  ;;  %v1842_v21 = vmul.f32 %v8145_v34, %v8143_v15 }
 0x4d3   : > { %v1841_v9 = vmul.f32 %v8147_v60, %v9396_v45  ;;  %v8149_v33 = vpop.eup %8148 }
 0x4d5   : > { %v9614_v2 = vadd.f32 %v1842_v21, %v1841_v9 }
 0x4d7   : > { %8150 = vtanh.f32 %v9614_v2 }
 0x4e1   : > { %v8151_v51 = vpop.eup %8150 }
 0x4e2   : > { %v9617_v59 = vmul.f32 %v8151_v51, %v8149_v33 }
 0x4e4   : > { %2053 = vmatmul.mubr.f32.vlgmr.msra.gmra.mrb[8].mxu1 %v9617_v59  ;;  %2124 = vmatmul.mubr.f32.vlgmr.msra.gmra.mrb[10].mxu0 %v9617_v59 }
 0x4e5   : > { %6774 = vmatpush1.bf16.msra.mxu0 %v11126_v22  ;;  %2323 = vmatprep.mubr.f32.mxu0 %v11073_v61 }
 0x4e6   : > { %6776 = vmatprep.subr.bf16.mxu0 %v11127_v57  ;;  %6294 = vmatprep.mubr.msk.f32.mxu1 %vm8687_vm1, %v11073_v61 }
 0x4e9   : > { %6778 = vmatpush1.bf16.msra.mxu0 %v11128_v7 }
 0x4ea   : > { %6780 = vmatprep.subr.bf16.mxu0 %v11129_v30 }
 0x4ed   : > { %6782 = vmatpush1.bf16.msra.mxu0 %v11130_v1 }
 0x4ee   : > { %6784 = vmatprep.subr.bf16.mxu0 %v11131_v26 }
 0x4f1   : > { %6786 = vmatpush1.bf16.msra.mxu0 %v11132_v32 }
 0x4f2   : > { %6788 = vmatprep.subr.bf16.mxu0 %v11133_v24 }
 0x4f5   : > { %6790 = vmatpush1.bf16.msra.mxu0 %v11134_v40 }
 0x4f6   : > { %6792 = vmatprep.subr.bf16.mxu0 %v11135_v50 }
 0x4f9   : > { %6794 = vmatpush1.bf16.msra.mxu0 %v11136_v8 }
 0x4fa   : > { %6796 = vmatprep.subr.bf16.mxu0 %v11137_v18 }
 0x4fd   : > { %6798 = vmatpush1.bf16.msra.mxu0 %v11138_v31 }
 0x4fe   : > { %6800 = vmatprep.subr.bf16.mxu0 %v11139_v16 }
 0x501   : > { %6802 = vmatpush1.bf16.msra.mxu0 %v11140_v0 }
 0x502   : > { %6836 = vmatprep.subr.bf16.mxu0 %v11141_v3 }
 0x504   : > { %2324 = vmatmul.mubr.f32.vlgmr.msra.gmra.mrb[12].mxu0 %v9617_v59 }
 0x505   : > { %6838 = vmatpush1.bf16.msra.mxu0 %v11142_v35  ;;  %2527 = vmatprep.mubr.f32.mxu0 %v11073_v61 }
 0x506   : > { %6840 = vmatprep.subr.bf16.mxu0 %v11143_v63 }
 0x509   : > { %6842 = vmatpush1.bf16.msra.mxu0 %v11144_v54 }
 0x50a   : > { %6844 = vmatprep.subr.bf16.mxu0 %v11145_v28 }
 0x50d   : > { %6846 = vmatpush1.bf16.msra.mxu0 %v11146_v19 }
 0x50e   : > { %6848 = vmatprep.subr.bf16.mxu0 %v11147_v62 }
 0x511   : > { %6850 = vmatpush1.bf16.msra.mxu0 %v11148_v49 }
 0x512   : > { %6852 = vmatprep.subr.bf16.mxu0 %v11149_v38 }
 0x515   : > { %6854 = vmatpush1.bf16.msra.mxu0 %v11150_v29 }
 0x516   : > { %6856 = vmatprep.subr.bf16.mxu0 %v11151_v42 }
 0x519   : > { %6858 = vmatpush1.bf16.msra.mxu0 %v11152_v13 }
 0x51a   : > { %6860 = vmatprep.subr.bf16.mxu0 %v11153_v10 }
 0x51d   : > { %6862 = vmatpush1.bf16.msra.mxu0 %v11154_v6 }
 0x51e   : > { %6864 = vmatprep.subr.bf16.mxu0 %v11155_v4 }
 0x521   : > { %6866 = vmatpush1.bf16.msra.mxu0 %v11156_v58 }
 0x522   : > { %6900 = vmatprep.subr.bf16.mxu0 %v11157_v55 }
 0x5b7   : > { %v2054_v45 = vpop.f32.mrb[8].mxu1  ;;  %v2125_v46 = vpop.f32.mrb[10].mxu0 }
 0x5b8   : > { %v2130_v27 = vadd.f32 %v2054_v45, %v9446_v17  ;;  %v2056_v14 = vpop.f32.mrb[9].mxu1  ;;  %v2127_v52 = vpop.f32.mrb[11].mxu0  ;;  %v2132_v60 = vadd.f32 %v2125_v46, %v9457_v12 }
 0x5b9   : > { %v2131_v36 = vadd.f32 %v2056_v14, %v9448_v39  ;;  %v2133_v15 = vadd.f32 %v2127_v52, %v9453_v11 }
 0x5ba   : > { %v6151_v56 = vmul.f32 -1.442695, %v2130_v27 }
 0x5bb   : > { %v6152_v5 = vmul.f32 -1.442695, %v2131_v36  ;;  %v6153_v34 = vmul.f32 -1.442695, %v2133_v15 }
 0x5bc   : > { %8152 = vpow2.f32 %v6151_v56 }
 0x5bd   : > { %8154 = vpow2.f32 %v6152_v5 }
 0x5be   : > { %8156 = vpow2.f32 %v6153_v34  ;;  %v11185_v34 = vld [vmem:[#allocation110_spill] sm:$0xff] }
 0x5bf   : > { %8158 = vtanh.f32 %v2132_v60 }
 0x5c6   : > { %v8153_v53 = vpop.eup %8152 }
 0x5c7   : > { %v8155_v9 = vpop.eup %8154  ;;  %v2137_v21 = vadd.f32 1.0, %v8153_v53 }
 0x5c8   : > { %v2143_v33 = vadd.f32 1.0, %v8155_v9  ;;  %v8157_v51 = vpop.eup %8156 }
 0x5c9   : > { %8160 = vrcp.f32 %v2137_v21  ;;  %v8159_v45 = vpop.eup %8158  ;;  %v2150_v56 = vadd.f32 1.0, %v8157_v51  ;;  %v11176_v51 = vld [vmem:[#allocation128_spill] sm:$0xff] }
 0x5ca   : > { %8162 = vrcp.f32 %v2143_v33 }
 0x5cb   : > { %8164 = vrcp.f32 %v2150_v56  ;;  %v11179_v56 = vld [vmem:[#allocation98_spill] sm:$0xff] }
 0x5d3   : > { %v8161_v14 = vpop.eup %8160 }
 0x5d4   : > { %v8163_v27 = vpop.eup %8162  ;;  %v2154_v36 = vmul.f32 %v8161_v14, %v8159_v45  ;;  %v11177_v14 = vld [vmem:[#allocation125_spill] sm:$0xff] }
 0x5d5   : > { %v2153_v5 = vmul.f32 %v8163_v27, %v9461_v37  ;;  %v8165_v60 = vpop.eup %8164 }
 0x5d7   : > { %v9663_v52 = vadd.f32 %v2154_v36, %v2153_v5  ;;  %v9665_v15 = vpop.f32.mrb[12].mxu0  ;;  %v11178_v36 = vld [vmem:[#allocation96_spill] sm:$0xff] }
 0x5d8   : > { %v9667_v46 = vpop.f32.mrb[13].mxu0  ;;  %v11180_v5 = vld [vmem:[#allocation100_spill] sm:$0xff] }
 0x5d9   : > { %8166 = vtanh.f32 %v9663_v52 }
 0x5e3   : > { %v8167_v53 = vpop.eup %8166 }
 0x5e4   : > { %v9672_v9 = vmul.f32 %v8167_v53, %v8165_v60  ;;  %v11181_v60 = vld [vmem:[#allocation102_spill] sm:$0xff]  ;;  %v11182_v53 = vld [vmem:[#allocation104_spill] sm:$0xff] }
 0x5e6   : > { %2528 = vmatmul.mubr.f32.vlgmr.msra.gmra.mrb[14].mxu0 %v9672_v9  ;;  %v2161_v37 = vrot.slane %v9672_v9, %v9439_v47 }
 0x5e7   : > { %6902 = vmatpush1.bf16.msra.mxu0 %v11158_v44  ;;  %2669 = vmatprep.mubr.f32.mxu0 %v11073_v61 }
 0x5e8   : > { %v2163_v21 = vmul.f32 %v2161_v37, %v9493_v23  ;;  %v2162_v33 = vmul.f32 %v2161_v37, %v9480_v20  ;;  %6904 = vmatprep.subr.bf16.mxu0 %v11159_v41  ;;  %v2164_v45 = vmul.f32 %v2161_v37, %v11176_v51  ;;  %v2165_v27 = vmul.f32 %v2161_v37, %v11177_v14  ;;  %v11186_v51 = vld [vmem:[#allocation112_spill] sm:$0xff]  ;;  %v11187_v37 = vld [vmem:[#allocation114_spill] sm:$0xff]  ;;  %v11194_v41 = vld [vmem:[#allocation121_spill] sm:$0xff] }
 0x5e9   : > { %v11192_v14 = vld [vmem:[#allocation120_spill] sm:$0xff] }
 0x5ea   : > { %2168 = vadd.xlane.f32.xlu0 %v2163_v21  ;;  %2166 = vadd.xlane.f32.xlu1 %v2162_v33  ;;  %v11183_v21 = vld [vmem:[#allocation106_spill] sm:$0xff]  ;;  %v11184_v33 = vld [vmem:[#allocation108_spill] sm:$0xff] }
 0x5eb   : > { %6906 = vmatpush1.bf16.msra.mxu0 %v11160_v25  ;;  %v11193_v25 = vld [vmem:[#allocation122_spill] sm:$0xff] }
 0x5ec   : > { %6908 = vmatprep.subr.bf16.mxu0 %v11178_v36  ;;  %v11191_v36 = vld [vmem:[#allocation119_spill] sm:$0xff] }
 0x5ee   : > { %2170 = vadd.xlane.f32.xlu0 %v2164_v45  ;;  %2172 = vadd.xlane.f32.xlu1 %v2165_v27  ;;  %v11188_v45 = vld [vmem:[#allocation116_spill] sm:$0xff]  ;;  %v11189_v27 = vld [vmem:[#allocation118_spill] sm:$0xff] }
 0x5ef   : > { %6910 = vmatpush1.bf16.msra.mxu0 %v11179_v56  ;;  %v11190_v56 = vmov 0.0|0.0  }
 0x5f0   : > { %6912 = vmatprep.subr.bf16.mxu0 %v11180_v5 }
 0x5f3   : > { %6914 = vmatpush1.bf16.msra.mxu0 %v11181_v60 }
 0x5f4   : > { %6916 = vmatprep.subr.bf16.mxu0 %v11182_v53 }
 0x5f7   : > { %6918 = vmatpush1.bf16.msra.mxu0 %v11183_v21 }
 0x5f8   : > { %6920 = vmatprep.subr.bf16.mxu0 %v11184_v33 }
 0x5fb   : > { %6922 = vmatpush1.bf16.msra.mxu0 %v11185_v34 }
 0x5fc   : > { %6924 = vmatprep.subr.bf16.mxu0 %v11186_v51 }
 0x5ff   : > { %6926 = vmatpush1.bf16.msra.mxu0 %v11187_v37 }
 0x600   : > { %6928 = vmatprep.subr.bf16.mxu0 %v11188_v45 }
 0x603   : > { %6930 = vmatpush1.bf16.msra.mxu0 %v11189_v27 }
 0x604   : > { %6963 = vmatprep.subr.bf16.mxu0 %v11190_v56 }
 0x677   : > { %v2169_v5 = vpop.xlane.xlu0 %2168  ;;  %v2167_v60 = vpop.xlane.xlu1 %2166 }
 0x678   : > { %v2175_v53 = vadd.f32 %v2169_v5, %v11191_v36  ;;  %v2174_v21 = vadd.f32 %v2167_v60, %v11192_v14  ;;  %v11195_v60 = vld [vmem:[#allocation27_spill] sm:$0xff] }
 0x67a   : > { %8168 = vtanh.f32 %v2175_v53  ;;  %v11196_v53 = vld [vmem:[#allocation129_spill] sm:$0xff] }
 0x67b   : > { %8170 = vtanh.f32 %v2174_v21  ;;  %v2171_v33 = vpop.xlane.xlu0 %2170  ;;  %v2173_v34 = vpop.xlane.xlu1 %2172  ;;  %v11197_v21 = vld [vmem:[#allocation30_spill] sm:$0xff] }
 0x67c   : > { %v2176_v51 = vadd.f32 %v2171_v33, %v11193_v25  ;;  %v2177_v37 = vadd.f32 %v2173_v34, %v11194_v41  ;;  %v11198_v34 = vld [vmem:[#allocation32_spill] sm:$0xff] }
 0x67d   : > { %v11200_v33 = vld [vmem:[#allocation36_spill] sm:$0xff] }
 0x67e   : > { %8172 = vtanh.f32 %v2176_v51  ;;  %v11199_v51 = vld [vmem:[#allocation35_spill] sm:$0xff] }
 0x67f   : > { %8174 = vtanh.f32 %v2177_v37  ;;  %v11202_v37 = vld [vmem:[#allocation40_spill] sm:$0xff] }
 0x684   : > { %v8169_v45 = vpop.eup %8168 }
 0x685   : > { %v8171_v27 = vpop.eup %8170 }
 0x686   : > { %v6766_v20 = vpack.c.bf16 %v8169_v45, %v8171_v27  ;;  %v11205_v45 = vld [vmem:[#allocation47_spill] sm:$0xff]  ;;  %v11206_v27 = vld [vmem:[#allocation48_spill] sm:$0xff] }
 0x688   : > { %v8173_v23 = vpop.eup %8172  ;;  %6767 = vmatpush3.bf16.msra.mxu1 %v6766_v20  ;;  %v11201_v20 = vld [vmem:[#allocation39_spill] sm:$0xff] }
 0x689   : > { %v8175_v44 = vpop.eup %8174  ;;  %6768 = vmatprep.subr.bf16.mxu1 %v11190_v56 }
 0x68a   : > { %v6769_v5 = vpack.c.bf16 %v8175_v44, %v8173_v23  ;;  %v11203_v44 = vld [vmem:[#allocation43_spill] sm:$0xff]  ;;  %v11204_v23 = vld [vmem:[#allocation44_spill] sm:$0xff] }
 0x68c   : > { %6770 = vmatpush3.bf16.msra.mxu1 %v6769_v5  ;;  %v11207_v5 = vld [vmem:[#allocation50_spill] sm:$0xff] }
 0x68d   : > { %6804 = vmatprep.subr.bf16.mxu1 %v11195_v60 }
 0x68f   : > { %6295 = vmatmul.mubr.msk.f32.vlgmr.msra.gmra.mrb[10].mxu1 %vm1561_vm2, %v11196_v53 }
 0x690   : > { %6806 = vmatpush1.bf16.msra.mxu1 %v11197_v21  ;;  %2394 = vmatprep.mubr.f32.mxu1 %v11073_v61  ;;  %v11208_v21 = vld [vmem:[#allocation51_spill] sm:$0xff] }
 0x691   : > { %6808 = vmatprep.subr.bf16.mxu1 %v11198_v34  ;;  %v11209_v34 = vld [vmem:[#allocation52_spill] sm:$0xff] }
 0x694   : > { %6810 = vmatpush1.bf16.msra.mxu1 %v11199_v51  ;;  %v11210_v51 = vld [vmem:[#allocation53_spill] sm:$0xff] }
 0x695   : > { %6812 = vmatprep.subr.bf16.mxu1 %v11200_v33  ;;  %v11211_v33 = vld [vmem:[#allocation54_spill] sm:$0xff] }
 0x698   : > { %6814 = vmatpush1.bf16.msra.mxu1 %v11201_v20  ;;  %v11212_v20 = vld [vmem:[#allocation55_spill] sm:$0xff] }
 0x699   : > { %6816 = vmatprep.subr.bf16.mxu1 %v11202_v37 }
 0x69c   : > { %6818 = vmatpush1.bf16.msra.mxu1 %v11203_v44  ;;  %v11213_v44 = vld [vmem:[#allocation57_spill] sm:$0xff] }
 0x69d   : > { %6820 = vmatprep.subr.bf16.mxu1 %v11204_v23  ;;  %v11224_v23 = vld [vmem:[#allocation79_spill] sm:$0xff] }
 0x6a0   : > { %6822 = vmatpush1.bf16.msra.mxu1 %v11205_v45  ;;  %v11214_v45 = vld [vmem:[#allocation59_spill] sm:$0xff] }
 0x6a1   : > { %6824 = vmatprep.subr.bf16.mxu1 %v11206_v27  ;;  %v11215_v27 = vld [vmem:[#allocation61_spill] sm:$0xff] }
 0x6a4   : > { %6826 = vmatpush1.bf16.msra.mxu1 %v11207_v5  ;;  %v11216_v5 = vld [vmem:[#allocation63_spill] sm:$0xff] }
 0x6a5   : > { %6828 = vmatprep.subr.bf16.mxu1 %v11208_v21  ;;  %v11217_v21 = vld [vmem:[#allocation65_spill] sm:$0xff] }
 0x6a8   : > { %6830 = vmatpush1.bf16.msra.mxu1 %v11209_v34  ;;  %v11218_v34 = vld [vmem:[#allocation67_spill] sm:$0xff] }
 0x6a9   : > { %6832 = vmatprep.subr.bf16.mxu1 %v11210_v51  ;;  %v11219_v51 = vld [vmem:[#allocation69_spill] sm:$0xff] }
 0x6ac   : > { %6834 = vmatpush1.bf16.msra.mxu1 %v11211_v33  ;;  %v11220_v33 = vld [vmem:[#allocation71_spill] sm:$0xff] }
 0x6ad   : > { %6868 = vmatprep.subr.bf16.mxu1 %v11212_v20  ;;  %v11221_v20 = vld [vmem:[#allocation73_spill] sm:$0xff] }
 0x6af   : > { %2395 = vmatmul.mubr.f32.vlgmr.msra.gmra.mrb[12].mxu1 %v9617_v59  ;;  %v11222_v59 = vld [vmem:[#allocation75_spill] sm:$0xff] }
 0x6b0   : > { %6870 = vmatpush1.bf16.msra.mxu1 %v11213_v44  ;;  %2598 = vmatprep.mubr.f32.mxu1 %v11073_v61  ;;  %v11223_v44 = vld [vmem:[#allocation77_spill] sm:$0xff] }
 0x6b1   : > { %6872 = vmatprep.subr.bf16.mxu1 %v11214_v45  ;;  %v11225_v45 = vld [vmem:[#allocation81_spill] sm:$0xff] }
 0x6b4   : > { %6874 = vmatpush1.bf16.msra.mxu1 %v11215_v27  ;;  %v11226_v27 = vld [vmem:[#allocation83_spill] sm:$0xff] }
 0x6b5   : > { %6876 = vmatprep.subr.bf16.mxu1 %v11216_v5  ;;  %v11227_v5 = vld [vmem:[#allocation85_spill] sm:$0xff] }
 0x6b8   : > { %6878 = vmatpush1.bf16.msra.mxu1 %v11217_v21  ;;  %v11228_v21 = vld [vmem:[#allocation87_spill] sm:$0xff] }
 0x6b9   : > { %6880 = vmatprep.subr.bf16.mxu1 %v11218_v34 }
 0x6bc   : > { %6882 = vmatpush1.bf16.msra.mxu1 %v11219_v51  ;;  %v11229_v51 = vld [vmem:[#allocation89_spill] sm:$0xff] }
 0x6bd   : > { %6884 = vmatprep.subr.bf16.mxu1 %v11220_v33  ;;  %v11242_v33 = vld [vmem:[#allocation115_spill] sm:$0xff] }
 0x6c0   : > { %6886 = vmatpush1.bf16.msra.mxu1 %v11221_v20  ;;  %v11230_v20 = vld [vmem:[#allocation91_spill] sm:$0xff] }
 0x6c1   : > { %6888 = vmatprep.subr.bf16.mxu1 %v11222_v59  ;;  %v11231_v59 = vld [vmem:[#allocation93_spill] sm:$0xff] }
 0x6c4   : > { %6890 = vmatpush1.bf16.msra.mxu1 %v11223_v44  ;;  %v11232_v44 = vld [vmem:[#allocation95_spill] sm:$0xff] }
 0x6c5   : > { %6892 = vmatprep.subr.bf16.mxu1 %v11224_v23  ;;  %v11239_v23 = vld [vmem:[#allocation109_spill] sm:$0xff] }
 0x6c8   : > { %6894 = vmatpush1.bf16.msra.mxu1 %v11225_v45  ;;  %v11233_v45 = vld [vmem:[#allocation97_spill] sm:$0xff] }
 0x6c9   : > { %6896 = vmatprep.subr.bf16.mxu1 %v11226_v27  ;;  %v11234_v27 = vld [vmem:[#allocation99_spill] sm:$0xff] }
 0x6cc   : > { %6898 = vmatpush1.bf16.msra.mxu1 %v11227_v5  ;;  %v11235_v5 = vld [vmem:[#allocation101_spill] sm:$0xff] }
 0x6cd   : > { %6932 = vmatprep.subr.bf16.mxu1 %v11228_v21  ;;  %v11236_v21 = vld [vmem:[#allocation103_spill] sm:$0xff] }
 0x6cf   : > { %2599 = vmatmul.mubr.f32.vlgmr.msra.gmra.mrb[14].mxu1 %v9672_v9  ;;  %v11237_v9 = vld [vmem:[#allocation105_spill] sm:$0xff] }
 0x6d0   : > { %6934 = vmatpush1.bf16.msra.mxu1 %v11229_v51  ;;  %2740 = vmatprep.mubr.f32.mxu1 %v11073_v61  ;;  %v11238_v51 = vld [vmem:[#allocation107_spill] sm:$0xff] }
 0x6d1   : > { %6936 = vmatprep.subr.bf16.mxu1 %v11230_v20  ;;  %v11240_v20 = vld [vmem:[#allocation111_spill] sm:$0xff] }
 0x6d4   : > { %6938 = vmatpush1.bf16.msra.mxu1 %v11231_v59  ;;  %v11241_v59 = vld [vmem:[#allocation113_spill] sm:$0xff] }
 0x6d5   : > { %6940 = vmatprep.subr.bf16.mxu1 %v11232_v44  ;;  %v11243_v44 = vld [vmem:[#allocation117_spill] sm:$0xff] }
 0x6d8   : > { %6942 = vmatpush1.bf16.msra.mxu1 %v11233_v45  ;;  %v11244_v45 = vld [vmem:[#allocation23_spill] sm:$0xff] }
 0x6d9   : > { %6944 = vmatprep.subr.bf16.mxu1 %v11234_v27 }
 0x6dc   : > { %6946 = vmatpush1.bf16.msra.mxu1 %v11235_v5 }
 0x6dd   : > { %6948 = vmatprep.subr.bf16.mxu1 %v11236_v21 }
 0x6e0   : > { %6950 = vmatpush1.bf16.msra.mxu1 %v11237_v9 }
 0x6e1   : > { %6952 = vmatprep.subr.bf16.mxu1 %v11238_v51 }
 0x6e4   : > { %6954 = vmatpush1.bf16.msra.mxu1 %v11239_v23 }
 0x6e5   : > { %6956 = vmatprep.subr.bf16.mxu1 %v11240_v20  ;;  %v11246_v20 = vcombine.low %v9665_v15, %v9667_v46 }
 0x6e8   : > { %6958 = vmatpush1.bf16.msra.mxu1 %v11241_v59  ;;  %v2413_v59 = vrot.slane %v11246_v20, %v11174_v43 }
 0x6e9   : > { %6960 = vmatprep.subr.bf16.mxu1 %v11242_v33 }
 0x6ec   : > { %6962 = vmatpush1.bf16.msra.mxu1 %v11243_v44  ;;  %v2258_v44 = vld [vmem:[%s2257_s22] sm:$0xf]  ;;  %s3491_s22 = scalar_lea.vmem [#allocation9], %s6171_s7 }
 0x6ed   : > { %6970 = vmatprep.subr.bf16.mxu1 %v11244_v45 }
 0x762   : > { %v9759_v27 = vpop.f32.mrb[10].mxu1 }
 0x763   : > { %11245 = vst [vmem:[#allocation25_spill] sm:$0xff] %v9759_v27  ;;  %v6296_v5 = vpop.f32.mrb[11].mxu1 }
 0x782   : > { %v2396_v9 = vpop.f32.mrb[12].mxu1 }
 0x783   : > { %v2398_v51 = vpop.f32.mrb[13].mxu1 }
 0x784   : > { %v2406_v21 = vcombine.low %v2396_v9, %v2398_v51 }
 0x786   : > { %v2420_v33 = vrot.slane %v2406_v21, %v11174_v43 }
 0x788   : > { %v2421_v23 = vcombine.low %v2413_v59, %v2420_v33 }
 0x78a   : > { %v2428_v45 = vrot.slane %v2421_v23, %v11174_v43 }
 0x78c   : > { %v2430_v27 = vadd.f32 %v2428_v45, %v2258_v44 }
 0x78e   : > { %v2431_v5 = vadd.f32 %v2430_v27, %v9385_v48 }
 0x790   : > { %v6156_v34 = vmul.f32 -1.442695, %v2431_v5  ;;  %v2439_v37 = vrot.slane %v2431_v5, 1  ;;  %v2450_v51 = vrot.slane %v2431_v5, 3  ;;  %v2447_v15 = vrot.slane %v2431_v5, 2 }
 0x792   : > { %8176 = vpow2.f32 %v6156_v34  ;;  %v6157_v53 = vmul.f32 -1.442695, %v2439_v37  ;;  %v6158_v9 = vmul.f32 -1.442695, %v2450_v51 }
 0x794   : > { %8178 = vpow2.f32 %v6157_v53 }
 0x795   : > { %8180 = vpow2.f32 %v6158_v9 }
 0x79c   : > { %v8177_v60 = vpop.eup %8176 }
 0x79d   : > { %v2435_v46 = vadd.f32 1.0, %v8177_v60 }
 0x79e   : > { %v8179_v20 = vpop.eup %8178 }
 0x79f   : > { %8182 = vrcp.f32 %v2435_v46  ;;  %v2444_v21 = vadd.f32 1.0, %v8179_v20  ;;  %v8181_v33 = vpop.eup %8180 }
 0x7a0   : > { %8184 = vtanh.f32 %v2447_v15  ;;  %v2455_v45 = vadd.f32 1.0, %v8181_v33 }
 0x7a1   : > { %8186 = vrcp.f32 %v2444_v21 }
 0x7a2   : > { %8188 = vrcp.f32 %v2455_v45 }
 0x7a9   : > { %v8183_v44 = vpop.eup %8182 }
 0x7aa   : > { %v8185_v23 = vpop.eup %8184 }
 0x7ab   : > { %v8187_v48 = vpop.eup %8186  ;;  %v2459_v37 = vmul.f32 %v8185_v23, %v8183_v44 }
 0x7ac   : > { %v2458_v34 = vmul.f32 %v8187_v48, %v9614_v2  ;;  %v8189_v60 = vpop.eup %8188 }
 0x7ae   : > { %v9770_v53 = vadd.f32 %v2459_v37, %v2458_v34 }
 0x7b0   : > { %8190 = vtanh.f32 %v9770_v53 }
 0x7ba   : > { %v8191_v27 = vpop.eup %8190 }
 0x7bb   : > { %v9773_v59 = vmul.f32 %v8191_v27, %v8189_v60 }
 0x7bd   : > { %2670 = vmatmul.mubr.f32.vlgmr.msra.gmra.mrb[14].mxu0 %v9773_v59  ;;  %2741 = vmatmul.mubr.f32.vlgmr.msra.gmra.mrb[14].mxu1 %v9773_v59 }
 0x7be   : > { %6972 = vmatpush1.bf16.msra.mxu1 %v11126_v22  ;;  %2940 = vmatprep.mubr.f32.mxu1 %v11073_v61 }
 0x7bf   : > { %6974 = vmatprep.subr.bf16.mxu1 %v11127_v57  ;;  %6305 = vmatprep.mubr.msk.f32.mxu0 %vm8687_vm1, %v11073_v61 }
 0x7c2   : > { %6976 = vmatpush1.bf16.msra.mxu1 %v11128_v7 }
 0x7c3   : > { %6978 = vmatprep.subr.bf16.mxu1 %v11129_v30 }
 0x7c6   : > { %6980 = vmatpush1.bf16.msra.mxu1 %v11130_v1 }
 0x7c7   : > { %6982 = vmatprep.subr.bf16.mxu1 %v11131_v26 }
 0x7ca   : > { %6984 = vmatpush1.bf16.msra.mxu1 %v11132_v32 }
 0x7cb   : > { %6986 = vmatprep.subr.bf16.mxu1 %v11133_v24 }
 0x7ce   : > { %6988 = vmatpush1.bf16.msra.mxu1 %v11134_v40 }
 0x7cf   : > { %6990 = vmatprep.subr.bf16.mxu1 %v11135_v50 }
 0x7d2   : > { %6992 = vmatpush1.bf16.msra.mxu1 %v11136_v8 }
 0x7d3   : > { %6994 = vmatprep.subr.bf16.mxu1 %v11137_v18 }
 0x7d6   : > { %6996 = vmatpush1.bf16.msra.mxu1 %v11138_v31 }
 0x7d7   : > { %6998 = vmatprep.subr.bf16.mxu1 %v11139_v16 }
 0x7da   : > { %7000 = vmatpush1.bf16.msra.mxu1 %v11140_v0 }
 0x7db   : > { %7034 = vmatprep.subr.bf16.mxu1 %v11141_v3 }
 0x7dd   : > { %2941 = vmatmul.mubr.f32.vlgmr.msra.gmra.mrb[16].mxu1 %v9773_v59 }
 0x7de   : > { %7036 = vmatpush1.bf16.msra.mxu1 %v11142_v35  ;;  %3144 = vmatprep.mubr.f32.mxu1 %v11073_v61 }
 0x7df   : > { %7038 = vmatprep.subr.bf16.mxu1 %v11143_v63 }
 0x7e2   : > { %7040 = vmatpush1.bf16.msra.mxu1 %v11144_v54 }
 0x7e3   : > { %7042 = vmatprep.subr.bf16.mxu1 %v11145_v28 }
 0x7e6   : > { %7044 = vmatpush1.bf16.msra.mxu1 %v11146_v19 }
 0x7e7   : > { %7046 = vmatprep.subr.bf16.mxu1 %v11147_v62 }
 0x7ea   : > { %7048 = vmatpush1.bf16.msra.mxu1 %v11148_v49 }
 0x7eb   : > { %7050 = vmatprep.subr.bf16.mxu1 %v11149_v38 }
 0x7ee   : > { %7052 = vmatpush1.bf16.msra.mxu1 %v11150_v29 }
 0x7ef   : > { %7054 = vmatprep.subr.bf16.mxu1 %v11151_v42 }
 0x7f2   : > { %7056 = vmatpush1.bf16.msra.mxu1 %v11152_v13 }
 0x7f3   : > { %7058 = vmatprep.subr.bf16.mxu1 %v11153_v10 }
 0x7f6   : > { %7060 = vmatpush1.bf16.msra.mxu1 %v11154_v6 }
 0x7f7   : > { %7062 = vmatprep.subr.bf16.mxu1 %v11155_v4 }
 0x7fa   : > { %7064 = vmatpush1.bf16.msra.mxu1 %v11156_v58 }
 0x7fb   : > { %7098 = vmatprep.subr.bf16.mxu1 %v11157_v55 }
 0x890   : > { %v2671_v2 = vpop.f32.mrb[14].mxu0  ;;  %v2742_v5 = vpop.f32.mrb[14].mxu1 }
 0x891   : > { %v2747_v51 = vadd.f32 %v2671_v2, %v9446_v17  ;;  %v2673_v9 = vpop.f32.mrb[15].mxu0  ;;  %v2744_v15 = vpop.f32.mrb[15].mxu1  ;;  %v2749_v23 = vadd.f32 %v2742_v5, %v9457_v12 }
 0x892   : > { %v2748_v46 = vadd.f32 %v2673_v9, %v9448_v39  ;;  %v2750_v33 = vadd.f32 %v2744_v15, %v9453_v11 }
 0x893   : > { %v6159_v20 = vmul.f32 -1.442695, %v2747_v51 }
 0x894   : > { %v6160_v21 = vmul.f32 -1.442695, %v2748_v46  ;;  %v6161_v44 = vmul.f32 -1.442695, %v2750_v33  ;;  %v11255_v33 = vld [vmem:[#allocation98_spill] sm:$0xff] }
 0x895   : > { %8192 = vpow2.f32 %v6159_v20 }
 0x896   : > { %8194 = vpow2.f32 %v6160_v21 }
 0x897   : > { %8196 = vpow2.f32 %v6161_v44 }
 0x898   : > { %8198 = vtanh.f32 %v2749_v23 }
 0x89f   : > { %v8193_v48 = vpop.eup %8192 }
 0x8a0   : > { %v8195_v45 = vpop.eup %8194  ;;  %v2754_v34 = vadd.f32 1.0, %v8193_v48 }
 0x8a1   : > { %v2760_v37 = vadd.f32 1.0, %v8195_v45  ;;  %v8197_v60 = vpop.eup %8196  ;;  %v11247_v45 = vld [vmem:[#allocation90_spill] sm:$0xff] }
 0x8a2   : > { %8200 = vrcp.f32 %v2754_v34  ;;  %v8199_v27 = vpop.eup %8198  ;;  %v2767_v46 = vadd.f32 1.0, %v8197_v60  ;;  %v11248_v34 = vld [vmem:[#allocation127_spill] sm:$0xff]  ;;  %v11249_v60 = vld [vmem:[#allocation126_spill] sm:$0xff] }
 0x8a3   : > { %8202 = vrcp.f32 %v2760_v37 }
 0x8a4   : > { %8204 = vrcp.f32 %v2767_v46 }
 0x8ac   : > { %v8201_v2 = vpop.eup %8200 }
 0x8ad   : > { %v8203_v51 = vpop.eup %8202  ;;  %v2771_v9 = vmul.f32 %v8201_v2, %v8199_v27  ;;  %v11250_v2 = vld [vmem:[#allocation92_spill] sm:$0xff] }
 0x8ae   : > { %v2770_v20 = vmul.f32 %v8203_v51, %v9663_v52  ;;  %v8205_v44 = vpop.eup %8204  ;;  %v11251_v51 = vld [vmem:[#allocation94_spill] sm:$0xff] }
 0x8b0   : > { %v9819_v15 = vadd.f32 %v2771_v9, %v2770_v20  ;;  %v9821_v21 = vpop.f32.mrb[16].mxu1  ;;  %v11252_v9 = vld [vmem:[#allocation125_spill] sm:$0xff]  ;;  %v11253_v20 = vld [vmem:[#allocation128_spill] sm:$0xff] }
 0x8b1   : > { %v9823_v5 = vpop.f32.mrb[17].mxu1 }
 0x8b2   : > { %8206 = vtanh.f32 %v9819_v15 }
 0x8bc   : > { %v8207_v23 = vpop.eup %8206 }
 0x8bd   : > { %v9828_v48 = vmul.f32 %v8207_v23, %v8205_v44  ;;  %v11254_v23 = vld [vmem:[#allocation96_spill] sm:$0xff] }
 0x8bf   : > { %3145 = vmatmul.mubr.f32.vlgmr.msra.gmra.mrb[18].mxu1 %v9828_v48  ;;  %v2778_v52 = vrot.slane %v9828_v48, %v9439_v47 }
 0x8c0   : > { %7100 = vmatpush1.bf16.msra.mxu1 %v11247_v45  ;;  %3286 = vmatprep.mubr.f32.mxu1 %v11073_v61  ;;  %v11256_v45 = vld [vmem:[#allocation100_spill] sm:$0xff] }
 0x8c1   : > { %v2780_v37 = vmul.f32 %v2778_v52, %v11248_v34  ;;  %v2779_v27 = vmul.f32 %v2778_v52, %v11249_v60  ;;  %7102 = vmatprep.subr.bf16.mxu1 %v11250_v2  ;;  %v2782_v46 = vmul.f32 %v2778_v52, %v11252_v9  ;;  %v2781_v44 = vmul.f32 %v2778_v52, %v11253_v20  ;;  %v11257_v34 = vld [vmem:[#allocation102_spill] sm:$0xff]  ;;  %v11258_v60 = vld [vmem:[#allocation104_spill] sm:$0xff] }
 0x8c2   : > { %v11262_v9 = vld [vmem:[#allocation112_spill] sm:$0xff]  ;;  %v11263_v52 = vld [vmem:[#allocation114_spill] sm:$0xff] }
 0x8c3   : > { %2785 = vadd.xlane.f32.xlu1 %v2780_v37  ;;  %2783 = vadd.xlane.f32.xlu0 %v2779_v27  ;;  %v11259_v37 = vld [vmem:[#allocation106_spill] sm:$0xff]  ;;  %v11260_v27 = vld [vmem:[#allocation108_spill] sm:$0xff] }
 0x8c4   : > { %7104 = vmatpush1.bf16.msra.mxu1 %v11251_v51  ;;  %v11261_v51 = vld [vmem:[#allocation110_spill] sm:$0xff] }
 0x8c5   : > { %7106 = vmatprep.subr.bf16.mxu1 %v11254_v23  ;;  %v11265_v20 = vld [vmem:[#allocation118_spill] sm:$0xff] }
 0x8c7   : > { %2789 = vadd.xlane.f32.xlu1 %v2782_v46  ;;  %2787 = vadd.xlane.f32.xlu0 %v2781_v44  ;;  %v11264_v46 = vld [vmem:[#allocation116_spill] sm:$0xff] }
 0x8c8   : > { %7108 = vmatpush1.bf16.msra.mxu1 %v11255_v33 }
 0x8c9   : > { %7110 = vmatprep.subr.bf16.mxu1 %v11256_v45 }
 0x8cc   : > { %7112 = vmatpush1.bf16.msra.mxu1 %v11257_v34 }
 0x8cd   : > { %7114 = vmatprep.subr.bf16.mxu1 %v11258_v60 }
 0x8d0   : > { %7116 = vmatpush1.bf16.msra.mxu1 %v11259_v37 }
 0x8d1   : > { %7118 = vmatprep.subr.bf16.mxu1 %v11260_v27 }
 0x8d4   : > { %7120 = vmatpush1.bf16.msra.mxu1 %v11261_v51 }
 0x8d5   : > { %7122 = vmatprep.subr.bf16.mxu1 %v11262_v9 }
 0x8d8   : > { %7124 = vmatpush1.bf16.msra.mxu1 %v11263_v52 }
 0x8d9   : > { %7126 = vmatprep.subr.bf16.mxu1 %v11264_v46 }
 0x8dc   : > { %7128 = vmatpush1.bf16.msra.mxu1 %v11265_v20 }
 0x8dd   : > { %7161 = vmatprep.subr.bf16.mxu1 %v11190_v56 }
 0x950   : > { %v2786_v44 = vpop.xlane.xlu1 %2785  ;;  %v2784_v34 = vpop.xlane.xlu0 %2783 }
 0x951   : > { %v2792_v60 = vadd.f32 %v2786_v44, %v11191_v36  ;;  %v2791_v37 = vadd.f32 %v2784_v34, %v11192_v14  ;;  %v11266_v34 = vld [vmem:[#allocation27_spill] sm:$0xff] }
 0x953   : > { %8208 = vtanh.f32 %v2792_v60  ;;  %v11267_v60 = vld [vmem:[#allocation129_spill] sm:$0xff] }
 0x954   : > { %8210 = vtanh.f32 %v2791_v37  ;;  %v2790_v27 = vpop.xlane.xlu1 %2789  ;;  %v2788_v51 = vpop.xlane.xlu0 %2787  ;;  %v11268_v37 = vld [vmem:[#allocation30_spill] sm:$0xff] }
 0x955   : > { %v2794_v9 = vadd.f32 %v2790_v27, %v11194_v41  ;;  %v2793_v52 = vadd.f32 %v2788_v51, %v11193_v25  ;;  %v11269_v51 = vld [vmem:[#allocation32_spill] sm:$0xff]  ;;  %v11270_v27 = vld [vmem:[#allocation35_spill] sm:$0xff] }
 0x957   : > { %8212 = vtanh.f32 %v2794_v9  ;;  %v11271_v9 = vld [vmem:[#allocation36_spill] sm:$0xff] }
 0x958   : > { %8214 = vtanh.f32 %v2793_v52  ;;  %v11273_v52 = vld [vmem:[#allocation40_spill] sm:$0xff] }
 0x95d   : > { %v8209_v46 = vpop.eup %8208 }
 0x95e   : > { %v8211_v20 = vpop.eup %8210 }
 0x95f   : > { %v6964_v45 = vpack.c.bf16 %v8209_v46, %v8211_v20  ;;  %v11276_v46 = vld [vmem:[#allocation47_spill] sm:$0xff]  ;;  %v11277_v20 = vld [vmem:[#allocation48_spill] sm:$0xff] }
 0x961   : > { %v8213_v33 = vpop.eup %8212  ;;  %6965 = vmatpush3.bf16.msra.mxu0 %v6964_v45  ;;  %v11272_v45 = vld [vmem:[#allocation39_spill] sm:$0xff] }
 0x962   : > { %v8215_v23 = vpop.eup %8214  ;;  %6966 = vmatprep.subr.bf16.mxu0 %v11190_v56 }
 0x963   : > { %v6967_v44 = vpack.c.bf16 %v8213_v33, %v8215_v23  ;;  %v11274_v33 = vld [vmem:[#allocation43_spill] sm:$0xff]  ;;  %v11275_v23 = vld [vmem:[#allocation44_spill] sm:$0xff] }
 0x965   : > { %6968 = vmatpush3.bf16.msra.mxu0 %v6967_v44  ;;  %v11278_v44 = vld [vmem:[#allocation50_spill] sm:$0xff] }
 0x966   : > { %7002 = vmatprep.subr.bf16.mxu0 %v11266_v34 }
 0x968   : > { %6306 = vmatmul.mubr.msk.f32.vlgmr.msra.gmra.mrb[16].mxu0 %vm1561_vm2, %v11267_v60  ;;  %v11279_v60 = vld [vmem:[#allocation51_spill] sm:$0xff] }
 0x969   : > { %7004 = vmatpush1.bf16.msra.mxu0 %v11268_v37  ;;  %3011 = vmatprep.mubr.f32.mxu0 %v11073_v61 }
 0x96a   : > { %7006 = vmatprep.subr.bf16.mxu0 %v11269_v51  ;;  %v11280_v51 = vld [vmem:[#allocation52_spill] sm:$0xff] }
 0x96d   : > { %7008 = vmatpush1.bf16.msra.mxu0 %v11270_v27  ;;  %v11281_v27 = vld [vmem:[#allocation53_spill] sm:$0xff] }
 0x96e   : > { %7010 = vmatprep.subr.bf16.mxu0 %v11271_v9  ;;  %v11282_v9 = vld [vmem:[#allocation54_spill] sm:$0xff] }
 0x971   : > { %7012 = vmatpush1.bf16.msra.mxu0 %v11272_v45  ;;  %v11283_v45 = vld [vmem:[#allocation55_spill] sm:$0xff] }
 0x972   : > { %7014 = vmatprep.subr.bf16.mxu0 %v11273_v52 }
 0x975   : > { %7016 = vmatpush1.bf16.msra.mxu0 %v11274_v33  ;;  %v11284_v33 = vld [vmem:[#allocation57_spill] sm:$0xff] }
 0x976   : > { %7018 = vmatprep.subr.bf16.mxu0 %v11275_v23  ;;  %v11295_v23 = vld [vmem:[#allocation79_spill] sm:$0xff] }
 0x979   : > { %7020 = vmatpush1.bf16.msra.mxu0 %v11276_v46  ;;  %v11285_v46 = vld [vmem:[#allocation59_spill] sm:$0xff] }
 0x97a   : > { %7022 = vmatprep.subr.bf16.mxu0 %v11277_v20  ;;  %v11286_v20 = vld [vmem:[#allocation61_spill] sm:$0xff] }
 0x97d   : > { %7024 = vmatpush1.bf16.msra.mxu0 %v11278_v44  ;;  %v11287_v44 = vld [vmem:[#allocation63_spill] sm:$0xff] }
 0x97e   : > { %7026 = vmatprep.subr.bf16.mxu0 %v11279_v60  ;;  %v11288_v60 = vld [vmem:[#allocation65_spill] sm:$0xff] }
 0x981   : > { %7028 = vmatpush1.bf16.msra.mxu0 %v11280_v51  ;;  %v11289_v51 = vld [vmem:[#allocation67_spill] sm:$0xff] }
 0x982   : > { %7030 = vmatprep.subr.bf16.mxu0 %v11281_v27  ;;  %v11290_v27 = vld [vmem:[#allocation69_spill] sm:$0xff] }
 0x985   : > { %7032 = vmatpush1.bf16.msra.mxu0 %v11282_v9  ;;  %v11291_v9 = vld [vmem:[#allocation71_spill] sm:$0xff] }
 0x986   : > { %7066 = vmatprep.subr.bf16.mxu0 %v11283_v45  ;;  %v11292_v45 = vld [vmem:[#allocation73_spill] sm:$0xff] }
 0x988   : > { %3012 = vmatmul.mubr.f32.vlgmr.msra.gmra.mrb[18].mxu0 %v9773_v59  ;;  %v11293_v59 = vld [vmem:[#allocation75_spill] sm:$0xff] }
 0x989   : > { %7068 = vmatpush1.bf16.msra.mxu0 %v11284_v33  ;;  %3215 = vmatprep.mubr.f32.mxu0 %v11073_v61  ;;  %v11294_v33 = vld [vmem:[#allocation77_spill] sm:$0xff] }
 0x98a   : > { %7070 = vmatprep.subr.bf16.mxu0 %v11285_v46  ;;  %v11296_v46 = vld [vmem:[#allocation81_spill] sm:$0xff] }
 0x98d   : > { %7072 = vmatpush1.bf16.msra.mxu0 %v11286_v20  ;;  %v11297_v20 = vld [vmem:[#allocation83_spill] sm:$0xff] }
 0x98e   : > { %7074 = vmatprep.subr.bf16.mxu0 %v11287_v44  ;;  %v11298_v44 = vld [vmem:[#allocation85_spill] sm:$0xff] }
 0x991   : > { %7076 = vmatpush1.bf16.msra.mxu0 %v11288_v60  ;;  %v11299_v60 = vld [vmem:[#allocation87_spill] sm:$0xff] }
 0x992   : > { %7078 = vmatprep.subr.bf16.mxu0 %v11289_v51 }
 0x995   : > { %7080 = vmatpush1.bf16.msra.mxu0 %v11290_v27  ;;  %v11300_v27 = vld [vmem:[#allocation89_spill] sm:$0xff] }
 0x996   : > { %7082 = vmatprep.subr.bf16.mxu0 %v11291_v9  ;;  %v11313_v9 = vld [vmem:[#allocation115_spill] sm:$0xff] }
 0x999   : > { %7084 = vmatpush1.bf16.msra.mxu0 %v11292_v45  ;;  %v11301_v45 = vld [vmem:[#allocation91_spill] sm:$0xff] }
 0x99a   : > { %7086 = vmatprep.subr.bf16.mxu0 %v11293_v59  ;;  %v11302_v59 = vld [vmem:[#allocation93_spill] sm:$0xff] }
 0x99d   : > { %7088 = vmatpush1.bf16.msra.mxu0 %v11294_v33  ;;  %v11303_v33 = vld [vmem:[#allocation95_spill] sm:$0xff] }
 0x99e   : > { %7090 = vmatprep.subr.bf16.mxu0 %v11295_v23  ;;  %v11310_v23 = vld [vmem:[#allocation109_spill] sm:$0xff] }
 0x9a1   : > { %7092 = vmatpush1.bf16.msra.mxu0 %v11296_v46  ;;  %v11304_v46 = vld [vmem:[#allocation97_spill] sm:$0xff] }
 0x9a2   : > { %7094 = vmatprep.subr.bf16.mxu0 %v11297_v20  ;;  %v11305_v20 = vld [vmem:[#allocation99_spill] sm:$0xff] }
 0x9a5   : > { %7096 = vmatpush1.bf16.msra.mxu0 %v11298_v44  ;;  %v11306_v44 = vld [vmem:[#allocation101_spill] sm:$0xff] }
 0x9a6   : > { %7130 = vmatprep.subr.bf16.mxu0 %v11299_v60  ;;  %v11307_v60 = vld [vmem:[#allocation103_spill] sm:$0xff] }
 0x9a8   : > { %3216 = vmatmul.mubr.f32.vlgmr.msra.gmra.mrb[20].mxu0 %v9828_v48  ;;  %v11308_v48 = vld [vmem:[#allocation105_spill] sm:$0xff] }
 0x9a9   : > { %7132 = vmatpush1.bf16.msra.mxu0 %v11300_v27  ;;  %3357 = vmatprep.mubr.f32.mxu0 %v11073_v61  ;;  %v11309_v27 = vld [vmem:[#allocation107_spill] sm:$0xff] }
 0x9aa   : > { %7134 = vmatprep.subr.bf16.mxu0 %v11301_v45  ;;  %v11311_v45 = vld [vmem:[#allocation111_spill] sm:$0xff] }
 0x9ad   : > { %7136 = vmatpush1.bf16.msra.mxu0 %v11302_v59  ;;  %v11312_v59 = vld [vmem:[#allocation113_spill] sm:$0xff] }
 0x9ae   : > { %7138 = vmatprep.subr.bf16.mxu0 %v11303_v33  ;;  %v11314_v33 = vld [vmem:[#allocation117_spill] sm:$0xff] }
 0x9b1   : > { %7140 = vmatpush1.bf16.msra.mxu0 %v11304_v46  ;;  %v11315_v46 = vld [vmem:[#allocation23_spill] sm:$0xff] }
 0x9b2   : > { %7142 = vmatprep.subr.bf16.mxu0 %v11305_v20 }
 0x9b5   : > { %7144 = vmatpush1.bf16.msra.mxu0 %v11306_v44 }
 0x9b6   : > { %7146 = vmatprep.subr.bf16.mxu0 %v11307_v60 }
 0x9b9   : > { %7148 = vmatpush1.bf16.msra.mxu0 %v11308_v48 }
 0x9ba   : > { %7150 = vmatprep.subr.bf16.mxu0 %v11309_v27 }
 0x9bd   : > { %7152 = vmatpush1.bf16.msra.mxu0 %v11310_v23 }
 0x9be   : > { %7154 = vmatprep.subr.bf16.mxu0 %v11311_v45  ;;  %v11317_v45 = vcombine.low %v9821_v21, %v9823_v5 }
 0x9c1   : > { %7156 = vmatpush1.bf16.msra.mxu0 %v11312_v59  ;;  %v3030_v59 = vrot.slane %v11317_v45, %v11174_v43 }
 0x9c2   : > { %7158 = vmatprep.subr.bf16.mxu0 %v11313_v9 }
 0x9c5   : > { %7160 = vmatpush1.bf16.msra.mxu0 %v11314_v33  ;;  %v2875_v33 = vld [vmem:[%s2874_s28] sm:$0xf]  ;;  %s4108_s28 = scalar_lea.vmem [#allocation9], %s6179_s23  ;;  %s6195_s23 = sshll.u32 %s5340_s24, 2 }
 0x9c6   : > { %7168 = vmatprep.subr.bf16.mxu0 %v11315_v46  ;;  %s5957_s24 = scalar_lea.sflag [#allocation8], %s9000_s10 }
 0xa3b   : > { %v9915_v20 = vpop.f32.mrb[16].mxu0 }
 0xa3c   : > { %11316 = vst [vmem:[#allocation26_spill] sm:$0xff] %v9915_v20  ;;  %v6307_v44 = vpop.f32.mrb[17].mxu0 }
 0xa3d   : > { %v9927_v44 = vld [vmem:[%s11105_s20] sm:$0xf] }
 0xa3e   : > { %11318 = vst [vmem:[#allocation28_spill] sm:$0xff] %v9927_v44 }
 0xa5b   : > { %v3013_v48 = vpop.f32.mrb[18].mxu0 }
 0xa5c   : > { %v3015_v27 = vpop.f32.mrb[19].mxu0 }
 0xa5d   : > { %v3023_v60 = vcombine.low %v3013_v48, %v3015_v27 }
 0xa5f   : > { %v3037_v9 = vrot.slane %v3023_v60, %v11174_v43 }
 0xa61   : > { %v3038_v23 = vcombine.low %v3030_v59, %v3037_v9 }
 0xa63   : > { %v3045_v46 = vrot.slane %v3038_v23, %v11174_v43 }
 0xa65   : > { %v3047_v20 = vadd.f32 %v3045_v46, %v2875_v33 }
 0xa67   : > { %v3048_v27 = vadd.f32 %v9927_v44, %v3047_v20 }
 0xa69   : > { %v6164_v48 = vmul.f32 -1.442695, %v3048_v27  ;;  %v3056_v51 = vrot.slane %v3048_v27, 1  ;;  %v3067_v5 = vrot.slane %v3048_v27, 3  ;;  %v3064_v60 = vrot.slane %v3048_v27, 2 }
 0xa6b   : > { %8216 = vpow2.f32 %v6164_v48  ;;  %v6165_v21 = vmul.f32 -1.442695, %v3056_v51  ;;  %v6166_v45 = vmul.f32 -1.442695, %v3067_v5 }
 0xa6d   : > { %8218 = vpow2.f32 %v6165_v21 }
 0xa6e   : > { %8220 = vpow2.f32 %v6166_v45 }
 0xa75   : > { %v8217_v9 = vpop.eup %8216 }
 0xa76   : > { %v3052_v59 = vadd.f32 1.0, %v8217_v9 }
 0xa77   : > { %v8219_v52 = vpop.eup %8218 }
 0xa78   : > { %8222 = vrcp.f32 %v3052_v59  ;;  %v3061_v33 = vadd.f32 1.0, %v8219_v52  ;;  %v8221_v23 = vpop.eup %8220 }
 0xa79   : > { %8224 = vtanh.f32 %v3064_v60  ;;  %v3072_v44 = vadd.f32 1.0, %v8221_v23 }
 0xa7a   : > { %8226 = vrcp.f32 %v3061_v33 }
 0xa7b   : > { %8228 = vrcp.f32 %v3072_v44 }
 0xa82   : > { %v8223_v46 = vpop.eup %8222 }
 0xa83   : > { %v8225_v43 = vpop.eup %8224 }
 0xa84   : > { %v8227_v20 = vpop.eup %8226  ;;  %v3076_v51 = vmul.f32 %v8225_v43, %v8223_v46 }
 0xa85   : > { %v3075_v48 = vmul.f32 %v8227_v20, %v9770_v53  ;;  %v8229_v27 = vpop.eup %8228 }
 0xa87   : > { %v9931_v21 = vadd.f32 %v3076_v51, %v3075_v48 }
 0xa89   : > { %8230 = vtanh.f32 %v9931_v21 }
 0xa93   : > { %v8231_v5 = vpop.eup %8230 }
 0xa94   : > { %v9934_v45 = vmul.f32 %v8231_v5, %v8229_v27 }
 0xa96   : > { %3287 = vmatmul.mubr.f32.vlgmr.msra.gmra.mrb[18].mxu1 %v9934_v45  ;;  %3358 = vmatmul.mubr.f32.vlgmr.msra.gmra.mrb[20].mxu0 %v9934_v45 }
 0xa97   : > { %7170 = vmatpush1.bf16.msra.mxu0 %v11126_v22  ;;  %3557 = vmatprep.mubr.f32.mxu0 %v11073_v61 }
 0xa98   : > { %7172 = vmatprep.subr.bf16.mxu0 %v11127_v57  ;;  %6316 = vmatprep.mubr.msk.f32.mxu1 %vm8687_vm1, %v11073_v61 }
 0xa9b   : > { %7174 = vmatpush1.bf16.msra.mxu0 %v11128_v7 }
 0xa9c   : > { %7176 = vmatprep.subr.bf16.mxu0 %v11129_v30 }
 0xa9f   : > { %7178 = vmatpush1.bf16.msra.mxu0 %v11130_v1 }
 0xaa0   : > { %7180 = vmatprep.subr.bf16.mxu0 %v11131_v26 }
 0xaa3   : > { %7182 = vmatpush1.bf16.msra.mxu0 %v11132_v32 }
 0xaa4   : > { %7184 = vmatprep.subr.bf16.mxu0 %v11133_v24 }
 0xaa7   : > { %7186 = vmatpush1.bf16.msra.mxu0 %v11134_v40 }
 0xaa8   : > { %7188 = vmatprep.subr.bf16.mxu0 %v11135_v50 }
 0xaab   : > { %7190 = vmatpush1.bf16.msra.mxu0 %v11136_v8 }
 0xaac   : > { %7192 = vmatprep.subr.bf16.mxu0 %v11137_v18 }
 0xaaf   : > { %7194 = vmatpush1.bf16.msra.mxu0 %v11138_v31 }
 0xab0   : > { %7196 = vmatprep.subr.bf16.mxu0 %v11139_v16 }
 0xab3   : > { %7198 = vmatpush1.bf16.msra.mxu0 %v11140_v0 }
 0xab4   : > { %7232 = vmatprep.subr.bf16.mxu0 %v11141_v3 }
 0xab6   : > { %3558 = vmatmul.mubr.f32.vlgmr.msra.gmra.mrb[22].mxu0 %v9934_v45 }
 0xab7   : > { %7234 = vmatpush1.bf16.msra.mxu0 %v11142_v35  ;;  %3761 = vmatprep.mubr.f32.mxu0 %v11073_v61 }
 0xab8   : > { %7236 = vmatprep.subr.bf16.mxu0 %v11143_v63 }
 0xabb   : > { %7238 = vmatpush1.bf16.msra.mxu0 %v11144_v54 }
 0xabc   : > { %7240 = vmatprep.subr.bf16.mxu0 %v11145_v28 }
 0xabf   : > { %7242 = vmatpush1.bf16.msra.mxu0 %v11146_v19 }
 0xac0   : > { %7244 = vmatprep.subr.bf16.mxu0 %v11147_v62 }
 0xac3   : > { %7246 = vmatpush1.bf16.msra.mxu0 %v11148_v49 }
 0xac4   : > { %7248 = vmatprep.subr.bf16.mxu0 %v11149_v38 }
 0xac7   : > { %7250 = vmatpush1.bf16.msra.mxu0 %v11150_v29 }
 0xac8   : > { %7252 = vmatprep.subr.bf16.mxu0 %v11151_v42 }
 0xacb   : > { %7254 = vmatpush1.bf16.msra.mxu0 %v11152_v13 }
 0xacc   : > { %7256 = vmatprep.subr.bf16.mxu0 %v11153_v10 }
 0xacf   : > { %7258 = vmatpush1.bf16.msra.mxu0 %v11154_v6 }
 0xad0   : > { %7260 = vmatprep.subr.bf16.mxu0 %v11155_v4 }
 0xad3   : > { %7262 = vmatpush1.bf16.msra.mxu0 %v11156_v58 }
 0xad4   : > { %7296 = vmatprep.subr.bf16.mxu0 %v11157_v55 }
 0xb69   : > { %v3288_v43 = vpop.f32.mrb[18].mxu1  ;;  %v3359_v53 = vpop.f32.mrb[20].mxu0 }
 0xb6a   : > { %v3364_v52 = vadd.f32 %v3288_v43, %v9446_v17  ;;  %v3290_v44 = vpop.f32.mrb[19].mxu1  ;;  %v3361_v9 = vpop.f32.mrb[21].mxu0  ;;  %v3366_v20 = vadd.f32 %v3359_v53, %v9457_v12 }
 0xb6b   : > { %v3365_v60 = vadd.f32 %v3290_v44, %v9448_v39  ;;  %v3367_v23 = vadd.f32 %v3361_v9, %v9453_v11 }
 0xb6c   : > { %v6167_v59 = vmul.f32 -1.442695, %v3364_v52 }
 0xb6d   : > { %v6168_v33 = vmul.f32 -1.442695, %v3365_v60  ;;  %v6169_v46 = vmul.f32 -1.442695, %v3367_v23 }
 0xb6e   : > { %8232 = vpow2.f32 %v6167_v59 }
 0xb6f   : > { %8234 = vpow2.f32 %v6168_v33 }
 0xb70   : > { %8236 = vpow2.f32 %v6169_v46  ;;  %v11328_v46 = vld [vmem:[#allocation102_spill] sm:$0xff] }
 0xb71   : > { %8238 = vtanh.f32 %v3366_v20 }
 0xb78   : > { %v8233_v48 = vpop.eup %8232 }
 0xb79   : > { %v8235_v51 = vpop.eup %8234  ;;  %v3371_v27 = vadd.f32 1.0, %v8233_v48 }
 0xb7a   : > { %v3377_v5 = vadd.f32 1.0, %v8235_v51  ;;  %v8237_v43 = vpop.eup %8236 }
 0xb7b   : > { %8240 = vrcp.f32 %v3371_v27  ;;  %v8239_v17 = vpop.eup %8238  ;;  %v3384_v59 = vadd.f32 1.0, %v8237_v43  ;;  %v9999_v27 = vld [vmem:[%s11109_s17 + $0x8] sm:$0xff]  ;;  %v10005_v43 = vld [vmem:[%s11109_s17] sm:$0xff] }
 0xb7c   : > { %8242 = vrcp.f32 %v3377_v5  ;;  %11320 = vst [vmem:[#allocation29_spill] sm:$0xff] %v9999_v27  ;;  %11321 = vst [vmem:[#allocation31_spill] sm:$0xff] %v10005_v43 }
 0xb7d   : > { %8244 = vrcp.f32 %v3384_v59 }
 0xb85   : > { %v8241_v44 = vpop.eup %8240 }
 0xb86   : > { %v8243_v52 = vpop.eup %8242  ;;  %v3388_v60 = vmul.f32 %v8241_v44, %v8239_v17 }
 0xb87   : > { %v3387_v33 = vmul.f32 %v8243_v52, %v9819_v15  ;;  %v8245_v20 = vpop.eup %8244  ;;  %v11319_v15 = vld [vmem:[#allocation90_spill] sm:$0xff] }
 0xb88   : > { %v11322_v52 = vld [vmem:[#allocation94_spill] sm:$0xff] }
 0xb89   : > { %v9980_v9 = vadd.f32 %v3388_v60, %v3387_v33  ;;  %v9982_v23 = vpop.f32.mrb[22].mxu0  ;;  %v10013_v60 = vld [vmem:[%s11109_s17 + $0x18] sm:$0xff]  ;;  %v10019_v33 = vld [vmem:[%s11109_s17 + $0x10] sm:$0xff] }
 0xb8a   : > { %v9984_v53 = vpop.f32.mrb[23].mxu0  ;;  %11323 = vst [vmem:[#allocation33_spill] sm:$0xff] %v10013_v60  ;;  %11324 = vst [vmem:[#allocation34_spill] sm:$0xff] %v10019_v33 }
 0xb8b   : > { %8246 = vtanh.f32 %v9980_v9 }
 0xb95   : > { %v8247_v48 = vpop.eup %8246 }
 0xb96   : > { %v9989_v51 = vmul.f32 %v8247_v48, %v8245_v20  ;;  %v11325_v48 = vld [vmem:[#allocation96_spill] sm:$0xff] }
 0xb98   : > { %3762 = vmatmul.mubr.f32.vlgmr.msra.gmra.mrb[24].mxu0 %v9989_v51  ;;  %v3395_v17 = vrot.slane %v9989_v51, %v9439_v47 }
 0xb99   : > { %7298 = vmatpush1.bf16.msra.mxu0 %v11319_v15  ;;  %3903 = vmatprep.mubr.f32.mxu0 %v11073_v61 }
 0xb9a   : > { %v3397_v5 = vmul.f32 %v9999_v27, %v3395_v17  ;;  %v3396_v44 = vmul.f32 %v10005_v43, %v3395_v17  ;;  %7300 = vmatprep.subr.bf16.mxu0 %v11250_v2  ;;  %v3399_v59 = vmul.f32 %v10013_v60, %v3395_v17  ;;  %v3398_v20 = vmul.f32 %v10019_v33, %v3395_v17  ;;  %v11330_v60 = vld [vmem:[#allocation106_spill] sm:$0xff]  ;;  %v11331_v2 = vld [vmem:[#allocation108_spill] sm:$0xff] }
 0xb9b   : > { %v11332_v43 = vld [vmem:[#allocation110_spill] sm:$0xff]  ;;  %v11333_v27 = vld [vmem:[#allocation112_spill] sm:$0xff] }
 0xb9c   : > { %3402 = vadd.xlane.f32.xlu1 %v3397_v5  ;;  %3400 = vadd.xlane.f32.xlu0 %v3396_v44  ;;  %v11326_v5 = vld [vmem:[#allocation98_spill] sm:$0xff]  ;;  %v11327_v44 = vld [vmem:[#allocation100_spill] sm:$0xff] }
 0xb9d   : > { %7302 = vmatpush1.bf16.msra.mxu0 %v11322_v52  ;;  %v11329_v52 = vld [vmem:[#allocation104_spill] sm:$0xff]  ;;  %v11334_v17 = vld [vmem:[#allocation114_spill] sm:$0xff] }
 0xb9e   : > { %7304 = vmatprep.subr.bf16.mxu0 %v11325_v48 }
 0xba0   : > { %3406 = vadd.xlane.f32.xlu1 %v3399_v59  ;;  %3404 = vadd.xlane.f32.xlu0 %v3398_v20  ;;  %v11335_v59 = vld [vmem:[#allocation116_spill] sm:$0xff]  ;;  %v11336_v20 = vld [vmem:[#allocation118_spill] sm:$0xff] }
 0xba1   : > { %7306 = vmatpush1.bf16.msra.mxu0 %v11326_v5 }
 0xba2   : > { %7308 = vmatprep.subr.bf16.mxu0 %v11327_v44 }
 0xba5   : > { %7310 = vmatpush1.bf16.msra.mxu0 %v11328_v46 }
 0xba6   : > { %7312 = vmatprep.subr.bf16.mxu0 %v11329_v52 }
 0xba9   : > { %7314 = vmatpush1.bf16.msra.mxu0 %v11330_v60 }
 0xbaa   : > { %7316 = vmatprep.subr.bf16.mxu0 %v11331_v2 }
 0xbad   : > { %7318 = vmatpush1.bf16.msra.mxu0 %v11332_v43 }
 0xbae   : > { %7320 = vmatprep.subr.bf16.mxu0 %v11333_v27 }
 0xbb1   : > { %7322 = vmatpush1.bf16.msra.mxu0 %v11334_v17 }
 0xbb2   : > { %7324 = vmatprep.subr.bf16.mxu0 %v11335_v59 }
 0xbb5   : > { %7326 = vmatpush1.bf16.msra.mxu0 %v11336_v20 }
 0xbb6   : > { %7359 = vmatprep.subr.bf16.mxu0 %v11190_v56 }
 0xc29   : > { %v3403_v44 = vpop.xlane.xlu1 %3402  ;;  %v3401_v46 = vpop.xlane.xlu0 %3400 }
 0xc2a   : > { %v3409_v52 = vadd.f32 %v3403_v44, %v11191_v36  ;;  %v3408_v60 = vadd.f32 %v3401_v46, %v11192_v14  ;;  %v11338_v46 = vld [vmem:[#allocation32_spill] sm:$0xff] }
 0xc2c   : > { %8248 = vtanh.f32 %v3409_v52  ;;  %v11341_v52 = vld [vmem:[#allocation39_spill] sm:$0xff] }
 0xc2d   : > { %8250 = vtanh.f32 %v3408_v60  ;;  %v3407_v2 = vpop.xlane.xlu1 %3406  ;;  %v3405_v43 = vpop.xlane.xlu0 %3404  ;;  %v11342_v60 = vld [vmem:[#allocation40_spill] sm:$0xff] }
 0xc2e   : > { %v3411_v27 = vadd.f32 %v3407_v2, %v11194_v41  ;;  %v3410_v17 = vadd.f32 %v3405_v43, %v11193_v25  ;;  %v10044_v2 = vld [vmem:[%s11124_s11] sm:$0x1] }
 0xc2f   : > { %11337 = vst [vmem:[#allocation37_spill] sm:$0xff] %v10044_v2  ;;  %v11340_v43 = vld [vmem:[#allocation36_spill] sm:$0xff] }
 0xc30   : > { %8252 = vtanh.f32 %v3411_v27  ;;  %v11339_v27 = vld [vmem:[#allocation35_spill] sm:$0xff] }
 0xc31   : > { %8254 = vtanh.f32 %v3410_v17  ;;  %v11346_v17 = vld [vmem:[#allocation48_spill] sm:$0xff] }
 0xc36   : > { %v8249_v59 = vpop.eup %8248 }
 0xc37   : > { %v8251_v20 = vpop.eup %8250 }
 0xc38   : > { %v7162_v5 = vpack.c.bf16 %v8249_v59, %v8251_v20  ;;  %v11347_v59 = vld [vmem:[#allocation50_spill] sm:$0xff]  ;;  %v11348_v20 = vld [vmem:[#allocation51_spill] sm:$0xff] }
 0xc3a   : > { %v8253_v48 = vpop.eup %8252  ;;  %7163 = vmatpush3.bf16.msra.mxu1 %v7162_v5  ;;  %v11345_v5 = vld [vmem:[#allocation47_spill] sm:$0xff] }
 0xc3b   : > { %v8255_v33 = vpop.eup %8254  ;;  %7164 = vmatprep.subr.bf16.mxu1 %v11190_v56 }
 0xc3c   : > { %v7165_v44 = vpack.c.bf16 %v8253_v48, %v8255_v33  ;;  %v11343_v33 = vld [vmem:[#allocation43_spill] sm:$0xff]  ;;  %v11344_v48 = vld [vmem:[#allocation44_spill] sm:$0xff] }
 0xc3e   : > { %7166 = vmatpush3.bf16.msra.mxu1 %v7165_v44  ;;  %v11349_v44 = vld [vmem:[#allocation52_spill] sm:$0xff] }
 0xc3f   : > { %7200 = vmatprep.subr.bf16.mxu1 %v11266_v34 }
 0xc41   : > { %6317 = vmatmul.mubr.msk.f32.vlgmr.msra.gmra.mrb[20].mxu1 %vm1561_vm2, %v10044_v2 }
 0xc42   : > { %7202 = vmatpush1.bf16.msra.mxu1 %v11268_v37  ;;  %3628 = vmatprep.mubr.f32.mxu1 %v11073_v61 }
 0xc43   : > { %7204 = vmatprep.subr.bf16.mxu1 %v11338_v46 }
 0xc46   : > { %7206 = vmatpush1.bf16.msra.mxu1 %v11339_v27  ;;  %v11350_v27 = vld [vmem:[#allocation53_spill] sm:$0xff] }
 0xc47   : > { %7208 = vmatprep.subr.bf16.mxu1 %v11340_v43  ;;  %v11351_v43 = vld [vmem:[#allocation54_spill] sm:$0xff] }
 0xc4a   : > { %7210 = vmatpush1.bf16.msra.mxu1 %v11341_v52  ;;  %v11352_v52 = vld [vmem:[#allocation55_spill] sm:$0xff] }
 0xc4b   : > { %7212 = vmatprep.subr.bf16.mxu1 %v11342_v60 }
 0xc4e   : > { %7214 = vmatpush1.bf16.msra.mxu1 %v11343_v33  ;;  %v11353_v33 = vld [vmem:[#allocation57_spill] sm:$0xff] }
 0xc4f   : > { %7216 = vmatprep.subr.bf16.mxu1 %v11344_v48  ;;  %v11364_v48 = vld [vmem:[#allocation79_spill] sm:$0xff] }
 0xc52   : > { %7218 = vmatpush1.bf16.msra.mxu1 %v11345_v5  ;;  %v11354_v5 = vld [vmem:[#allocation59_spill] sm:$0xff] }
 0xc53   : > { %7220 = vmatprep.subr.bf16.mxu1 %v11346_v17  ;;  %v11355_v17 = vld [vmem:[#allocation61_spill] sm:$0xff] }
 0xc56   : > { %7222 = vmatpush1.bf16.msra.mxu1 %v11347_v59  ;;  %v11356_v59 = vld [vmem:[#allocation63_spill] sm:$0xff] }
 0xc57   : > { %7224 = vmatprep.subr.bf16.mxu1 %v11348_v20  ;;  %v11357_v20 = vld [vmem:[#allocation65_spill] sm:$0xff] }
 0xc5a   : > { %7226 = vmatpush1.bf16.msra.mxu1 %v11349_v44  ;;  %v11358_v44 = vld [vmem:[#allocation67_spill] sm:$0xff] }
 0xc5b   : > { %7228 = vmatprep.subr.bf16.mxu1 %v11350_v27  ;;  %v11359_v27 = vld [vmem:[#allocation69_spill] sm:$0xff] }
 0xc5e   : > { %7230 = vmatpush1.bf16.msra.mxu1 %v11351_v43  ;;  %v11360_v43 = vld [vmem:[#allocation71_spill] sm:$0xff] }
 0xc5f   : > { %7264 = vmatprep.subr.bf16.mxu1 %v11352_v52  ;;  %v11361_v52 = vld [vmem:[#allocation73_spill] sm:$0xff] }
 0xc61   : > { %3629 = vmatmul.mubr.f32.vlgmr.msra.gmra.mrb[22].mxu1 %v9934_v45  ;;  %v11362_v45 = vld [vmem:[#allocation75_spill] sm:$0xff] }
 0xc62   : > { %7266 = vmatpush1.bf16.msra.mxu1 %v11353_v33  ;;  %3832 = vmatprep.mubr.f32.mxu1 %v11073_v61  ;;  %v11363_v33 = vld [vmem:[#allocation77_spill] sm:$0xff] }
 0xc63   : > { %7268 = vmatprep.subr.bf16.mxu1 %v11354_v5  ;;  %v11365_v5 = vld [vmem:[#allocation81_spill] sm:$0xff] }
 0xc66   : > { %7270 = vmatpush1.bf16.msra.mxu1 %v11355_v17  ;;  %v11366_v17 = vld [vmem:[#allocation83_spill] sm:$0xff] }
 0xc67   : > { %7272 = vmatprep.subr.bf16.mxu1 %v11356_v59  ;;  %v11367_v59 = vld [vmem:[#allocation85_spill] sm:$0xff] }
 0xc6a   : > { %7274 = vmatpush1.bf16.msra.mxu1 %v11357_v20  ;;  %v11368_v20 = vld [vmem:[#allocation87_spill] sm:$0xff] }
 0xc6b   : > { %7276 = vmatprep.subr.bf16.mxu1 %v11358_v44 }
 0xc6e   : > { %7278 = vmatpush1.bf16.msra.mxu1 %v11359_v27  ;;  %v11369_v27 = vld [vmem:[#allocation89_spill] sm:$0xff] }
 0xc6f   : > { %7280 = vmatprep.subr.bf16.mxu1 %v11360_v43  ;;  %v11382_v43 = vld [vmem:[#allocation115_spill] sm:$0xff] }
 0xc72   : > { %7282 = vmatpush1.bf16.msra.mxu1 %v11361_v52  ;;  %v11370_v52 = vld [vmem:[#allocation91_spill] sm:$0xff] }
 0xc73   : > { %7284 = vmatprep.subr.bf16.mxu1 %v11362_v45  ;;  %v11371_v45 = vld [vmem:[#allocation93_spill] sm:$0xff] }
 0xc76   : > { %7286 = vmatpush1.bf16.msra.mxu1 %v11363_v33  ;;  %v11372_v33 = vld [vmem:[#allocation95_spill] sm:$0xff] }
 0xc77   : > { %7288 = vmatprep.subr.bf16.mxu1 %v11364_v48  ;;  %v11379_v48 = vld [vmem:[#allocation109_spill] sm:$0xff] }
 0xc7a   : > { %7290 = vmatpush1.bf16.msra.mxu1 %v11365_v5  ;;  %v11373_v5 = vld [vmem:[#allocation97_spill] sm:$0xff] }
 0xc7b   : > { %7292 = vmatprep.subr.bf16.mxu1 %v11366_v17  ;;  %v11374_v17 = vld [vmem:[#allocation99_spill] sm:$0xff] }
 0xc7e   : > { %7294 = vmatpush1.bf16.msra.mxu1 %v11367_v59  ;;  %v11375_v59 = vld [vmem:[#allocation101_spill] sm:$0xff] }
 0xc7f   : > { %7328 = vmatprep.subr.bf16.mxu1 %v11368_v20  ;;  %v11376_v20 = vld [vmem:[#allocation103_spill] sm:$0xff] }
 0xc81   : > { %3833 = vmatmul.mubr.f32.vlgmr.msra.gmra.mrb[24].mxu1 %v9989_v51  ;;  %v11377_v51 = vld [vmem:[#allocation105_spill] sm:$0xff] }
 0xc82   : > { %7330 = vmatpush1.bf16.msra.mxu1 %v11369_v27  ;;  %3974 = vmatprep.mubr.f32.mxu1 %v11073_v61  ;;  %v11378_v27 = vld [vmem:[#allocation107_spill] sm:$0xff] }
 0xc83   : > { %7332 = vmatprep.subr.bf16.mxu1 %v11370_v52  ;;  %v11380_v52 = vld [vmem:[#allocation111_spill] sm:$0xff] }
 0xc86   : > { %7334 = vmatpush1.bf16.msra.mxu1 %v11371_v45  ;;  %v11381_v45 = vld [vmem:[#allocation113_spill] sm:$0xff] }
 0xc87   : > { %7336 = vmatprep.subr.bf16.mxu1 %v11372_v33  ;;  %v11383_v33 = vld [vmem:[#allocation117_spill] sm:$0xff] }
 0xc8a   : > { %7338 = vmatpush1.bf16.msra.mxu1 %v11373_v5  ;;  %v11384_v5 = vld [vmem:[#allocation23_spill] sm:$0xff] }
 0xc8b   : > { %7340 = vmatprep.subr.bf16.mxu1 %v11374_v17 }
 0xc8e   : > { %7342 = vmatpush1.bf16.msra.mxu1 %v11375_v59 }
 0xc8f   : > { %7344 = vmatprep.subr.bf16.mxu1 %v11376_v20 }
 0xc92   : > { %7346 = vmatpush1.bf16.msra.mxu1 %v11377_v51 }
 0xc93   : > { %7348 = vmatprep.subr.bf16.mxu1 %v11378_v27 }
 0xc96   : > { %7350 = vmatpush1.bf16.msra.mxu1 %v11379_v48  ;;  %v11386_v48 = vld [vmem:[#allocation123_spill] sm:$0xff] }
 0xc97   : > { %7352 = vmatprep.subr.bf16.mxu1 %v11380_v52  ;;  %v11387_v52 = vcombine.low %v9982_v23, %v9984_v53 }
 0xc9a   : > { %7354 = vmatpush1.bf16.msra.mxu1 %v11381_v45  ;;  %v3647_v45 = vrot.slane %v11387_v52, %v11386_v48 }
 0xc9b   : > { %7356 = vmatprep.subr.bf16.mxu1 %v11382_v43 }
 0xc9e   : > { %7358 = vmatpush1.bf16.msra.mxu1 %v11383_v33  ;;  %v3492_v33 = vld [vmem:[%s3491_s22] sm:$0xf]  ;;  %s11603_s22 = sld [smem:[#allocation137_spill]] }
 0xc9f   : > { %7366 = vmatprep.subr.bf16.mxu1 %v11384_v5 }
 0xca4   : > { %s10661_s29 = scalar_lea.hbm %s11603_s22, %s9370_s1 }
 0xd14   : > { %v10101_v17 = vpop.f32.mrb[20].mxu1 }
 0xd15   : > { %11385 = vst [vmem:[#allocation38_spill] sm:$0xff] %v10101_v17  ;;  %v6318_v59 = vpop.f32.mrb[21].mxu1 }
 0xd16   : > { %v11388_v59 = vld [vmem:[#allocation28_spill] sm:$0xff] }
 0xd34   : > { %v3630_v51 = vpop.f32.mrb[22].mxu1 }
 0xd35   : > { %v3632_v27 = vpop.f32.mrb[23].mxu1 }
 0xd36   : > { %v3640_v20 = vcombine.low %v3630_v51, %v3632_v27 }
 0xd38   : > { %v3654_v43 = vrot.slane %v3640_v20, %v11386_v48 }
 0xd3a   : > { %v3655_v44 = vcombine.low %v3647_v45, %v3654_v43 }
 0xd3c   : > { %v3662_v5 = vrot.slane %v3655_v44, %v11386_v48 }
 0xd3e   : > { %v3664_v17 = vadd.f32 %v3662_v5, %v3492_v33 }
 0xd40   : > { %v3665_v60 = vadd.f32 %v11388_v59, %v3664_v17 }
 0xd42   : > { %v6172_v46 = vmul.f32 -1.442695, %v3665_v60  ;;  %v3673_v37 = vrot.slane %v3665_v60, 1  ;;  %v3684_v27 = vrot.slane %v3665_v60, 3  ;;  %v3681_v23 = vrot.slane %v3665_v60, 2 }
 0xd44   : > { %8256 = vpow2.f32 %v6172_v46  ;;  %v6173_v2 = vmul.f32 -1.442695, %v3673_v37  ;;  %v6174_v51 = vmul.f32 -1.442695, %v3684_v27 }
 0xd46   : > { %8258 = vpow2.f32 %v6173_v2 }
 0xd47   : > { %8260 = vpow2.f32 %v6174_v51  ;;  %v11389_v51 = vld [vmem:[#allocation124_spill] sm:$0xff] }
 0xd4e   : > { %v8257_v34 = vpop.eup %8256 }
 0xd4f   : > { %v3669_v53 = vadd.f32 1.0, %v8257_v34 }
 0xd50   : > { %v8259_v52 = vpop.eup %8258 }
 0xd51   : > { %8262 = vrcp.f32 %v3669_v53  ;;  %v3678_v43 = vadd.f32 1.0, %v8259_v52  ;;  %v8261_v20 = vpop.eup %8260 }
 0xd52   : > { %8264 = vtanh.f32 %v3681_v23  ;;  %v3689_v44 = vadd.f32 1.0, %v8261_v20 }
 0xd53   : > { %8266 = vrcp.f32 %v3678_v43 }
 0xd54   : > { %8268 = vrcp.f32 %v3689_v44 }
 0xd5b   : > { %v8263_v33 = vpop.eup %8262 }
 0xd5c   : > { %v8265_v5 = vpop.eup %8264 }
 0xd5d   : > { %v8267_v17 = vpop.eup %8266  ;;  %v3693_v37 = vmul.f32 %v8265_v5, %v8263_v33 }
 0xd5e   : > { %v3692_v46 = vmul.f32 %v8267_v17, %v9931_v21  ;;  %v8269_v34 = vpop.eup %8268 }
 0xd60   : > { %v10112_v2 = vadd.f32 %v3693_v37, %v3692_v46 }
 0xd62   : > { %8270 = vtanh.f32 %v10112_v2 }
 0xd6c   : > { %v8271_v60 = vpop.eup %8270 }
 0xd6d   : > { %v10115_v45 = vmul.f32 %v8271_v60, %v8269_v34 }
 0xd6f   : > { %3904 = vmatmul.mubr.f32.vlgmr.msra.gmra.mrb[24].mxu0 %v10115_v45  ;;  %3975 = vmatmul.mubr.f32.vlgmr.msra.gmra.mrb[24].mxu1 %v10115_v45 }
 0xd70   : > { %7368 = vmatpush1.bf16.msra.mxu1 %v11126_v22  ;;  %4174 = vmatprep.mubr.f32.mxu1 %v11073_v61 }
 0xd71   : > { %7370 = vmatprep.subr.bf16.mxu1 %v11127_v57  ;;  %6327 = vmatprep.mubr.msk.f32.mxu0 %vm8687_vm1, %v11073_v61 }
 0xd74   : > { %7372 = vmatpush1.bf16.msra.mxu1 %v11128_v7 }
 0xd75   : > { %7374 = vmatprep.subr.bf16.mxu1 %v11129_v30 }
 0xd78   : > { %7376 = vmatpush1.bf16.msra.mxu1 %v11130_v1 }
 0xd79   : > { %7378 = vmatprep.subr.bf16.mxu1 %v11131_v26 }
 0xd7c   : > { %7380 = vmatpush1.bf16.msra.mxu1 %v11132_v32 }
 0xd7d   : > { %7382 = vmatprep.subr.bf16.mxu1 %v11133_v24 }
 0xd80   : > { %7384 = vmatpush1.bf16.msra.mxu1 %v11134_v40 }
 0xd81   : > { %7386 = vmatprep.subr.bf16.mxu1 %v11135_v50 }
 0xd84   : > { %7388 = vmatpush1.bf16.msra.mxu1 %v11136_v8 }
 0xd85   : > { %7390 = vmatprep.subr.bf16.mxu1 %v11137_v18 }
 0xd88   : > { %7392 = vmatpush1.bf16.msra.mxu1 %v11138_v31 }
 0xd89   : > { %7394 = vmatprep.subr.bf16.mxu1 %v11139_v16 }
 0xd8c   : > { %7396 = vmatpush1.bf16.msra.mxu1 %v11140_v0 }
 0xd8d   : > { %7430 = vmatprep.subr.bf16.mxu1 %v11141_v3 }
 0xd8f   : > { %4175 = vmatmul.mubr.f32.vlgmr.msra.gmra.mrb[26].mxu1 %v10115_v45 }
 0xd90   : > { %7432 = vmatpush1.bf16.msra.mxu1 %v11142_v35  ;;  %4378 = vmatprep.mubr.f32.mxu1 %v11073_v61 }
 0xd91   : > { %7434 = vmatprep.subr.bf16.mxu1 %v11143_v63 }
 0xd94   : > { %7436 = vmatpush1.bf16.msra.mxu1 %v11144_v54 }
 0xd95   : > { %7438 = vmatprep.subr.bf16.mxu1 %v11145_v28 }
 0xd98   : > { %7440 = vmatpush1.bf16.msra.mxu1 %v11146_v19 }
 0xd99   : > { %7442 = vmatprep.subr.bf16.mxu1 %v11147_v62 }
 0xd9c   : > { %7444 = vmatpush1.bf16.msra.mxu1 %v11148_v49 }
 0xd9d   : > { %7446 = vmatprep.subr.bf16.mxu1 %v11149_v38 }
 0xda0   : > { %7448 = vmatpush1.bf16.msra.mxu1 %v11150_v29 }
 0xda1   : > { %7450 = vmatprep.subr.bf16.mxu1 %v11151_v42 }
 0xda4   : > { %7452 = vmatpush1.bf16.msra.mxu1 %v11152_v13 }
 0xda5   : > { %7454 = vmatprep.subr.bf16.mxu1 %v11153_v10 }
 0xda8   : > { %7456 = vmatpush1.bf16.msra.mxu1 %v11154_v6 }
 0xda9   : > { %7458 = vmatprep.subr.bf16.mxu1 %v11155_v4 }
 0xdac   : > { %7460 = vmatpush1.bf16.msra.mxu1 %v11156_v58 }
 0xdad   : > { %7494 = vmatprep.subr.bf16.mxu1 %v11157_v55 }
 0xe42   : > { %v3905_v21 = vpop.f32.mrb[24].mxu0  ;;  %v3976_v27 = vpop.f32.mrb[24].mxu1 }
 0xe43   : > { %v3981_v23 = vadd.f32 %v3905_v21, %v11389_v51  ;;  %v3907_v53 = vpop.f32.mrb[25].mxu0  ;;  %v3978_v52 = vpop.f32.mrb[25].mxu1  ;;  %v3983_v44 = vadd.f32 %v3976_v27, %v9457_v12 }
 0xe44   : > { %v3982_v43 = vadd.f32 %v3907_v53, %v9448_v39  ;;  %v3984_v5 = vadd.f32 %v3978_v52, %v9453_v11 }
 0xe45   : > { %v6175_v20 = vmul.f32 -1.442695, %v3981_v23 }
 0xe46   : > { %v6176_v33 = vmul.f32 -1.442695, %v3982_v43  ;;  %v6177_v17 = vmul.f32 -1.442695, %v3984_v5 }
 0xe47   : > { %8272 = vpow2.f32 %v6175_v20 }
 0xe48   : > { %8274 = vpow2.f32 %v6176_v33 }
 0xe49   : > { %8276 = vpow2.f32 %v6177_v17  ;;  %v11397_v17 = vld [vmem:[#allocation98_spill] sm:$0xff] }
 0xe4a   : > { %8278 = vtanh.f32 %v3983_v44 }
 0xe51   : > { %v8273_v46 = vpop.eup %8272 }
 0xe52   : > { %v8275_v37 = vpop.eup %8274  ;;  %v3988_v34 = vadd.f32 1.0, %v8273_v46 }
 0xe53   : > { %v3994_v60 = vadd.f32 1.0, %v8275_v37  ;;  %v8277_v21 = vpop.eup %8276 }
 0xe54   : > { %8280 = vrcp.f32 %v3988_v34  ;;  %v8279_v51 = vpop.eup %8278  ;;  %v4001_v20 = vadd.f32 1.0, %v8277_v21 }
 0xe55   : > { %8282 = vrcp.f32 %v3994_v60  ;;  %v11391_v60 = vld [vmem:[#allocation31_spill] sm:$0xff] }
 0xe56   : > { %8284 = vrcp.f32 %v4001_v20 }
 0xe5e   : > { %v8281_v53 = vpop.eup %8280 }
 0xe5f   : > { %v8283_v23 = vpop.eup %8282  ;;  %v4005_v43 = vmul.f32 %v8281_v53, %v8279_v51  ;;  %v11390_v51 = vld [vmem:[#allocation29_spill] sm:$0xff]  ;;  %v11392_v53 = vld [vmem:[#allocation92_spill] sm:$0xff] }
 0xe60   : > { %v4004_v33 = vmul.f32 %v8283_v23, %v9980_v9  ;;  %v8285_v44 = vpop.eup %8284  ;;  %v11393_v23 = vld [vmem:[#allocation94_spill] sm:$0xff] }
 0xe62   : > { %v10161_v52 = vadd.f32 %v4005_v43, %v4004_v33  ;;  %v10163_v5 = vpop.f32.mrb[26].mxu1  ;;  %v11394_v43 = vld [vmem:[#allocation33_spill] sm:$0xff]  ;;  %v11395_v33 = vld [vmem:[#allocation34_spill] sm:$0xff] }
 0xe63   : > { %v10165_v27 = vpop.f32.mrb[27].mxu1 }
 0xe64   : > { %8286 = vtanh.f32 %v10161_v52 }
 0xe6e   : > { %v8287_v46 = vpop.eup %8286 }
 0xe6f   : > { %v10170_v37 = vmul.f32 %v8287_v46, %v8285_v44  ;;  %v11396_v46 = vld [vmem:[#allocation96_spill] sm:$0xff] }
 0xe71   : > { %4379 = vmatmul.mubr.f32.vlgmr.msra.gmra.mrb[28].mxu1 %v10170_v37  ;;  %v4012_v9 = vrot.slane %v10170_v37, %v9439_v47 }
 0xe72   : > { %7496 = vmatpush1.bf16.msra.mxu1 %v11319_v15  ;;  %4520 = vmatprep.mubr.f32.mxu1 %v11073_v61  ;;  %v11398_v15 = vld [vmem:[#allocation100_spill] sm:$0xff] }
 0xe73   : > { %v4014_v34 = vmul.f32 %v11390_v51, %v4012_v9  ;;  %v4013_v21 = vmul.f32 %v11391_v60, %v4012_v9  ;;  %7498 = vmatprep.subr.bf16.mxu1 %v11392_v53  ;;  %v4016_v20 = vmul.f32 %v11394_v43, %v4012_v9  ;;  %v4015_v44 = vmul.f32 %v11395_v33, %v4012_v9  ;;  %v11399_v51 = vld [vmem:[#allocation102_spill] sm:$0xff]  ;;  %v11400_v60 = vld [vmem:[#allocation104_spill] sm:$0xff] }
 0xe74   : > { %v11404_v43 = vld [vmem:[#allocation112_spill] sm:$0xff]  ;;  %v11405_v9 = vld [vmem:[#allocation114_spill] sm:$0xff] }
 0xe75   : > { %4019 = vadd.xlane.f32.xlu1 %v4014_v34  ;;  %4017 = vadd.xlane.f32.xlu0 %v4013_v21  ;;  %v11401_v34 = vld [vmem:[#allocation106_spill] sm:$0xff]  ;;  %v11402_v21 = vld [vmem:[#allocation108_spill] sm:$0xff] }
 0xe76   : > { %7500 = vmatpush1.bf16.msra.mxu1 %v11393_v23  ;;  %v11403_v23 = vld [vmem:[#allocation110_spill] sm:$0xff] }
 0xe77   : > { %7502 = vmatprep.subr.bf16.mxu1 %v11396_v46 }
 0xe79   : > { %4023 = vadd.xlane.f32.xlu1 %v4016_v20  ;;  %4021 = vadd.xlane.f32.xlu0 %v4015_v44  ;;  %v11406_v20 = vld [vmem:[#allocation116_spill] sm:$0xff]  ;;  %v11407_v44 = vld [vmem:[#allocation118_spill] sm:$0xff] }
 0xe7a   : > { %7504 = vmatpush1.bf16.msra.mxu1 %v11397_v17 }
 0xe7b   : > { %7506 = vmatprep.subr.bf16.mxu1 %v11398_v15 }
 0xe7e   : > { %7508 = vmatpush1.bf16.msra.mxu1 %v11399_v51 }
 0xe7f   : > { %7510 = vmatprep.subr.bf16.mxu1 %v11400_v60 }
 0xe82   : > { %7512 = vmatpush1.bf16.msra.mxu1 %v11401_v34 }
 0xe83   : > { %7514 = vmatprep.subr.bf16.mxu1 %v11402_v21 }
 0xe86   : > { %7516 = vmatpush1.bf16.msra.mxu1 %v11403_v23 }
 0xe87   : > { %7518 = vmatprep.subr.bf16.mxu1 %v11404_v43 }
 0xe8a   : > { %7520 = vmatpush1.bf16.msra.mxu1 %v11405_v9 }
 0xe8b   : > { %7522 = vmatprep.subr.bf16.mxu1 %v11406_v20 }
 0xe8e   : > { %7524 = vmatpush1.bf16.msra.mxu1 %v11407_v44 }
 0xe8f   : > { %7557 = vmatprep.subr.bf16.mxu1 %v11190_v56 }
 0xf02   : > { %v4020_v15 = vpop.xlane.xlu1 %4019  ;;  %v4018_v51 = vpop.xlane.xlu0 %4017 }
 0xf03   : > { %v4026_v60 = vadd.f32 %v4020_v15, %v11191_v36  ;;  %v4025_v34 = vadd.f32 %v4018_v51, %v11192_v14  ;;  %v11408_v51 = vld [vmem:[#allocation27_spill] sm:$0xff] }
 0xf05   : > { %8288 = vtanh.f32 %v4026_v60  ;;  %v11409_v60 = vld [vmem:[#allocation37_spill] sm:$0xff] }
 0xf06   : > { %8290 = vtanh.f32 %v4025_v34  ;;  %v4024_v21 = vpop.xlane.xlu1 %4023  ;;  %v4022_v23 = vpop.xlane.xlu0 %4021  ;;  %v11410_v34 = vld [vmem:[#allocation30_spill] sm:$0xff] }
 0xf07   : > { %v4028_v43 = vadd.f32 %v4024_v21, %v11194_v41  ;;  %v4027_v9 = vadd.f32 %v4022_v23, %v11193_v25  ;;  %v11411_v23 = vld [vmem:[#allocation32_spill] sm:$0xff] }
 0xf08   : > { %v11413_v21 = vld [vmem:[#allocation36_spill] sm:$0xff] }
 0xf09   : > { %8292 = vtanh.f32 %v4028_v43  ;;  %v11412_v43 = vld [vmem:[#allocation35_spill] sm:$0xff] }
 0xf0a   : > { %8294 = vtanh.f32 %v4027_v9  ;;  %v11415_v9 = vld [vmem:[#allocation40_spill] sm:$0xff] }
 0xf0f   : > { %v8289_v20 = vpop.eup %8288 }
 0xf10   : > { %v8291_v44 = vpop.eup %8290 }
 0xf11   : > { %v7360_v17 = vpack.c.bf16 %v8289_v20, %v8291_v44  ;;  %v11418_v20 = vld [vmem:[#allocation47_spill] sm:$0xff]  ;;  %v11419_v44 = vld [vmem:[#allocation48_spill] sm:$0xff] }
 0xf13   : > { %v8293_v46 = vpop.eup %8292  ;;  %7361 = vmatpush3.bf16.msra.mxu0 %v7360_v17  ;;  %v11414_v17 = vld [vmem:[#allocation39_spill] sm:$0xff] }
 0xf14   : > { %v8295_v33 = vpop.eup %8294  ;;  %7362 = vmatprep.subr.bf16.mxu0 %v11190_v56 }
 0xf15   : > { %v7363_v15 = vpack.c.bf16 %v8293_v46, %v8295_v33  ;;  %v11416_v33 = vld [vmem:[#allocation43_spill] sm:$0xff]  ;;  %v11417_v46 = vld [vmem:[#allocation44_spill] sm:$0xff] }
 0xf17   : > { %7364 = vmatpush3.bf16.msra.mxu0 %v7363_v15  ;;  %v11420_v15 = vld [vmem:[#allocation50_spill] sm:$0xff] }
 0xf18   : > { %7398 = vmatprep.subr.bf16.mxu0 %v11408_v51 }
 0xf1a   : > { %6328 = vmatmul.mubr.msk.f32.vlgmr.msra.gmra.mrb[26].mxu0 %vm1561_vm2, %v11409_v60 }
 0xf1b   : > { %7400 = vmatpush1.bf16.msra.mxu0 %v11410_v34  ;;  %4245 = vmatprep.mubr.f32.mxu0 %v11073_v61  ;;  %v11421_v34 = vld [vmem:[#allocation51_spill] sm:$0xff] }
 0xf1c   : > { %7402 = vmatprep.subr.bf16.mxu0 %v11411_v23  ;;  %v11422_v23 = vld [vmem:[#allocation52_spill] sm:$0xff] }
 0xf1f   : > { %7404 = vmatpush1.bf16.msra.mxu0 %v11412_v43  ;;  %v11423_v43 = vld [vmem:[#allocation53_spill] sm:$0xff] }
 0xf20   : > { %7406 = vmatprep.subr.bf16.mxu0 %v11413_v21  ;;  %v11424_v21 = vld [vmem:[#allocation54_spill] sm:$0xff] }
 0xf23   : > { %7408 = vmatpush1.bf16.msra.mxu0 %v11414_v17  ;;  %v11425_v17 = vld [vmem:[#allocation55_spill] sm:$0xff] }
 0xf24   : > { %7410 = vmatprep.subr.bf16.mxu0 %v11415_v9 }
 0xf27   : > { %7412 = vmatpush1.bf16.msra.mxu0 %v11416_v33  ;;  %v11426_v33 = vld [vmem:[#allocation57_spill] sm:$0xff] }
 0xf28   : > { %7414 = vmatprep.subr.bf16.mxu0 %v11417_v46  ;;  %v11437_v46 = vld [vmem:[#allocation79_spill] sm:$0xff] }
 0xf2b   : > { %7416 = vmatpush1.bf16.msra.mxu0 %v11418_v20  ;;  %v11427_v20 = vld [vmem:[#allocation59_spill] sm:$0xff] }
 0xf2c   : > { %7418 = vmatprep.subr.bf16.mxu0 %v11419_v44  ;;  %v11428_v44 = vld [vmem:[#allocation61_spill] sm:$0xff] }
 0xf2f   : > { %7420 = vmatpush1.bf16.msra.mxu0 %v11420_v15  ;;  %v11429_v15 = vld [vmem:[#allocation63_spill] sm:$0xff] }
 0xf30   : > { %7422 = vmatprep.subr.bf16.mxu0 %v11421_v34  ;;  %v11430_v34 = vld [vmem:[#allocation65_spill] sm:$0xff] }
 0xf33   : > { %7424 = vmatpush1.bf16.msra.mxu0 %v11422_v23  ;;  %v11431_v23 = vld [vmem:[#allocation67_spill] sm:$0xff] }
 0xf34   : > { %7426 = vmatprep.subr.bf16.mxu0 %v11423_v43  ;;  %v11432_v43 = vld [vmem:[#allocation69_spill] sm:$0xff] }
 0xf37   : > { %7428 = vmatpush1.bf16.msra.mxu0 %v11424_v21  ;;  %v11433_v21 = vld [vmem:[#allocation71_spill] sm:$0xff] }
 0xf38   : > { %7462 = vmatprep.subr.bf16.mxu0 %v11425_v17  ;;  %v11434_v17 = vld [vmem:[#allocation73_spill] sm:$0xff] }
 0xf3a   : > { %4246 = vmatmul.mubr.f32.vlgmr.msra.gmra.mrb[28].mxu0 %v10115_v45  ;;  %v11435_v45 = vld [vmem:[#allocation75_spill] sm:$0xff] }
 0xf3b   : > { %7464 = vmatpush1.bf16.msra.mxu0 %v11426_v33  ;;  %4449 = vmatprep.mubr.f32.mxu0 %v11073_v61  ;;  %v11436_v33 = vld [vmem:[#allocation77_spill] sm:$0xff] }
 0xf3c   : > { %7466 = vmatprep.subr.bf16.mxu0 %v11427_v20  ;;  %v11438_v20 = vld [vmem:[#allocation81_spill] sm:$0xff] }
 0xf3f   : > { %7468 = vmatpush1.bf16.msra.mxu0 %v11428_v44  ;;  %v11439_v44 = vld [vmem:[#allocation83_spill] sm:$0xff] }
 0xf40   : > { %7470 = vmatprep.subr.bf16.mxu0 %v11429_v15  ;;  %v11440_v15 = vld [vmem:[#allocation85_spill] sm:$0xff] }
 0xf43   : > { %7472 = vmatpush1.bf16.msra.mxu0 %v11430_v34  ;;  %v11441_v34 = vld [vmem:[#allocation87_spill] sm:$0xff] }
 0xf44   : > { %7474 = vmatprep.subr.bf16.mxu0 %v11431_v23 }
 0xf47   : > { %7476 = vmatpush1.bf16.msra.mxu0 %v11432_v43  ;;  %v11442_v43 = vld [vmem:[#allocation89_spill] sm:$0xff] }
 0xf48   : > { %7478 = vmatprep.subr.bf16.mxu0 %v11433_v21  ;;  %v11455_v21 = vld [vmem:[#allocation115_spill] sm:$0xff] }
 0xf4b   : > { %7480 = vmatpush1.bf16.msra.mxu0 %v11434_v17  ;;  %v11443_v17 = vld [vmem:[#allocation91_spill] sm:$0xff] }
 0xf4c   : > { %7482 = vmatprep.subr.bf16.mxu0 %v11435_v45  ;;  %v11444_v45 = vld [vmem:[#allocation93_spill] sm:$0xff] }
 0xf4f   : > { %7484 = vmatpush1.bf16.msra.mxu0 %v11436_v33  ;;  %v11445_v33 = vld [vmem:[#allocation95_spill] sm:$0xff] }
 0xf50   : > { %7486 = vmatprep.subr.bf16.mxu0 %v11437_v46  ;;  %v11452_v46 = vld [vmem:[#allocation109_spill] sm:$0xff] }
 0xf53   : > { %7488 = vmatpush1.bf16.msra.mxu0 %v11438_v20  ;;  %v11446_v20 = vld [vmem:[#allocation97_spill] sm:$0xff] }
 0xf54   : > { %7490 = vmatprep.subr.bf16.mxu0 %v11439_v44  ;;  %v11447_v44 = vld [vmem:[#allocation99_spill] sm:$0xff] }
 0xf57   : > { %7492 = vmatpush1.bf16.msra.mxu0 %v11440_v15  ;;  %v11448_v15 = vld [vmem:[#allocation101_spill] sm:$0xff] }
 0xf58   : > { %7526 = vmatprep.subr.bf16.mxu0 %v11441_v34  ;;  %v11449_v34 = vld [vmem:[#allocation103_spill] sm:$0xff] }
 0xf5a   : > { %4450 = vmatmul.mubr.f32.vlgmr.msra.gmra.mrb[30].mxu0 %v10170_v37  ;;  %v11450_v37 = vld [vmem:[#allocation105_spill] sm:$0xff] }
 0xf5b   : > { %7528 = vmatpush1.bf16.msra.mxu0 %v11442_v43  ;;  %4591 = vmatprep.mubr.f32.mxu0 %v11073_v61  ;;  %v11451_v43 = vld [vmem:[#allocation107_spill] sm:$0xff] }
 0xf5c   : > { %7530 = vmatprep.subr.bf16.mxu0 %v11443_v17  ;;  %v11453_v17 = vld [vmem:[#allocation111_spill] sm:$0xff] }
 0xf5f   : > { %7532 = vmatpush1.bf16.msra.mxu0 %v11444_v45  ;;  %v11454_v45 = vld [vmem:[#allocation113_spill] sm:$0xff] }
 0xf60   : > { %7534 = vmatprep.subr.bf16.mxu0 %v11445_v33  ;;  %v11456_v33 = vld [vmem:[#allocation117_spill] sm:$0xff] }
 0xf63   : > { %7536 = vmatpush1.bf16.msra.mxu0 %v11446_v20  ;;  %v11457_v20 = vld [vmem:[#allocation23_spill] sm:$0xff] }
 0xf64   : > { %7538 = vmatprep.subr.bf16.mxu0 %v11447_v44 }
 0xf67   : > { %7540 = vmatpush1.bf16.msra.mxu0 %v11448_v15 }
 0xf68   : > { %7542 = vmatprep.subr.bf16.mxu0 %v11449_v34 }
 0xf6b   : > { %7544 = vmatpush1.bf16.msra.mxu0 %v11450_v37 }
 0xf6c   : > { %7546 = vmatprep.subr.bf16.mxu0 %v11451_v43 }
 0xf6f   : > { %7548 = vmatpush1.bf16.msra.mxu0 %v11452_v46 }
 0xf70   : > { %7550 = vmatprep.subr.bf16.mxu0 %v11453_v17  ;;  %v11459_v17 = vcombine.low %v10163_v5, %v10165_v27 }
 0xf73   : > { %7552 = vmatpush1.bf16.msra.mxu0 %v11454_v45  ;;  %v4264_v45 = vrot.slane %v11459_v17, %v11386_v48 }
 0xf74   : > { %7554 = vmatprep.subr.bf16.mxu0 %v11455_v21 }
 0xf77   : > { %7556 = vmatpush1.bf16.msra.mxu0 %v11456_v33  ;;  %v4109_v33 = vld [vmem:[%s4108_s28] sm:$0xf]  ;;  %s5342_s28 = scalar_lea.vmem [#allocation9], %s6195_s23  ;;  %s8592_s23 = scalar_lea.vmem %s10663_s2, 128 }
 0xf78   : > { %7564 = vmatprep.subr.bf16.mxu0 %v11457_v20  ;;  %p8593_p4 = scmp.ne.s32.totalorder %s10663_s2, %s8592_s23 }
 0xf7a   : > { %p8594_p6 = pnand %p8593_p4, %p8948_p0 }
 0xf7c   : > { %p8595_p11 = pneg %p8594_p6 }
 0xfed   : > { %v10257_v44 = vpop.f32.mrb[26].mxu0 }
 0xfee   : > { %11458 = vst [vmem:[#allocation41_spill] sm:$0xff] %v10257_v44  ;;  %v6329_v15 = vpop.f32.mrb[27].mxu0 }
0x100d   : > { %v4247_v37 = vpop.f32.mrb[28].mxu0 }
0x100e   : > { %v4249_v43 = vpop.f32.mrb[29].mxu0 }
0x100f   : > { %v4257_v34 = vcombine.low %v4247_v37, %v4249_v43 }
0x1011   : > { %v4271_v21 = vrot.slane %v4257_v34, %v11386_v48 }
0x1013   : > { %v4272_v46 = vcombine.low %v4264_v45, %v4271_v21 }
0x1015   : > { %v4279_v20 = vrot.slane %v4272_v46, %v11386_v48 }
0x1017   : > { %v4281_v44 = vadd.f32 %v4279_v20, %v4109_v33 }
0x1019   : > { %v4282_v15 = vadd.f32 %v11388_v59, %v4281_v44 }
0x101b   : > { %v6180_v23 = vmul.f32 -1.442695, %v4282_v15  ;;  %v4290_v9 = vrot.slane %v4282_v15, 1  ;;  %v4301_v43 = vrot.slane %v4282_v15, 3  ;;  %v4298_v5 = vrot.slane %v4282_v15, 2 }
0x101d   : > { %8296 = vpow2.f32 %v6180_v23  ;;  %v6181_v60 = vmul.f32 -1.442695, %v4290_v9  ;;  %v6182_v37 = vmul.f32 -1.442695, %v4301_v43  ;;  %v11460_v43 = vld [vmem:[#allocation124_spill] sm:$0xff] }
0x101f   : > { %8298 = vpow2.f32 %v6181_v60 }
0x1020   : > { %8300 = vpow2.f32 %v6182_v37 }
0x1027   : > { %v8297_v51 = vpop.eup %8296 }
0x1028   : > { %v4286_v27 = vadd.f32 1.0, %v8297_v51 }
0x1029   : > { %v8299_v17 = vpop.eup %8298 }
0x102a   : > { %8302 = vrcp.f32 %v4286_v27  ;;  %v4295_v34 = vadd.f32 1.0, %v8299_v17  ;;  %v8301_v21 = vpop.eup %8300 }
0x102b   : > { %8304 = vtanh.f32 %v4298_v5  ;;  %v4306_v20 = vadd.f32 1.0, %v8301_v21 }
0x102c   : > { %8306 = vrcp.f32 %v4295_v34 }
0x102d   : > { %8308 = vrcp.f32 %v4306_v20 }
0x1034   : > { %v8303_v33 = vpop.eup %8302 }
0x1035   : > { %v8305_v46 = vpop.eup %8304 }
0x1036   : > { %v8307_v59 = vpop.eup %8306  ;;  %v4310_v9 = vmul.f32 %v8305_v46, %v8303_v33 }
0x1037   : > { %v4309_v23 = vmul.f32 %v8307_v59, %v10112_v2  ;;  %v8309_v51 = vpop.eup %8308 }
0x1039   : > { %v10268_v60 = vadd.f32 %v4310_v9, %v4309_v23 }
0x103b   : > { %8310 = vtanh.f32 %v10268_v60 }
0x1045   : > { %v8311_v44 = vpop.eup %8310 }
0x1046   : > { %v10271_v45 = vmul.f32 %v8311_v44, %v8309_v51 }
0x1048   : > { %4521 = vmatmul.mubr.f32.vlgmr.msra.gmra.mrb[28].mxu1 %v10271_v45  ;;  %4592 = vmatmul.mubr.f32.vlgmr.msra.gmra.mrb[30].mxu0 %v10271_v45 }
0x1049   : > { %7566 = vmatpush1.bf16.msra.mxu0 %v11126_v22  ;;  %4791 = vmatprep.mubr.f32.mxu0 %v11073_v61 }
0x104a   : > { %7568 = vmatprep.subr.bf16.mxu0 %v11127_v57  ;;  %6338 = vmatprep.mubr.msk.f32.mxu1 %vm8687_vm1, %v11073_v61 }
0x104d   : > { %7570 = vmatpush1.bf16.msra.mxu0 %v11128_v7 }
0x104e   : > { %7572 = vmatprep.subr.bf16.mxu0 %v11129_v30 }
0x1051   : > { %7574 = vmatpush1.bf16.msra.mxu0 %v11130_v1 }
0x1052   : > { %7576 = vmatprep.subr.bf16.mxu0 %v11131_v26 }
0x1055   : > { %7578 = vmatpush1.bf16.msra.mxu0 %v11132_v32 }
0x1056   : > { %7580 = vmatprep.subr.bf16.mxu0 %v11133_v24 }
0x1059   : > { %7582 = vmatpush1.bf16.msra.mxu0 %v11134_v40 }
0x105a   : > { %7584 = vmatprep.subr.bf16.mxu0 %v11135_v50 }
0x105d   : > { %7586 = vmatpush1.bf16.msra.mxu0 %v11136_v8 }
0x105e   : > { %7588 = vmatprep.subr.bf16.mxu0 %v11137_v18 }
0x1061   : > { %7590 = vmatpush1.bf16.msra.mxu0 %v11138_v31 }
0x1062   : > { %7592 = vmatprep.subr.bf16.mxu0 %v11139_v16 }
0x1065   : > { %7594 = vmatpush1.bf16.msra.mxu0 %v11140_v0 }
0x1066   : > { %7628 = vmatprep.subr.bf16.mxu0 %v11141_v3 }
0x1068   : > { %4792 = vmatmul.mubr.f32.vlgmr.msra.gmra.mrb[32].mxu0 %v10271_v45 }
0x1069   : > { %7630 = vmatpush1.bf16.msra.mxu0 %v11142_v35  ;;  %4995 = vmatprep.mubr.f32.mxu0 %v11073_v61 }
0x106a   : > { %7632 = vmatprep.subr.bf16.mxu0 %v11143_v63 }
0x106d   : > { %7634 = vmatpush1.bf16.msra.mxu0 %v11144_v54 }
0x106e   : > { %7636 = vmatprep.subr.bf16.mxu0 %v11145_v28 }
0x1071   : > { %7638 = vmatpush1.bf16.msra.mxu0 %v11146_v19 }
0x1072   : > { %7640 = vmatprep.subr.bf16.mxu0 %v11147_v62 }
0x1075   : > { %7642 = vmatpush1.bf16.msra.mxu0 %v11148_v49 }
0x1076   : > { %7644 = vmatprep.subr.bf16.mxu0 %v11149_v38 }
0x1079   : > { %7646 = vmatpush1.bf16.msra.mxu0 %v11150_v29 }
0x107a   : > { %7648 = vmatprep.subr.bf16.mxu0 %v11151_v42 }
0x107d   : > { %7650 = vmatpush1.bf16.msra.mxu0 %v11152_v13 }
0x107e   : > { %7652 = vmatprep.subr.bf16.mxu0 %v11153_v10 }
0x1081   : > { %7654 = vmatpush1.bf16.msra.mxu0 %v11154_v6 }
0x1082   : > { %7656 = vmatprep.subr.bf16.mxu0 %v11155_v4 }
0x1085   : > { %7658 = vmatpush1.bf16.msra.mxu0 %v11156_v58 }
0x1086   : > { %7692 = vmatprep.subr.bf16.mxu0 %v11157_v55 }
0x111b   : > { %v4522_v2 = vpop.f32.mrb[28].mxu1  ;;  %v4593_v15 = vpop.f32.mrb[30].mxu0 }
0x111c   : > { %v4598_v37 = vadd.f32 %v4522_v2, %v11460_v43  ;;  %v4524_v5 = vpop.f32.mrb[29].mxu1  ;;  %v4595_v27 = vpop.f32.mrb[31].mxu0  ;;  %v4600_v59 = vadd.f32 %v4593_v15, %v9457_v12 }
0x111d   : > { %v4599_v17 = vadd.f32 %v4524_v5, %v9448_v39  ;;  %v4601_v33 = vadd.f32 %v4595_v27, %v9453_v11 }
0x111e   : > { %v6183_v34 = vmul.f32 -1.442695, %v4598_v37 }
0x111f   : > { %v6184_v21 = vmul.f32 -1.442695, %v4599_v17  ;;  %v6185_v46 = vmul.f32 -1.442695, %v4601_v33 }
0x1120   : > { %8312 = vpow2.f32 %v6183_v34 }
0x1121   : > { %8314 = vpow2.f32 %v6184_v21 }
0x1122   : > { %8316 = vpow2.f32 %v6185_v46  ;;  %v11468_v46 = vld [vmem:[#allocation98_spill] sm:$0xff] }
0x1123   : > { %8318 = vtanh.f32 %v4600_v59 }
0x112a   : > { %v8313_v20 = vpop.eup %8312 }
0x112b   : > { %v8315_v23 = vpop.eup %8314  ;;  %v4605_v9 = vadd.f32 1.0, %v8313_v20 }
0x112c   : > { %v4611_v51 = vadd.f32 1.0, %v8315_v23  ;;  %v8317_v44 = vpop.eup %8316 }
0x112d   : > { %8320 = vrcp.f32 %v4605_v9  ;;  %v8319_v2 = vpop.eup %8318  ;;  %v4618_v34 = vadd.f32 1.0, %v8317_v44  ;;  %v11461_v9 = vld [vmem:[#allocation90_spill] sm:$0xff] }
0x112e   : > { %8322 = vrcp.f32 %v4611_v51  ;;  %v11462_v51 = vld [vmem:[#allocation29_spill] sm:$0xff] }
0x112f   : > { %8324 = vrcp.f32 %v4618_v34 }
0x1137   : > { %v8321_v5 = vpop.eup %8320 }
0x1138   : > { %v8323_v37 = vpop.eup %8322  ;;  %v4622_v17 = vmul.f32 %v8321_v5, %v8319_v2  ;;  %v11463_v2 = vld [vmem:[#allocation31_spill] sm:$0xff] }
0x1139   : > { %v4621_v21 = vmul.f32 %v8323_v37, %v10161_v52  ;;  %v8325_v59 = vpop.eup %8324  ;;  %v11464_v37 = vld [vmem:[#allocation94_spill] sm:$0xff] }
0x113b   : > { %v10317_v27 = vadd.f32 %v4622_v17, %v4621_v21  ;;  %v10319_v33 = vpop.f32.mrb[32].mxu0  ;;  %v11465_v17 = vld [vmem:[#allocation33_spill] sm:$0xff]  ;;  %v11466_v21 = vld [vmem:[#allocation34_spill] sm:$0xff] }
0x113c   : > { %v10321_v15 = vpop.f32.mrb[33].mxu0 }
0x113d   : > { %8326 = vtanh.f32 %v10317_v27 }
0x1147   : > { %v8327_v20 = vpop.eup %8326 }
0x1148   : > { %v10326_v23 = vmul.f32 %v8327_v20, %v8325_v59  ;;  %v11467_v20 = vld [vmem:[#allocation96_spill] sm:$0xff] }
0x114a   : > { %4996 = vmatmul.mubr.f32.vlgmr.msra.gmra.mrb[34].mxu0 %v10326_v23  ;;  %v4629_v52 = vrot.slane %v10326_v23, %v9439_v47 }
0x114b   : > { %7694 = vmatpush1.bf16.msra.mxu0 %v11461_v9  ;;  %5137 = vmatprep.mubr.f32.mxu0 %v11073_v61  ;;  %v11469_v9 = vld [vmem:[#allocation100_spill] sm:$0xff] }
0x114c   : > { %v4631_v44 = vmul.f32 %v11462_v51, %v4629_v52  ;;  %v4630_v5 = vmul.f32 %v11463_v2, %v4629_v52  ;;  %7696 = vmatprep.subr.bf16.mxu0 %v11392_v53  ;;  %v4633_v34 = vmul.f32 %v11465_v17, %v4629_v52  ;;  %v4632_v59 = vmul.f32 %v11466_v21, %v4629_v52  ;;  %v11470_v51 = vld [vmem:[#allocation102_spill] sm:$0xff]  ;;  %v11471_v2 = vld [vmem:[#allocation104_spill] sm:$0xff] }
0x114d   : > { %v11475_v17 = vld [vmem:[#allocation112_spill] sm:$0xff]  ;;  %v11476_v52 = vld [vmem:[#allocation114_spill] sm:$0xff] }
0x114e   : > { %4636 = vadd.xlane.f32.xlu1 %v4631_v44  ;;  %4634 = vadd.xlane.f32.xlu0 %v4630_v5  ;;  %v11472_v44 = vld [vmem:[#allocation106_spill] sm:$0xff]  ;;  %v11473_v5 = vld [vmem:[#allocation108_spill] sm:$0xff] }
0x114f   : > { %7698 = vmatpush1.bf16.msra.mxu0 %v11464_v37  ;;  %v11474_v37 = vld [vmem:[#allocation110_spill] sm:$0xff] }
0x1150   : > { %7700 = vmatprep.subr.bf16.mxu0 %v11467_v20  ;;  %v11478_v21 = vld [vmem:[#allocation118_spill] sm:$0xff] }
0x1152   : > { %4640 = vadd.xlane.f32.xlu1 %v4633_v34  ;;  %4638 = vadd.xlane.f32.xlu0 %v4632_v59  ;;  %v11477_v34 = vld [vmem:[#allocation116_spill] sm:$0xff] }
0x1153   : > { %7702 = vmatpush1.bf16.msra.mxu0 %v11468_v46 }
0x1154   : > { %7704 = vmatprep.subr.bf16.mxu0 %v11469_v9 }
0x1157   : > { %7706 = vmatpush1.bf16.msra.mxu0 %v11470_v51 }
0x1158   : > { %7708 = vmatprep.subr.bf16.mxu0 %v11471_v2 }
0x115b   : > { %7710 = vmatpush1.bf16.msra.mxu0 %v11472_v44 }
0x115c   : > { %7712 = vmatprep.subr.bf16.mxu0 %v11473_v5 }
0x115f   : > { %7714 = vmatpush1.bf16.msra.mxu0 %v11474_v37 }
0x1160   : > { %7716 = vmatprep.subr.bf16.mxu0 %v11475_v17 }
0x1163   : > { %7718 = vmatpush1.bf16.msra.mxu0 %v11476_v52 }
0x1164   : > { %7720 = vmatprep.subr.bf16.mxu0 %v11477_v34 }
0x1167   : > { %7722 = vmatpush1.bf16.msra.mxu0 %v11478_v21 }
0x1168   : > { %7755 = vmatprep.subr.bf16.mxu0 %v11190_v56 }
0x11db   : > { %v4637_v59 = vpop.xlane.xlu1 %4636  ;;  %v4635_v51 = vpop.xlane.xlu0 %4634 }
0x11dc   : > { %v4643_v2 = vadd.f32 %v4637_v59, %v11191_v36  ;;  %v4642_v44 = vadd.f32 %v4635_v51, %v11192_v14  ;;  %v11479_v51 = vld [vmem:[#allocation27_spill] sm:$0xff] }
0x11de   : > { %8328 = vtanh.f32 %v4643_v2  ;;  %v11480_v2 = vld [vmem:[#allocation37_spill] sm:$0xff] }
0x11df   : > { %8330 = vtanh.f32 %v4642_v44  ;;  %v4641_v5 = vpop.xlane.xlu1 %4640  ;;  %v4639_v37 = vpop.xlane.xlu0 %4638  ;;  %v11481_v44 = vld [vmem:[#allocation30_spill] sm:$0xff] }
0x11e0   : > { %v4645_v17 = vadd.f32 %v4641_v5, %v11194_v41  ;;  %v4644_v52 = vadd.f32 %v4639_v37, %v11193_v25  ;;  %v11482_v37 = vld [vmem:[#allocation32_spill] sm:$0xff]  ;;  %v11483_v5 = vld [vmem:[#allocation35_spill] sm:$0xff] }
0x11e2   : > { %8332 = vtanh.f32 %v4645_v17  ;;  %v11484_v17 = vld [vmem:[#allocation36_spill] sm:$0xff] }
0x11e3   : > { %8334 = vtanh.f32 %v4644_v52  ;;  %v11486_v52 = vld [vmem:[#allocation40_spill] sm:$0xff] }
0x11e8   : > { %v8329_v34 = vpop.eup %8328 }
0x11e9   : > { %v8331_v21 = vpop.eup %8330 }
0x11ea   : > { %v7558_v9 = vpack.c.bf16 %v8329_v34, %v8331_v21  ;;  %v11489_v34 = vld [vmem:[#allocation47_spill] sm:$0xff]  ;;  %v11490_v21 = vld [vmem:[#allocation48_spill] sm:$0xff] }
0x11ec   : > { %v8333_v46 = vpop.eup %8332  ;;  %7559 = vmatpush3.bf16.msra.mxu1 %v7558_v9  ;;  %v11485_v9 = vld [vmem:[#allocation39_spill] sm:$0xff] }
0x11ed   : > { %v8335_v20 = vpop.eup %8334  ;;  %7560 = vmatprep.subr.bf16.mxu1 %v11190_v56 }
0x11ee   : > { %v7561_v59 = vpack.c.bf16 %v8333_v46, %v8335_v20  ;;  %v11487_v46 = vld [vmem:[#allocation43_spill] sm:$0xff]  ;;  %v11488_v20 = vld [vmem:[#allocation44_spill] sm:$0xff] }
0x11f0   : > { %7562 = vmatpush3.bf16.msra.mxu1 %v7561_v59  ;;  %v11491_v59 = vld [vmem:[#allocation50_spill] sm:$0xff] }
0x11f1   : > { %7596 = vmatprep.subr.bf16.mxu1 %v11479_v51 }
0x11f3   : > { %6339 = vmatmul.mubr.msk.f32.vlgmr.msra.gmra.mrb[30].mxu1 %vm1561_vm2, %v11480_v2  ;;  %v11492_v2 = vld [vmem:[#allocation51_spill] sm:$0xff] }
0x11f4   : > { %7598 = vmatpush1.bf16.msra.mxu1 %v11481_v44  ;;  %4862 = vmatprep.mubr.f32.mxu1 %v11073_v61 }
0x11f5   : > { %7600 = vmatprep.subr.bf16.mxu1 %v11482_v37  ;;  %v11493_v37 = vld [vmem:[#allocation52_spill] sm:$0xff] }
0x11f8   : > { %7602 = vmatpush1.bf16.msra.mxu1 %v11483_v5  ;;  %v11494_v5 = vld [vmem:[#allocation53_spill] sm:$0xff] }
0x11f9   : > { %7604 = vmatprep.subr.bf16.mxu1 %v11484_v17  ;;  %v11495_v17 = vld [vmem:[#allocation54_spill] sm:$0xff] }
0x11fc   : > { %7606 = vmatpush1.bf16.msra.mxu1 %v11485_v9  ;;  %v11496_v9 = vld [vmem:[#allocation55_spill] sm:$0xff] }
0x11fd   : > { %7608 = vmatprep.subr.bf16.mxu1 %v11486_v52 }
0x1200   : > { %7610 = vmatpush1.bf16.msra.mxu1 %v11487_v46  ;;  %v11497_v46 = vld [vmem:[#allocation57_spill] sm:$0xff] }
0x1201   : > { %7612 = vmatprep.subr.bf16.mxu1 %v11488_v20  ;;  %v11508_v20 = vld [vmem:[#allocation79_spill] sm:$0xff] }
0x1204   : > { %7614 = vmatpush1.bf16.msra.mxu1 %v11489_v34  ;;  %v11498_v34 = vld [vmem:[#allocation59_spill] sm:$0xff] }
0x1205   : > { %7616 = vmatprep.subr.bf16.mxu1 %v11490_v21  ;;  %v11499_v21 = vld [vmem:[#allocation61_spill] sm:$0xff] }
0x1208   : > { %7618 = vmatpush1.bf16.msra.mxu1 %v11491_v59  ;;  %v11500_v59 = vld [vmem:[#allocation63_spill] sm:$0xff] }
0x1209   : > { %7620 = vmatprep.subr.bf16.mxu1 %v11492_v2  ;;  %v11501_v2 = vld [vmem:[#allocation65_spill] sm:$0xff] }
0x120c   : > { %7622 = vmatpush1.bf16.msra.mxu1 %v11493_v37  ;;  %v11502_v37 = vld [vmem:[#allocation67_spill] sm:$0xff] }
0x120d   : > { %7624 = vmatprep.subr.bf16.mxu1 %v11494_v5  ;;  %v11503_v5 = vld [vmem:[#allocation69_spill] sm:$0xff] }
0x1210   : > { %7626 = vmatpush1.bf16.msra.mxu1 %v11495_v17  ;;  %v11504_v17 = vld [vmem:[#allocation71_spill] sm:$0xff] }
0x1211   : > { %7660 = vmatprep.subr.bf16.mxu1 %v11496_v9  ;;  %v11505_v9 = vld [vmem:[#allocation73_spill] sm:$0xff] }
0x1213   : > { %4863 = vmatmul.mubr.f32.vlgmr.msra.gmra.mrb[32].mxu1 %v10271_v45  ;;  %v11506_v45 = vld [vmem:[#allocation75_spill] sm:$0xff] }
0x1214   : > { %7662 = vmatpush1.bf16.msra.mxu1 %v11497_v46  ;;  %5066 = vmatprep.mubr.f32.mxu1 %v11073_v61  ;;  %v11507_v46 = vld [vmem:[#allocation77_spill] sm:$0xff] }
0x1215   : > { %7664 = vmatprep.subr.bf16.mxu1 %v11498_v34  ;;  %v11509_v34 = vld [vmem:[#allocation81_spill] sm:$0xff] }
0x1218   : > { %7666 = vmatpush1.bf16.msra.mxu1 %v11499_v21  ;;  %v11510_v21 = vld [vmem:[#allocation83_spill] sm:$0xff] }
0x1219   : > { %7668 = vmatprep.subr.bf16.mxu1 %v11500_v59  ;;  %v11511_v59 = vld [vmem:[#allocation85_spill] sm:$0xff] }
0x121c   : > { %7670 = vmatpush1.bf16.msra.mxu1 %v11501_v2  ;;  %v11512_v2 = vld [vmem:[#allocation87_spill] sm:$0xff] }
0x121d   : > { %7672 = vmatprep.subr.bf16.mxu1 %v11502_v37 }
0x1220   : > { %7674 = vmatpush1.bf16.msra.mxu1 %v11503_v5  ;;  %v11513_v5 = vld [vmem:[#allocation89_spill] sm:$0xff] }
0x1221   : > { %7676 = vmatprep.subr.bf16.mxu1 %v11504_v17  ;;  %v11526_v17 = vld [vmem:[#allocation115_spill] sm:$0xff] }
0x1224   : > { %7678 = vmatpush1.bf16.msra.mxu1 %v11505_v9  ;;  %v11514_v9 = vld [vmem:[#allocation91_spill] sm:$0xff] }
0x1225   : > { %7680 = vmatprep.subr.bf16.mxu1 %v11506_v45  ;;  %v11515_v45 = vld [vmem:[#allocation93_spill] sm:$0xff] }
0x1228   : > { %7682 = vmatpush1.bf16.msra.mxu1 %v11507_v46  ;;  %v11516_v46 = vld [vmem:[#allocation95_spill] sm:$0xff] }
0x1229   : > { %7684 = vmatprep.subr.bf16.mxu1 %v11508_v20  ;;  %v11523_v20 = vld [vmem:[#allocation109_spill] sm:$0xff] }
0x122c   : > { %7686 = vmatpush1.bf16.msra.mxu1 %v11509_v34  ;;  %v11517_v34 = vld [vmem:[#allocation97_spill] sm:$0xff] }
0x122d   : > { %7688 = vmatprep.subr.bf16.mxu1 %v11510_v21  ;;  %v11518_v21 = vld [vmem:[#allocation99_spill] sm:$0xff] }
0x1230   : > { %7690 = vmatpush1.bf16.msra.mxu1 %v11511_v59  ;;  %v11519_v59 = vld [vmem:[#allocation101_spill] sm:$0xff] }
0x1231   : > { %7724 = vmatprep.subr.bf16.mxu1 %v11512_v2  ;;  %v11520_v2 = vld [vmem:[#allocation103_spill] sm:$0xff] }
0x1233   : > { %5067 = vmatmul.mubr.f32.vlgmr.msra.gmra.mrb[34].mxu1 %v10326_v23  ;;  %v11521_v23 = vld [vmem:[#allocation105_spill] sm:$0xff] }
0x1234   : > { %7726 = vmatpush1.bf16.msra.mxu1 %v11513_v5  ;;  %5208 = vmatprep.mubr.f32.mxu1 %v11073_v61  ;;  %v11522_v5 = vld [vmem:[#allocation107_spill] sm:$0xff] }
0x1235   : > { %7728 = vmatprep.subr.bf16.mxu1 %v11514_v9  ;;  %v11524_v9 = vld [vmem:[#allocation111_spill] sm:$0xff] }
0x1238   : > { %7730 = vmatpush1.bf16.msra.mxu1 %v11515_v45  ;;  %v11525_v45 = vld [vmem:[#allocation113_spill] sm:$0xff] }
0x1239   : > { %7732 = vmatprep.subr.bf16.mxu1 %v11516_v46  ;;  %v11527_v46 = vld [vmem:[#allocation117_spill] sm:$0xff] }
0x123c   : > { %7734 = vmatpush1.bf16.msra.mxu1 %v11517_v34  ;;  %v11528_v34 = vld [vmem:[#allocation23_spill] sm:$0xff] }
0x123d   : > { %7736 = vmatprep.subr.bf16.mxu1 %v11518_v21 }
0x1240   : > { %7738 = vmatpush1.bf16.msra.mxu1 %v11519_v59 }
0x1241   : > { %7740 = vmatprep.subr.bf16.mxu1 %v11520_v2 }
0x1244   : > { %7742 = vmatpush1.bf16.msra.mxu1 %v11521_v23 }
0x1245   : > { %7744 = vmatprep.subr.bf16.mxu1 %v11522_v5 }
0x1248   : > { %7746 = vmatpush1.bf16.msra.mxu1 %v11523_v20 }
0x1249   : > { %7748 = vmatprep.subr.bf16.mxu1 %v11524_v9  ;;  %v11530_v9 = vcombine.low %v10319_v33, %v10321_v15 }
0x124c   : > { %7750 = vmatpush1.bf16.msra.mxu1 %v11525_v45  ;;  %v4881_v45 = vrot.slane %v11530_v9, %v11386_v48 }
0x124d   : > { %7752 = vmatprep.subr.bf16.mxu1 %v11526_v17 }
0x1250   : > { %7754 = vmatpush1.bf16.msra.mxu1 %v11527_v46  ;;  %v4726_v46 = vld [vmem:[%s4725_s30] sm:$0xf] }
0x1251   : > { %7762 = vmatprep.subr.bf16.mxu1 %v11528_v34 }
0x12c6   : > { %v10413_v21 = vpop.f32.mrb[30].mxu1 }
0x12c7   : > { %11529 = vst [vmem:[#allocation42_spill] sm:$0xff] %v10413_v21  ;;  %v6340_v59 = vpop.f32.mrb[31].mxu1 }
0x12c8   : > { %v10425_v59 = vld [vmem:[%s11105_s20] sm:$0xf] }
0x12c9   : > { %11531 = vst [vmem:[#allocation45_spill] sm:$0xff] %v10425_v59 }
0x12e6   : > { %v4864_v23 = vpop.f32.mrb[32].mxu1 }
0x12e7   : > { %v4866_v5 = vpop.f32.mrb[33].mxu1 }
0x12e8   : > { %v4874_v2 = vcombine.low %v4864_v23, %v4866_v5 }
0x12ea   : > { %v4888_v17 = vrot.slane %v4874_v2, %v11386_v48 }
0x12ec   : > { %v4889_v20 = vcombine.low %v4881_v45, %v4888_v17 }
0x12ee   : > { %v4896_v34 = vrot.slane %v4889_v20, %v11386_v48 }
0x12f0   : > { %v4898_v21 = vadd.f32 %v4896_v34, %v4726_v46 }
0x12f2   : > { %v4899_v5 = vadd.f32 %v10425_v59, %v4898_v21 }
0x12f4   : > { %v6188_v23 = vmul.f32 -1.442695, %v4899_v5  ;;  %v4907_v37 = vrot.slane %v4899_v5, 1  ;;  %v4918_v15 = vrot.slane %v4899_v5, 3  ;;  %v4915_v2 = vrot.slane %v4899_v5, 2 }
0x12f6   : > { %8336 = vpow2.f32 %v6188_v23  ;;  %v6189_v33 = vmul.f32 -1.442695, %v4907_v37  ;;  %v6190_v9 = vmul.f32 -1.442695, %v4918_v15 }
0x12f8   : > { %8338 = vpow2.f32 %v6189_v33 }
0x12f9   : > { %8340 = vpow2.f32 %v6190_v9 }
0x1300   : > { %v8337_v17 = vpop.eup %8336 }
0x1301   : > { %v4903_v45 = vadd.f32 1.0, %v8337_v17 }
0x1302   : > { %v8339_v52 = vpop.eup %8338 }
0x1303   : > { %8342 = vrcp.f32 %v4903_v45  ;;  %v4912_v46 = vadd.f32 1.0, %v8339_v52  ;;  %v8341_v20 = vpop.eup %8340  ;;  %v11533_v52 = vld [vmem:[#allocation94_spill] sm:$0xff] }
0x1304   : > { %8344 = vtanh.f32 %v4915_v2  ;;  %v4923_v59 = vadd.f32 1.0, %v8341_v20  ;;  %v10517_v2 = vld [vmem:[%s11109_s17 + $0x10] sm:$0xff]  ;;  %v11536_v20 = vld [vmem:[#allocation100_spill] sm:$0xff] }
0x1305   : > { %8346 = vrcp.f32 %v4912_v46  ;;  %v11534_v46 = vld [vmem:[#allocation96_spill] sm:$0xff] }
0x1306   : > { %8348 = vrcp.f32 %v4923_v59  ;;  %v10511_v59 = vld [vmem:[%s11109_s17 + $0x18] sm:$0xff] }
0x130d   : > { %v8343_v34 = vpop.eup %8342 }
0x130e   : > { %v8345_v48 = vpop.eup %8344 }
0x130f   : > { %v8347_v21 = vpop.eup %8346  ;;  %v4927_v37 = vmul.f32 %v8345_v48, %v8343_v34  ;;  %v11537_v34 = vld [vmem:[#allocation102_spill] sm:$0xff] }
0x1310   : > { %v4926_v23 = vmul.f32 %v8347_v21, %v10268_v60  ;;  %v8349_v5 = vpop.eup %8348  ;;  %v10503_v60 = vld [vmem:[%s11109_s17] sm:$0xff] }
0x1311   : > { %v11538_v21 = vld [vmem:[#allocation104_spill] sm:$0xff] }
0x1312   : > { %v10429_v33 = vadd.f32 %v4927_v37, %v4926_v23  ;;  %v11539_v23 = vld [vmem:[#allocation106_spill] sm:$0xff]  ;;  %v11540_v37 = vld [vmem:[#allocation108_spill] sm:$0xff] }
0x1314   : > { %8350 = vtanh.f32 %v10429_v33 }
0x131e   : > { %v8351_v15 = vpop.eup %8350 }
0x131f   : > { %v10432_v9 = vmul.f32 %v8351_v15, %v8349_v5  ;;  %v11541_v5 = vld [vmem:[#allocation110_spill] sm:$0xff]  ;;  %v11542_v15 = vld [vmem:[#allocation112_spill] sm:$0xff] }
0x1321   : > { %5138 = vmatmul.mubr.f32.vlgmr.msra.gmra.mrb[34].mxu0 %v10432_v9  ;;  %5209 = vmatmul.mubr.f32.vlgmr.msra.gmra.mrb[34].mxu1 %v10432_v9 }
0x1322   : > { %7764 = vmatpush1.bf16.msra.mxu1 %v11126_v22  ;;  %5408 = vmatprep.mubr.f32.mxu1 %v11073_v61 }
0x1323   : > { %7766 = vmatprep.subr.bf16.mxu1 %v11127_v57  ;;  %6349 = vmatprep.mubr.msk.f32.mxu0 %vm8687_vm1, %v11073_v61 }
0x1326   : > { %7768 = vmatpush1.bf16.msra.mxu1 %v11128_v7 }
0x1327   : > { %7770 = vmatprep.subr.bf16.mxu1 %v11129_v30 }
0x132a   : > { %7772 = vmatpush1.bf16.msra.mxu1 %v11130_v1 }
0x132b   : > { %7774 = vmatprep.subr.bf16.mxu1 %v11131_v26 }
0x132e   : > { %7776 = vmatpush1.bf16.msra.mxu1 %v11132_v32 }
0x132f   : > { %7778 = vmatprep.subr.bf16.mxu1 %v11133_v24 }
0x1332   : > { %7780 = vmatpush1.bf16.msra.mxu1 %v11134_v40 }
0x1333   : > { %7782 = vmatprep.subr.bf16.mxu1 %v11135_v50 }
0x1336   : > { %7784 = vmatpush1.bf16.msra.mxu1 %v11136_v8 }
0x1337   : > { %7786 = vmatprep.subr.bf16.mxu1 %v11137_v18 }
0x133a   : > { %7788 = vmatpush1.bf16.msra.mxu1 %v11138_v31 }
0x133b   : > { %7790 = vmatprep.subr.bf16.mxu1 %v11139_v16 }
0x133e   : > { %7792 = vmatpush1.bf16.msra.mxu1 %v11140_v0  ;;  %v11532_v0 = vld [vmem:[#allocation90_spill] sm:$0xff] }
0x133f   : > { %7826 = vmatprep.subr.bf16.mxu1 %v11141_v3 }
0x1341   : > { %5409 = vmatmul.mubr.f32.vlgmr.msra.gmra.mrb[36].mxu1 %v10432_v9 }
0x1342   : > { %7828 = vmatpush1.bf16.msra.mxu1 %v11142_v35  ;;  %5612 = vmatprep.mubr.f32.mxu1 %v11073_v61 }
0x1343   : > { %7830 = vmatprep.subr.bf16.mxu1 %v11143_v63 }
0x1346   : > { %7832 = vmatpush1.bf16.msra.mxu1 %v11144_v54 }
0x1347   : > { %7834 = vmatprep.subr.bf16.mxu1 %v11145_v28 }
0x134a   : > { %7836 = vmatpush1.bf16.msra.mxu1 %v11146_v19 }
0x134b   : > { %7838 = vmatprep.subr.bf16.mxu1 %v11147_v62 }
0x134e   : > { %7840 = vmatpush1.bf16.msra.mxu1 %v11148_v49 }
0x134f   : > { %7842 = vmatprep.subr.bf16.mxu1 %v11149_v38 }
0x1352   : > { %7844 = vmatpush1.bf16.msra.mxu1 %v11150_v29 }
0x1353   : > { %7846 = vmatprep.subr.bf16.mxu1 %v11151_v42  ;;  %v10497_v42 = vld [vmem:[%s11109_s17 + $0x8] sm:$0xff] }
0x1356   : > { %7848 = vmatpush1.bf16.msra.mxu1 %v11152_v13 }
0x1357   : > { %7850 = vmatprep.subr.bf16.mxu1 %v11153_v10 }
0x135a   : > { %7852 = vmatpush1.bf16.msra.mxu1 %v11154_v6 }
0x135b   : > { %7854 = vmatprep.subr.bf16.mxu1 %v11155_v4 }
0x135e   : > { %7856 = vmatpush1.bf16.msra.mxu1 %v11156_v58 }
0x135f   : > { %7890 = vmatprep.subr.bf16.mxu1 %v11157_v55 }
0x13f4   : > { %v5139_v62 = vpop.f32.mrb[34].mxu0  ;;  %v5210_v49 = vpop.f32.mrb[34].mxu1 }
0x13f5   : > { %v5215_v38 = vadd.f32 %v5139_v62, %v11460_v43  ;;  %v5141_v19 = vpop.f32.mrb[35].mxu0  ;;  %v5212_v29 = vpop.f32.mrb[35].mxu1  ;;  %v5217_v4 = vadd.f32 %v5210_v49, %v9457_v12  ;;  %v11543_v62 = vld [vmem:[#allocation114_spill] sm:$0xff]  ;;  %v11544_v49 = vld [vmem:[#allocation116_spill] sm:$0xff] }
0x13f6   : > { %v5216_v28 = vadd.f32 %v5141_v19, %v9448_v39  ;;  %v5218_v6 = vadd.f32 %v5212_v29, %v9453_v11 }
0x13f7   : > { %v6191_v54 = vmul.f32 -1.442695, %v5215_v38  ;;  %v11545_v38 = vld [vmem:[#allocation118_spill] sm:$0xff] }
0x13f8   : > { %v6192_v13 = vmul.f32 -1.442695, %v5216_v28  ;;  %v6193_v10 = vmul.f32 -1.442695, %v5218_v6 }
0x13f9   : > { %8352 = vpow2.f32 %v6191_v54 }
0x13fa   : > { %8354 = vpow2.f32 %v6192_v13 }
0x13fb   : > { %8356 = vpow2.f32 %v6193_v10 }
0x13fc   : > { %8358 = vtanh.f32 %v5217_v4 }
0x1403   : > { %v8353_v58 = vpop.eup %8352 }
0x1404   : > { %v8355_v63 = vpop.eup %8354  ;;  %v5222_v55 = vadd.f32 1.0, %v8353_v58 }
0x1405   : > { %v5228_v35 = vadd.f32 1.0, %v8355_v63  ;;  %v8357_v3 = vpop.eup %8356 }
0x1406   : > { %8360 = vrcp.f32 %v5222_v55  ;;  %v8359_v22 = vpop.eup %8358  ;;  %v5235_v1 = vadd.f32 1.0, %v8357_v3 }
0x1407   : > { %8362 = vrcp.f32 %v5228_v35 }
0x1408   : > { %8364 = vrcp.f32 %v5235_v1  ;;  %v11548_v1 = vld [vmem:[#allocation36_spill] sm:$0xff] }
0x1410   : > { %v8361_v57 = vpop.eup %8360 }
0x1411   : > { %v8363_v7 = vpop.eup %8362  ;;  %v5239_v30 = vmul.f32 %v8361_v57, %v8359_v22  ;;  %v10542_v57 = vld [vmem:[%s11124_s11] sm:$0x1] }
0x1412   : > { %v5238_v26 = vmul.f32 %v8363_v7, %v10317_v27  ;;  %v8365_v8 = vpop.eup %8364  ;;  %v11546_v7 = vld [vmem:[#allocation32_spill] sm:$0xff] }
0x1414   : > { %v10478_v32 = vadd.f32 %v5239_v30, %v5238_v26  ;;  %v10480_v24 = vpop.f32.mrb[36].mxu1  ;;  %v11547_v30 = vld [vmem:[#allocation35_spill] sm:$0xff] }
0x1415   : > { %v10482_v40 = vpop.f32.mrb[37].mxu1  ;;  %v11549_v26 = vld [vmem:[#allocation39_spill] sm:$0xff] }
0x1416   : > { %v5490_v50 = vcombine.low %v10480_v24, %v10482_v40  ;;  %8366 = vtanh.f32 %v10478_v32 }
0x1420   : > { %v8367_v18 = vpop.eup %8366 }
0x1421   : > { %v10487_v31 = vmul.f32 %v8367_v18, %v8365_v8  ;;  %v11551_v8 = vld [vmem:[#allocation43_spill] sm:$0xff]  ;;  %v11552_v18 = vld [vmem:[#allocation44_spill] sm:$0xff] }
0x1423   : > { %5613 = vmatmul.mubr.f32.vlgmr.msra.gmra.mrb[38].mxu1 %v10487_v31  ;;  %v5246_v16 = vrot.slane %v10487_v31, %v9439_v47 }
0x1424   : > { %7892 = vmatpush1.bf16.msra.mxu1 %v11532_v0  ;;  %5754 = vmatprep.mubr.f32.mxu1 %v11073_v61  ;;  %v11554_v0 = vld [vmem:[#allocation48_spill] sm:$0xff] }
0x1425   : > { %v5248_v48 = vmul.f32 %v10497_v42, %v5246_v16  ;;  %v5247_v27 = vmul.f32 %v10503_v60, %v5246_v16  ;;  %7894 = vmatprep.subr.bf16.mxu1 %v11392_v53  ;;  %v5250_v17 = vmul.f32 %v10511_v59, %v5246_v16  ;;  %v5249_v45 = vmul.f32 %v10517_v2, %v5246_v16  ;;  %v11535_v53 = vld [vmem:[#allocation98_spill] sm:$0xff]  ;;  %v11553_v16 = vld [vmem:[#allocation47_spill] sm:$0xff] }
0x1427   : > { %5253 = vadd.xlane.f32.xlu1 %v5248_v48  ;;  %5251 = vadd.xlane.f32.xlu0 %v5247_v27  ;;  %v11556_v48 = vld [vmem:[#allocation51_spill] sm:$0xff]  ;;  %v11557_v27 = vld [vmem:[#allocation52_spill] sm:$0xff] }
0x1428   : > { %7896 = vmatpush1.bf16.msra.mxu1 %v11533_v52  ;;  %v11558_v52 = vld [vmem:[#allocation53_spill] sm:$0xff] }
0x1429   : > { %7898 = vmatprep.subr.bf16.mxu1 %v11534_v46  ;;  %v11561_v46 = vld [vmem:[#allocation57_spill] sm:$0xff] }
0x142b   : > { %5257 = vadd.xlane.f32.xlu1 %v5250_v17  ;;  %5255 = vadd.xlane.f32.xlu0 %v5249_v45  ;;  %v11559_v17 = vld [vmem:[#allocation54_spill] sm:$0xff]  ;;  %v11560_v45 = vld [vmem:[#allocation55_spill] sm:$0xff] }
0x142c   : > { %7900 = vmatpush1.bf16.msra.mxu1 %v11535_v53  ;;  %v11562_v53 = vld [vmem:[#allocation59_spill] sm:$0xff] }
0x142d   : > { %7902 = vmatprep.subr.bf16.mxu1 %v11536_v20  ;;  %v11563_v20 = vld [vmem:[#allocation61_spill] sm:$0xff] }
0x1430   : > { %7904 = vmatpush1.bf16.msra.mxu1 %v11537_v34  ;;  %v11564_v34 = vld [vmem:[#allocation63_spill] sm:$0xff] }
0x1431   : > { %7906 = vmatprep.subr.bf16.mxu1 %v11538_v21  ;;  %v11565_v21 = vld [vmem:[#allocation65_spill] sm:$0xff] }
0x1434   : > { %7908 = vmatpush1.bf16.msra.mxu1 %v11539_v23  ;;  %v11566_v23 = vld [vmem:[#allocation67_spill] sm:$0xff] }
0x1435   : > { %7910 = vmatprep.subr.bf16.mxu1 %v11540_v37  ;;  %v11567_v37 = vld [vmem:[#allocation69_spill] sm:$0xff] }
0x1438   : > { %7912 = vmatpush1.bf16.msra.mxu1 %v11541_v5  ;;  %v11568_v5 = vld [vmem:[#allocation71_spill] sm:$0xff] }
0x1439   : > { %7914 = vmatprep.subr.bf16.mxu1 %v11542_v15  ;;  %v11569_v15 = vld [vmem:[#allocation73_spill] sm:$0xff] }
0x143c   : > { %7916 = vmatpush1.bf16.msra.mxu1 %v11543_v62  ;;  %v11571_v62 = vld [vmem:[#allocation77_spill] sm:$0xff] }
0x143d   : > { %7918 = vmatprep.subr.bf16.mxu1 %v11544_v49  ;;  %v11572_v49 = vld [vmem:[#allocation79_spill] sm:$0xff] }
0x1440   : > { %7920 = vmatpush1.bf16.msra.mxu1 %v11545_v38  ;;  %v11573_v38 = vld [vmem:[#allocation81_spill] sm:$0xff] }
0x1441   : > { %7953 = vmatprep.subr.bf16.mxu1 %v11190_v56 }
0x14b4   : > { %v5254_v19 = vpop.xlane.xlu1 %5253  ;;  %v5252_v29 = vpop.xlane.xlu0 %5251 }
0x14b5   : > { %v5260_v28 = vadd.f32 %v5254_v19, %v11191_v36  ;;  %v5259_v54 = vadd.f32 %v5252_v29, %v11192_v14  ;;  %v11574_v19 = vld [vmem:[#allocation83_spill] sm:$0xff]  ;;  %v11575_v29 = vld [vmem:[#allocation85_spill] sm:$0xff] }
0x14b7   : > { %8368 = vtanh.f32 %v5260_v28  ;;  %v11576_v28 = vld [vmem:[#allocation87_spill] sm:$0xff] }
0x14b8   : > { %8370 = vtanh.f32 %v5259_v54  ;;  %v5258_v13 = vpop.xlane.xlu1 %5257  ;;  %v5256_v6 = vpop.xlane.xlu0 %5255  ;;  %v11577_v54 = vld [vmem:[#allocation89_spill] sm:$0xff] }
0x14b9   : > { %v5262_v10 = vadd.f32 %v5258_v13, %v11194_v41  ;;  %v5261_v4 = vadd.f32 %v5256_v6, %v11193_v25  ;;  %v11578_v13 = vld [vmem:[#allocation91_spill] sm:$0xff]  ;;  %v11579_v6 = vld [vmem:[#allocation93_spill] sm:$0xff] }
0x14bb   : > { %8372 = vtanh.f32 %v5262_v10  ;;  %v11580_v10 = vld [vmem:[#allocation95_spill] sm:$0xff] }
0x14bc   : > { %8374 = vtanh.f32 %v5261_v4  ;;  %v11581_v4 = vld [vmem:[#allocation97_spill] sm:$0xff] }
0x14c1   : > { %v8369_v58 = vpop.eup %8368 }
0x14c2   : > { %v8371_v63 = vpop.eup %8370 }
0x14c3   : > { %v7756_v55 = vpack.c.bf16 %v8369_v58, %v8371_v63  ;;  %v11582_v58 = vld [vmem:[#allocation99_spill] sm:$0xff]  ;;  %v11583_v63 = vld [vmem:[#allocation101_spill] sm:$0xff] }
0x14c5   : > { %v8373_v35 = vpop.eup %8372  ;;  %7757 = vmatpush3.bf16.msra.mxu0 %v7756_v55  ;;  %v11584_v55 = vld [vmem:[#allocation103_spill] sm:$0xff] }
0x14c6   : > { %v8375_v3 = vpop.eup %8374  ;;  %7758 = vmatprep.subr.bf16.mxu0 %v11190_v56 }
0x14c7   : > { %v7759_v22 = vpack.c.bf16 %v8373_v35, %v8375_v3  ;;  %v11586_v35 = vld [vmem:[#allocation107_spill] sm:$0xff]  ;;  %v11587_v3 = vld [vmem:[#allocation109_spill] sm:$0xff] }
0x14c9   : > { %7760 = vmatpush3.bf16.msra.mxu0 %v7759_v22  ;;  %v11588_v22 = vld [vmem:[#allocation111_spill] sm:$0xff] }
0x14ca   : > { %7794 = vmatprep.subr.bf16.mxu0 %v11479_v51  ;;  %v11550_v51 = vld [vmem:[#allocation40_spill] sm:$0xff] }
0x14cc   : > { %6350 = vmatmul.mubr.msk.f32.vlgmr.msra.gmra.mrb[36].mxu0 %vm1561_vm2, %v10542_v57 }
0x14cd   : > { %7796 = vmatpush1.bf16.msra.mxu0 %v11481_v44  ;;  %5479 = vmatprep.mubr.f32.mxu0 %v11073_v61  ;;  %v11555_v44 = vld [vmem:[#allocation50_spill] sm:$0xff] }
0x14ce   : > { %7798 = vmatprep.subr.bf16.mxu0 %v11546_v7  ;;  %v11589_v7 = vld [vmem:[#allocation113_spill] sm:$0xff] }
0x14d1   : > { %7800 = vmatpush1.bf16.msra.mxu0 %v11547_v30  ;;  %v11590_v30 = vld [vmem:[#allocation115_spill] sm:$0xff] }
0x14d2   : > { %7802 = vmatprep.subr.bf16.mxu0 %v11548_v1  ;;  %v11591_v1 = vld [vmem:[#allocation117_spill] sm:$0xff] }
0x14d5   : > { %7804 = vmatpush1.bf16.msra.mxu0 %v11549_v26 }
0x14d6   : > { %7806 = vmatprep.subr.bf16.mxu0 %v11550_v51 }
0x14d9   : > { %7808 = vmatpush1.bf16.msra.mxu0 %v11551_v8 }
0x14da   : > { %7810 = vmatprep.subr.bf16.mxu0 %v11552_v18 }
0x14dd   : > { %7812 = vmatpush1.bf16.msra.mxu0 %v11553_v16 }
0x14de   : > { %7814 = vmatprep.subr.bf16.mxu0 %v11554_v0  ;;  %v11592_v0 = vld [vmem:[#allocation123_spill] sm:$0xff] }
0x14e1   : > { %7816 = vmatpush1.bf16.msra.mxu0 %v11555_v44  ;;  %v5498_v44 = vrot.slane %v5490_v50, %v11592_v0 }
0x14e2   : > { %7818 = vmatprep.subr.bf16.mxu0 %v11556_v48 }
0x14e5   : > { %7820 = vmatpush1.bf16.msra.mxu0 %v11557_v27 }
0x14e6   : > { %7822 = vmatprep.subr.bf16.mxu0 %v11558_v52  ;;  %v5343_v52 = vld [vmem:[%s5342_s28] sm:$0xf]  ;;  %s8688_s28 = smov [#allocation15]  }
0x14e9   : > { %7824 = vmatpush1.bf16.msra.mxu0 %v11559_v17 }
0x14ea   : > { %7858 = vmatprep.subr.bf16.mxu0 %v11560_v45 }
0x14ec   : > { %5480 = vmatmul.mubr.f32.vlgmr.msra.gmra.mrb[38].mxu0 %v10432_v9  ;;  %v11570_v9 = vld [vmem:[#allocation75_spill] sm:$0xff] }
0x14ed   : > { %7860 = vmatpush1.bf16.msra.mxu0 %v11561_v46  ;;  %5683 = vmatprep.mubr.f32.mxu0 %v11073_v61  ;;  %v11593_v46 = vld [vmem:[#allocation45_spill] sm:$0xff] }
0x14ee   : > { %7862 = vmatprep.subr.bf16.mxu0 %v11562_v53 }
0x14f1   : > { %7864 = vmatpush1.bf16.msra.mxu0 %v11563_v20 }
0x14f2   : > { %7866 = vmatprep.subr.bf16.mxu0 %v11564_v34 }
0x14f5   : > { %7868 = vmatpush1.bf16.msra.mxu0 %v11565_v21 }
0x14f6   : > { %7870 = vmatprep.subr.bf16.mxu0 %v11566_v23 }
0x14f9   : > { %7872 = vmatpush1.bf16.msra.mxu0 %v11567_v37 }
0x14fa   : > { %7874 = vmatprep.subr.bf16.mxu0 %v11568_v5 }
0x14fd   : > { %7876 = vmatpush1.bf16.msra.mxu0 %v11569_v15 }
0x14fe   : > { %7878 = vmatprep.subr.bf16.mxu0 %v11570_v9 }
0x1501   : > { %7880 = vmatpush1.bf16.msra.mxu0 %v11571_v62 }
0x1502   : > { %7882 = vmatprep.subr.bf16.mxu0 %v11572_v49 }
0x1505   : > { %7884 = vmatpush1.bf16.msra.mxu0 %v11573_v38 }
0x1506   : > { %7886 = vmatprep.subr.bf16.mxu0 %v11574_v19 }
0x1509   : > { %7888 = vmatpush1.bf16.msra.mxu0 %v11575_v29 }
0x150a   : > { %7922 = vmatprep.subr.bf16.mxu0 %v11576_v28 }
0x150c   : > { %5684 = vmatmul.mubr.f32.vlgmr.msra.gmra.mrb[40].mxu0 %v10487_v31  ;;  %v11585_v31 = vld [vmem:[#allocation105_spill] sm:$0xff] }
0x150d   : > { %7924 = vmatpush1.bf16.msra.mxu0 %v11577_v54  ;;  %5825 = vmatprep.mubr.f32.mxu0 %v11073_v61 }
0x150e   : > { %7926 = vmatprep.subr.bf16.mxu0 %v11578_v13 }
0x1511   : > { %7928 = vmatpush1.bf16.msra.mxu0 %v11579_v6 }
0x1512   : > { %7930 = vmatprep.subr.bf16.mxu0 %v11580_v10 }
0x1515   : > { %7932 = vmatpush1.bf16.msra.mxu0 %v11581_v4 }
0x1516   : > { %7934 = vmatprep.subr.bf16.mxu0 %v11582_v58 }
0x1519   : > { %7936 = vmatpush1.bf16.msra.mxu0 %v11583_v63 }
0x151a   : > { %7938 = vmatprep.subr.bf16.mxu0 %v11584_v55 }
0x151d   : > { %7940 = vmatpush1.bf16.msra.mxu0 %v11585_v31 }
0x151e   : > { %7942 = vmatprep.subr.bf16.mxu0 %v11586_v35 }
0x1521   : > { %7944 = vmatpush1.bf16.msra.mxu0 %v11587_v3 }
0x1522   : > { %7946 = vmatprep.subr.bf16.mxu0 %v11588_v22 }
0x1525   : > { %7948 = vmatpush1.bf16.msra.mxu0 %v11589_v7 }
0x1526   : > { %7950 = vmatprep.subr.bf16.mxu0 %v11590_v30 }
0x1529   : > { %7952 = vmatpush1.bf16.msra.mxu0 %v11591_v1 }
0x159f   : > { %v10598_v26 = vpop.f32.mrb[36].mxu0 }
0x15a0   : > { %v6351_v51 = vpop.f32.mrb[37].mxu0 }
0x15bf   : > { %v5481_v8 = vpop.f32.mrb[38].mxu0 }
0x15c0   : > { %v5483_v18 = vpop.f32.mrb[39].mxu0 }
0x15c1   : > { %v5491_v16 = vcombine.low %v5481_v8, %v5483_v18 }
0x15c3   : > { %v5505_v48 = vrot.slane %v5491_v16, %v11592_v0 }
0x15c5   : > { %v5506_v27 = vcombine.low %v5498_v44, %v5505_v48 }
0x15c7   : > { %v5513_v17 = vrot.slane %v5506_v27, %v11592_v0 }
0x15c9   : > { %v5515_v45 = vadd.f32 %v5513_v17, %v5343_v52 }
0x15cb   : > { %v5516_v53 = vadd.f32 %v11593_v46, %v5515_v45 }
0x15cd   : > { %v6196_v20 = vmul.f32 -1.442695, %v5516_v53  ;;  %v5524_v34 = vrot.slane %v5516_v53, 1  ;;  %v5535_v23 = vrot.slane %v5516_v53, 3  ;;  %v5532_v24 = vrot.slane %v5516_v53, 2 }
0x15cf   : > { %8376 = vpow2.f32 %v6196_v20  ;;  %v6197_v21 = vmul.f32 -1.442695, %v5524_v34  ;;  %v6198_v37 = vmul.f32 -1.442695, %v5535_v23 }
0x15d1   : > { %8378 = vpow2.f32 %v6197_v21 }
0x15d2   : > { %8380 = vpow2.f32 %v6198_v37 }
0x15d9   : > { %v8377_v5 = vpop.eup %8376 }
0x15da   : > { %v5520_v40 = vadd.f32 1.0, %v8377_v5  ;;  %v11594_v5 = vlaneseq }
0x15db   : > { %v8379_v50 = vpop.eup %8378 }
0x15dc   : > { %8382 = vrcp.f32 %v5520_v40  ;;  %v5529_v15 = vadd.f32 1.0, %v8379_v50  ;;  %v8381_v9 = vpop.eup %8380  ;;  %v780_v40 = vstv %s779_s21  ;;  %s8596_s21 = sshll.u32 %s8688_s28, 4  ;;  %s8597_s21 = int_to_ptr.vmem [resolvable:$false] %s8596_s21 }
0x15dd   : > { %8384 = vtanh.f32 %v5532_v24  ;;  %v5540_v19 = vadd.f32 1.0, %v8381_v9  ;;  %v778_v24 = vand.u32 127, %v11594_v5  ;;  %s8598_s1 = scalar_lea.vmem %s8597_s21, 256  ;;  %p8599_p1 = scmp.lt.s32.totalorder %s10663_s2, %s8597_s21 }
0x15de   : > { %8386 = vrcp.f32 %v5529_v15  ;;  %p8600_p3 = scmp.lt.s32.totalorder %s8598_s1, %s8592_s23 }
0x15df   : > { %8388 = vrcp.f32 %v5540_v19  ;;  %vm10629_vm3 = vcmp.ge.s32.totalorder %v778_v24, %v780_v40 }
0x15e0   : > { %p8601_p7 = por %p8600_p3, %p8599_p1 }
0x15e2   : > { %p8602_p8 = pnand %p8601_p7, %p8595_p11 }
0x15e6   : > { %v8383_v62 = vpop.eup %8382 }
0x15e7   : > { %v8385_v49 = vpop.eup %8384 }
0x15e8   : > { %v8387_v38 = vpop.eup %8386  ;;  %v5544_v28 = vmul.f32 %v8385_v49, %v8383_v62  ;;  %v11597_v62 = vld [vmem:[#allocation24_spill] sm:$0xff] }
0x15e9   : > { %v5543_v29 = vmul.f32 %v8387_v38, %v10429_v33  ;;  %v8389_v13 = vpop.eup %8388 }
0x15eb   : > { %v5545_v54 = vadd.f32 %v5544_v28, %v5543_v29  ;;  %v11600_v29 = vld [vmem:[#allocation38_spill] sm:$0xff] }
0x15ed   : > { %8390 = vtanh.f32 %v5545_v54  ;;  %v11601_v54 = vld [vmem:[#allocation41_spill] sm:$0xff] }
0x15f7   : > { %v8391_v6 = vpop.eup %8390 }
0x15f8   : > { %v5547_v10 = vmul.f32 %v8391_v6, %v8389_v13  ;;  %v11602_v6 = vld [vmem:[#allocation42_spill] sm:$0xff] }
0x15fa   : > { %5755 = vmatmul.mubr.f32.vlgmr.msra.gmra.mrb[38].mxu1 %v5547_v10  ;;  %5826 = vmatmul.mubr.f32.vlgmr.msra.gmra.mrb[40].mxu0 %v5547_v10 }
0x15fb   : > { %6360 = vmatprep.mubr.msk.f32.mxu1 %vm8687_vm1, %v11073_v61 }
0x16cd   : > { %v5756_v4 = vpop.f32.mrb[38].mxu1  ;;  %v5827_v58 = vpop.f32.mrb[40].mxu0 }
0x16ce   : > { %v5832_v63 = vadd.f32 %v5756_v4, %v11460_v43  ;;  %v5758_v55 = vpop.f32.mrb[39].mxu1  ;;  %v5829_v31 = vpop.f32.mrb[41].mxu0  ;;  %v5834_v30 = vadd.f32 %v5827_v58, %v9457_v12 }
0x16cf   : > { %v5833_v33 = vadd.f32 %v5758_v55, %v9448_v39  ;;  %v5835_v22 = vadd.f32 %v5829_v31, %v9453_v11 }
0x16d0   : > { %v6199_v35 = vmul.f32 -1.442695, %v5832_v63 }
0x16d1   : > { %v6200_v3 = vmul.f32 -1.442695, %v5833_v33  ;;  %v6201_v7 = vmul.f32 -1.442695, %v5835_v22 }
0x16d2   : > { %8392 = vpow2.f32 %v6199_v35 }
0x16d3   : > { %8394 = vpow2.f32 %v6200_v3 }
0x16d4   : > { %8396 = vpow2.f32 %v6201_v7 }
0x16d5   : > { %8398 = vtanh.f32 %v5834_v30 }
0x16dc   : > { %v8393_v1 = vpop.eup %8392 }
0x16dd   : > { %v8395_v51 = vpop.eup %8394  ;;  %v5839_v61 = vadd.f32 1.0, %v8393_v1 }
0x16de   : > { %v5845_v8 = vadd.f32 1.0, %v8395_v51  ;;  %v8397_v43 = vpop.eup %8396 }
0x16df   : > { %8400 = vrcp.f32 %v5839_v61  ;;  %v8399_v18 = vpop.eup %8398  ;;  %v5852_v44 = vadd.f32 1.0, %v8397_v43 }
0x16e0   : > { %8402 = vrcp.f32 %v5845_v8 }
0x16e1   : > { %8404 = vrcp.f32 %v5852_v44 }
0x16e9   : > { %v8401_v39 = vpop.eup %8400 }
0x16ea   : > { %v8403_v16 = vpop.eup %8402  ;;  %v5856_v0 = vmul.f32 %v8401_v39, %v8399_v18 }
0x16eb   : > { %v5855_v48 = vmul.f32 %v8403_v16, %v10478_v32  ;;  %v8405_v12 = vpop.eup %8404  ;;  %v981_v32 = vld [vmem:[#allocation5] sm:$0x1] }
0x16ed   : > { %v5857_v11 = vadd.f32 %v5856_v0, %v5855_v48 }
0x16ef   : > { %8406 = vtanh.f32 %v5857_v11 }
0x16f9   : > { %v8407_v27 = vpop.eup %8406 }
0x16fa   : > { %v5859_v52 = vmul.f32 %v8407_v27, %v8405_v12 }
0x16fc   : > { %v5863_v17 = vrot.slane %v5859_v52, %v9439_v47 }
0x16fe   : > { %v5865_v45 = vmul.f32 %v10497_v42, %v5863_v17  ;;  %v5864_v46 = vmul.f32 %v10503_v60, %v5863_v17  ;;  %v5867_v53 = vmul.f32 %v10511_v59, %v5863_v17  ;;  %v5866_v20 = vmul.f32 %v10517_v2, %v5863_v17 }
0x1700   : > { %5870 = vadd.xlane.f32.xlu1 %v5865_v45  ;;  %5868 = vadd.xlane.f32.xlu0 %v5864_v46 }
0x1704   : > { %5874 = vadd.xlane.f32.xlu1 %v5867_v53  ;;  %5872 = vadd.xlane.f32.xlu0 %v5866_v20 }
0x171a   : > { %1554 = vperm.xlu0 %8095, %v981_v32  }
0x178d   : > { %v5871_v34 = vpop.xlane.xlu1 %5870  ;;  %v5869_v21 = vpop.xlane.xlu0 %5868 }
0x178e   : > { %v5877_v23 = vadd.f32 %v5871_v34, %v11191_v36  ;;  %v5876_v37 = vadd.f32 %v5869_v21, %v11192_v14 }
0x1790   : > { %8408 = vtanh.f32 %v5877_v23 }
0x1791   : > { %8410 = vtanh.f32 %v5876_v37  ;;  %v5875_v42 = vpop.xlane.xlu1 %5874  ;;  %v5873_v60 = vpop.xlane.xlu0 %5872 }
0x1792   : > { %v5879_v59 = vadd.f32 %v5875_v42, %v11194_v41  ;;  %v5878_v2 = vadd.f32 %v5873_v60, %v11193_v25  ;;  %v11598_v41 = vld [vmem:[#allocation25_spill] sm:$0xff]  ;;  %v11599_v25 = vld [vmem:[#allocation26_spill] sm:$0xff] }
0x1794   : > { %8412 = vtanh.f32 %v5879_v59 }
0x1795   : > { %8414 = vtanh.f32 %v5878_v2 }
0x1799   : > { %v1555_v50 = vpop.permute.xlu0 %1554 }
0x179a   : > { %v8409_v15 = vpop.eup %8408  ;;  %v1560_v36 = vrot.slane %v1555_v50, %v9439_v47 }
0x179b   : > { %v8411_v14 = vpop.eup %8410 }
0x179c   : > { %v1632_v49 = vadd.f32 %v11597_v62, %v1560_v36  ;;  %v2249_v38 = vadd.f32 %v11598_v41, %v1560_v36  ;;  %v2866_v19 = vadd.f32 %v11599_v25, %v1560_v36  ;;  %v3483_v28 = vadd.f32 %v11600_v29, %v1560_v36 }
0x179d   : > { %v4100_v13 = vadd.f32 %v11601_v54, %v1560_v36  ;;  %v4717_v10 = vadd.f32 %v11602_v6, %v1560_v36  ;;  %v5334_v4 = vadd.f32 %v10598_v26, %v1560_v36  ;;  %v7954_v47 = vpack.c.bf16 %v8409_v15, %v8411_v14 }
0x179e   : > { %v8413_v58 = vpop.eup %8412  ;;  %v1635_v63 = vsel %vm10629_vm3, -1e+10, %v1632_v49  ;;  %v2252_v55 = vsel %vm10629_vm3, -1e+10, %v2249_v38  ;;  %v2869_v31 = vsel %vm10629_vm3, -1e+10, %v2866_v19 }
0x179f   : > { %v8415_v33 = vpop.eup %8414  ;;  %7955 = vmatpush3.bf16.msra.mxu1 %v7954_v47  ;;  %v3486_v35 = vsel %vm10629_vm3, -1e+10, %v3483_v28  ;;  %v4103_v3 = vsel %vm10629_vm3, -1e+10, %v4100_v13  ;;  %v4720_v26 = vsel %vm10629_vm3, -1e+10, %v4717_v10 }
0x17a0   : > { %1636 = vst [vmem:[%s608_s27] sm:$0x1] %v1635_v63  ;;  %2253 = vst [vmem:[%s608_s27 + $0x1] sm:$0x1] %v2252_v55  ;;  %7956 = vmatprep.subr.bf16.mxu1 %v11190_v56  ;;  %v7957_v22 = vpack.c.bf16 %v8413_v58, %v8415_v33  ;;  %v5337_v7 = vsel %vm10629_vm3, -1e+10, %v5334_v4 }
0x17a1   : > { %2870 = vst [vmem:[%s608_s27 + $0x2] sm:$0x1] %v2869_v31  ;;  %3487 = vst [vmem:[%s608_s27 + $0x3] sm:$0x1] %v3486_v35 }
0x17a2   : > { %4104 = vst [vmem:[%s608_s27 + $0x4] sm:$0x1] %v4103_v3  ;;  %4721 = vst [vmem:[%s608_s27 + $0x5] sm:$0x1] %v4720_v26 }
0x17a3   : > { %5338 = vst [vmem:[%s608_s27 + $0x6] sm:$0x1] %v5337_v7  ;;  %7958 = vmatpush3.bf16.msra.mxu1 %v7957_v22 }
0x17a6   : > { %6361 = vmatmul.mubr.msk.f32.vlgmr.msra.gmra.mrb[40].mxu1 %vm1561_vm2, %v10542_v57 }
0x1879   : > { %v5950_v30 = vpop.f32.mrb[40].mxu1 }
0x187a   : > { %v5951_v1 = vadd.f32 %v5950_v30, %v1560_v36  ;;  %v6362_v51 = vpop.f32.mrb[41].mxu1 }
0x187c   : > { %v5954_v56 = vsel %vm10629_vm3, -1e+10, %v5951_v1 }
0x187d   : > { %5955 = vst [vmem:[%s608_s27 + $0x7] sm:$0x1] %v5954_v56 }
0x187e   : > { %8605 = shalt.err (!%p8602_p8)
}
0x187f   : > { %s8606_s10 = scalar_lea.hbm %s10661_s29, 128  ;;  %s8610_s30 = scalar_lea.hbm %s11603_s22, 256 }
0x1880   : > { %p8607_p13 = scmp.ne.s32.totalorder %s10661_s29, %s8606_s10  ;;  %p8611_p10 = scmp.lt.u32.totalorder %s10661_s29, %s11603_s22 }
0x1881   : > { %p8612_p12 = scmp.lt.u32.totalorder %s8610_s30, %s8606_s10  ;;  %p8614_p4 = scmp.lt.u32.totalorder %s8606_s10, %s10661_s29 }
0x1882   : > { %p8608_p9 = pnand %p8607_p13, %p8948_p0 }
0x1883   : > { %p8613_p2 = por %p8612_p12, %p8611_p10 }
0x1884   : > { %p8609_p5 = pneg %p8608_p9 }
0x1885   : > { %p8615_p6 = por %p8614_p4, %p8613_p2 }
0x1887   : > { %p8616_p11 = pnand %p8615_p6, %p8609_p5 }
0x1889   : > { %8619 = shalt.err (!%p8616_p11)
}
0x188a   : > { %8012 = dma.vmem_to_hbm [thread:$0]  (%p8948_p0), %s10663_s2, 128, %s10661_s29, %s5957_s24  }
0x188b PF: > { %s11604_s23 = sld [smem:[#allocation21_spill]]  ;;  %s11605_s21 = sld [smem:[#allocation22_spill]] }
0x188c   : > { %p11607_p3 = scmp.ge.s32.totalorder %s8668_s26, 2 }
0x1891   : > { %s5982_s1 = sand.u32 1, %s11604_s23   ;;  %p11606_p1 = scmp.ne.s32.totalorder %s11605_s21, 0 }
0x1892   : > { %s5983_s19 = scalar_lea.sflag [#allocation8], %s5982_s1 }
0x1893   : > { %p8032_p7 = pnand %p11607_p3, %p11606_p1 }
0x1895   : > { %8651 = dma.done.wait (!%p8032_p7), %s5983_s19, 128  }
0x1896   : > { %8653 = vsyncadd (!%p8032_p7), %s5983_s19, 4294967168  ;;  %p42_p8 = scmp.ge.s32.totalorder %s8938_s18, 4   ;;  %s11608_s1 = smov %s8660_s16 }
0x1897   : > { %s11609_s16 = smov %s8664_s25  ;;  %s11610_s25 = smov %s8954_s15 }
0x1898   : > { %s11611_s26 = smov %s8938_s18  ;;  %44 = sbr.rel (!%p42_p8) target bundleno = 36 (0x24), region = 155 }
0x189f   :  { %5988 = vsyncpa [#allocation7], 1 }
0x18a0   :  { %5990 = vsyncpa [#allocation7 + $0x1], 1 }
0x18a1   :  { %5991 = vsyncpa [#allocation10], 1 }
0x18a2   :  { %5992 = vsyncpa [#allocation13], 1 }
0x18a3   :  { %5993 = vsyncpa [#allocation8], 1 }
0x18a4   :  { %5995 = vsyncpa [#allocation8 + $0x1], 1 }

</bundles_post_ra>
